<compile_context>
chip_gen: v7x
topology: tpu7x:2x2x1
jax: 0.10.0
libtpu: 0.0.40
codegen_flags: <defaults>
</compile_context>

<pallas_src>
import functools

import jax
import jax.numpy as jnp
from jax.experimental import pallas as pl
from jax.experimental.pallas import tpu as pltpu

LANE = 128      # TPU lane width; small feature dims are zero-padded to this
FEAT = 1000     # "resnet18" feature count (logical)
FEAT_P = 1024   # lane-padded feature count
OUT_SUB = 8     # sublane padding of the output slab (aligned (8,128) tile)


# ----------------------------------------------------------------------------
# Fused kernel: one grid step = full forward (conv -> ReLU -> GAP -> head)
# for one image. All weights are VMEM-resident (constant index_maps).
# ----------------------------------------------------------------------------
def fused_kernel(x_ref, wc_ref, bc_ref, wf_ref, bf_ref,
                 w1_ref, b1_ref, w2_ref, b2_ref,
                 w3x_ref, w3r_ref, b3_ref,
                 w4_ref, b4_ref, w5_ref, b5_ref, y_ref):
    Hp, Wp, C = x_ref.shape[1], x_ref.shape[2], x_ref.shape[3]
    H, W = Hp - 2, Wp - 2
    FP = wc_ref.shape[2]                       # lane-padded conv width (=128)

    dot = functools.partial(jnp.dot, preferred_element_type=jnp.float32)

    # --- stand-in encoder: 3x3 'same' conv as 9 shifted taps (no im2col) ----
    acc = jnp.zeros((H, W, FP), jnp.float32)
    for kh in range(3):
        for kw in range(3):
            xs = x_ref[0, kh:kh + H, kw:kw + W, :]                    # (H, W, C)
            wt = jnp.broadcast_to(wc_ref[3 * kh + kw], (H, C, FP))    # (H, C, FP)
            acc = acc + jax.lax.dot_general(                          # batched over H
                xs, wt,
                dimension_numbers=(((2,), (1,)), ((0,), (0,))),
                preferred_element_type=jnp.float32)                   # (H, W, FP)
    acc = jnp.maximum(acc + bc_ref[0], 0.0)                           # bias + ReLU
    pooled = jnp.sum(jnp.sum(acc, axis=0), axis=0, keepdims=True)     # (1, FP)
    pooled = pooled * (1.0 / (H * W))                                 # global avg pool

    # --- backbone final FC -> 1024(=padded 1000)-dim "resnet" features ------
    x = dot(pooled, wf_ref[...]) + bf_ref[...]                        # (1, FEAT_P)

    # --- fc_1: Linear(1000, r) -> Tanh -> Linear(r, r) ----------------------
    t = jnp.tanh(dot(x, w1_ref[...]) + b1_ref[...])
    r = dot(t, w2_ref[...]) + b2_ref[...]

    # --- xr_to_y on h = concat([x, r], dim=1)  (exact split of W3 rows) -----
    hx = jnp.tanh(x)
    hr = jnp.tanh(r)
    u = dot(hx, w3x_ref[...]) + dot(hr, w3r_ref[...]) + b3_ref[...]
    u = jnp.tanh(u)
    u = jnp.tanh(dot(u, w4_ref[...]) + b4_ref[...])
    y = dot(u, w5_ref[...]) + b5_ref[...]                             # (1, LANE); lane 0 = y

    y_ref[...] = jnp.broadcast_to(y[:, None, :], y_ref.shape)         # lane-dense store


# ----------------------------------------------------------------------------
# Wrapper: layout glue + single pallas_call
# ----------------------------------------------------------------------------
def trivial_cnn_forward(x_nchw, padded_params):
    wc = padded_params[0]
    wf = padded_params[2]
    B, C, H, W = x_nchw.shape
    Hp, Wp = H + 2, W + 2
    FP = wc.shape[2]
    FEATP = wf.shape[1]

    x_nhwc = jnp.transpose(x_nchw, (0, 2, 3, 1))                      # NCHW -> NHWC
    x_pad = jnp.pad(x_nhwc, ((0, 0), (1, 1), (1, 1), (0, 0)))         # 'same' 3x3 padding

    const2 = lambda b: (0, 0)
    wspec = lambda shp: pl.BlockSpec(shp, const2)                     # VMEM-resident weight

    y_slab = pl.pallas_call(
        fused_kernel,
        out_shape=jax.ShapeDtypeStruct((B, OUT_SUB, LANE), jnp.float32),
        grid=(B,),
        in_specs=[
            pl.BlockSpec((1, Hp, Wp, C), lambda b: (b, 0, 0, 0)),     # image (per step)
            pl.BlockSpec((9, C, FP), lambda b: (0, 0, 0)),            # conv taps
            wspec((1, FP)),                                           # conv bias
            wspec((FP, FEATP)), wspec((1, FEATP)),                    # w_feat, b_feat
            wspec((FEATP, LANE)), wspec((1, LANE)),                   # w1, b1
            wspec((LANE, LANE)), wspec((1, LANE)),                    # w2, b2
            wspec((FEATP, LANE)), wspec((LANE, LANE)), wspec((1, LANE)),  # w3x, w3r, b3
            wspec((LANE, LANE)), wspec((1, LANE)),                    # w4, b4
            wspec((LANE, LANE)), wspec((1, LANE)),                    # w5, b5
        ],
        out_specs=pl.BlockSpec((1, OUT_SUB, LANE), lambda b: (b, 0, 0)),
        compiler_params=pltpu.CompilerParams(
            dimension_semantics=("parallel",)),   # v7x: shard images across both TCs
    )(x_pad, *padded_params)
    return y_slab[:, 0, :1]                                           # (B, 1)


# ----------------------------------------------------------------------------
# Parameters (deterministic, PyTorch-Linear-style uniform init) + zero padding
# ----------------------------------------------------------------------------
def _uniform(key, shape, fan_in):
    bound = 1.0 / float(fan_in) ** 0.5
    return jax.random.uniform(key, shape, jnp.float32, -bound, bound)


def make_params(key, cin, conv_f, r_dim):
    """Logical (unpadded) parameters."""
    ks = jax.random.split(key, 16)
    w_conv = _uniform(ks[0], (9, cin, conv_f), 9 * cin)       # 3x3 conv taps
    b_conv = _uniform(ks[1], (conv_f,), 9 * cin)
    w_feat = _uniform(ks[2], (conv_f, FEAT), conv_f)          # encoder -> 1000 features
    b_feat = _uniform(ks[3], (FEAT,), conv_f)
    w1 = _uniform(ks[4], (FEAT, r_dim), FEAT)                 # fc_1[0]
    b1 = _uniform(ks[5], (r_dim,), FEAT)
    w2 = _uniform(ks[6], (r_dim, r_dim), r_dim)               # fc_1[2]
    b2 = _uniform(ks[7], (r_dim,), r_dim)
    w3 = _uniform(ks[8], (FEAT + r_dim, r_dim), FEAT + r_dim)  # xr_to_y[1]
    b3 = _uniform(ks[9], (r_dim,), FEAT + r_dim)
    w4 = _uniform(ks[10], (r_dim, r_dim), r_dim)              # xr_to_y[3]
    b4 = _uniform(ks[11], (r_dim,), r_dim)
    w5 = _uniform(ks[12], (r_dim, 1), r_dim)                  # xr_to_y[5]
    b5 = _uniform(ks[13], (1,), r_dim)
    return (w_conv, b_conv, w_feat, b_feat, w1, b1, w2, b2, w3, b3, w4, b4, w5, b5)


def _pad_to(a, shape):
    out = jnp.zeros(shape, a.dtype)
    return out.at[tuple(slice(0, d) for d in a.shape)].set(a)


def pad_params(logical, cin):
    """Zero-pad every parameter to lane-dense shapes (math stays exact)."""
    (w_conv, b_conv, w_feat, b_feat, w1, b1, w2, b2, w3, b3, w4, b4, w5, b5) = logical
    return (
        _pad_to(w_conv, (9, cin, LANE)),
        _pad_to(b_conv.reshape(1, -1), (1, LANE)),
        _pad_to(w_feat, (LANE, FEAT_P)),
        _pad_to(b_feat.reshape(1, -1), (1, FEAT_P)),
        _pad_to(w1, (FEAT_P, LANE)),
        _pad_to(b1.reshape(1, -1), (1, LANE)),
        _pad_to(w2, (LANE, LANE)),
        _pad_to(b2.reshape(1, -1), (1, LANE)),
        _pad_to(w3[:FEAT], (FEAT_P, LANE)),        # concat split: x rows of W3
        _pad_to(w3[FEAT:], (LANE, LANE)),          # concat split: r rows of W3
        _pad_to(b3.reshape(1, -1), (1, LANE)),
        _pad_to(w4, (LANE, LANE)),
        _pad_to(b4.reshape(1, -1), (1, LANE)),
        _pad_to(w5, (LANE, LANE)),
        _pad_to(b5.reshape(1, -1), (1, LANE)),
    )


# ----------------------------------------------------------------------------
# Pure-JAX reference (unpadded) for a correctness check
# ----------------------------------------------------------------------------
def reference_forward(x_nchw, logical):
    (w_conv, b_conv, w_feat, b_feat, w1, b1, w2, b2, w3, b3, w4, b4, w5, b5) = logical
    hi = jax.lax.Precision.HIGHEST
    dot = functools.partial(jnp.dot, precision=hi)
    B, C, H, W = x_nchw.shape
    x = jnp.transpose(x_nchw, (0, 2, 3, 1))
    xp = jnp.pad(x, ((0, 0), (1, 1), (1, 1), (0, 0)))
    conv = jnp.zeros((B, H, W, w_conv.shape[-1]), jnp.float32)
    for kh in range(3):
        for kw in range(3):
            conv = conv + jnp.einsum('bhwc,cf->bhwf',
                                     xp[:, kh:kh + H, kw:kw + W, :],
                                     w_conv[3 * kh + kw], precision=hi)
    pooled = jnp.mean(jnp.maximum(conv + b_conv, 0.0), axis=(1, 2))
    xf = dot(pooled, w_feat) + b_feat
    r = dot(jnp.tanh(dot(xf, w1) + b1), w2) + b2
    h = jnp.concatenate([xf, r], axis=1)
    u = jnp.tanh(dot(jnp.tanh(h), w3) + b3)
    u = jnp.tanh(dot(u, w4) + b4)
    return dot(u, w5) + b5


if __name__ == "__main__":
    B, C, H, W = 2, 4, 16, 16
    R_DIM, CONV_F = 32, 16

    key = jax.random.PRNGKey(0)
    k_x, k_p = jax.random.split(key)
    x = jax.random.normal(k_x, (B, C, H, W), jnp.float32)

    logical = make_params(k_p, C, CONV_F, R_DIM)
    padded = pad_params(logical, C)

    fwd = jax.jit(trivial_cnn_forward)
    y = fwd(x, padded)
    jax.block_until_ready(y)

    assert y.shape == (B, 1) and y.dtype == jnp.float32
    y_ref = reference_forward(x, logical)
    err = float(jnp.max(jnp.abs(y - y_ref)))
    assert err < 5e-2, f"kernel/reference mismatch: max abs err = {err}"
    print("KERNEL_OK")
</pallas_src>

<mosaic_0001>
module attributes {stable_mosaic.version = 11 : i64} {
  func.func @fused_kernel(%arg0: i32, %arg1: memref<1x18x18x4xf32, #tpu.memory_space<vmem>>, %arg2: memref<9x4x128xf32, #tpu.memory_space<vmem>>, %arg3: memref<1x128xf32, #tpu.memory_space<vmem>>, %arg4: memref<128x1024xf32, #tpu.memory_space<vmem>>, %arg5: memref<1x1024xf32, #tpu.memory_space<vmem>>, %arg6: memref<1024x128xf32, #tpu.memory_space<vmem>>, %arg7: memref<1x128xf32, #tpu.memory_space<vmem>>, %arg8: memref<128x128xf32, #tpu.memory_space<vmem>>, %arg9: memref<1x128xf32, #tpu.memory_space<vmem>>, %arg10: memref<1024x128xf32, #tpu.memory_space<vmem>>, %arg11: memref<128x128xf32, #tpu.memory_space<vmem>>, %arg12: memref<1x128xf32, #tpu.memory_space<vmem>>, %arg13: memref<128x128xf32, #tpu.memory_space<vmem>>, %arg14: memref<1x128xf32, #tpu.memory_space<vmem>>, %arg15: memref<128x128xf32, #tpu.memory_space<vmem>>, %arg16: memref<1x128xf32, #tpu.memory_space<vmem>>, %arg17: memref<1x8x128xf32, #tpu.memory_space<vmem>>) attributes {dimension_semantics = [#tpu.dimension_semantics<parallel>], iteration_bounds = array<i64: 2>, scalar_prefetch = 0 : i64, scratch_operands = 0 : i64, tpu.core_type = #tpu.core_type<tc>, window_params = [{transform_indices = @transform_0, window_bounds = array<i64: 1, 18, 18, 4>}, {pipeline_mode = #tpu.pipeline_mode<synchronous>, transform_indices = @transform_1, window_bounds = array<i64: 9, 4, 128>}, {pipeline_mode = #tpu.pipeline_mode<synchronous>, transform_indices = @transform_2, window_bounds = array<i64: 1, 128>}, {pipeline_mode = #tpu.pipeline_mode<synchronous>, transform_indices = @transform_3, window_bounds = array<i64: 128, 1024>}, {pipeline_mode = #tpu.pipeline_mode<synchronous>, transform_indices = @transform_4, window_bounds = array<i64: 1, 1024>}, {pipeline_mode = #tpu.pipeline_mode<synchronous>, transform_indices = @transform_5, window_bounds = array<i64: 1024, 128>}, {pipeline_mode = #tpu.pipeline_mode<synchronous>, transform_indices = @transform_6, window_bounds = array<i64: 1, 128>}, {pipeline_mode = #tpu.pipeline_mode<synchronous>, transform_indices = @transform_7, window_bounds = array<i64: 128, 128>}, {pipeline_mode = #tpu.pipeline_mode<synchronous>, transform_indices = @transform_8, window_bounds = array<i64: 1, 128>}, {pipeline_mode = #tpu.pipeline_mode<synchronous>, transform_indices = @transform_9, window_bounds = array<i64: 1024, 128>}, {pipeline_mode = #tpu.pipeline_mode<synchronous>, transform_indices = @transform_10, window_bounds = array<i64: 128, 128>}, {pipeline_mode = #tpu.pipeline_mode<synchronous>, transform_indices = @transform_11, window_bounds = array<i64: 1, 128>}, {pipeline_mode = #tpu.pipeline_mode<synchronous>, transform_indices = @transform_12, window_bounds = array<i64: 128, 128>}, {pipeline_mode = #tpu.pipeline_mode<synchronous>, transform_indices = @transform_13, window_bounds = array<i64: 1, 128>}, {pipeline_mode = #tpu.pipeline_mode<synchronous>, transform_indices = @transform_14, window_bounds = array<i64: 128, 128>}, {pipeline_mode = #tpu.pipeline_mode<synchronous>, transform_indices = @transform_15, window_bounds = array<i64: 1, 128>}, {transform_indices = @transform_16, window_bounds = array<i64: 1, 8, 128>}]} {
    %cst = arith.constant 0.000000e+00 : f32
    %0 = vector.broadcast %cst : f32 to vector<16x16x128xf32>
    %c0 = arith.constant 0 : index
    %c0_0 = arith.constant 0 : index
    %c0_1 = arith.constant 0 : index
    %c0_2 = arith.constant 0 : index
    %1 = vector.load %arg1[%c0, %c0_0, %c0_1, %c0_2] : memref<1x18x18x4xf32, #tpu.memory_space<vmem>>, vector<1x16x16x4xf32>
    %2 = vector.shape_cast %1 : vector<1x16x16x4xf32> to vector<16x16x4xf32>
    %c0_3 = arith.constant 0 : index
    %c0_4 = arith.constant 0 : index
    %c0_5 = arith.constant 0 : index
    %3 = vector.load %arg2[%c0_3, %c0_4, %c0_5] : memref<9x4x128xf32, #tpu.memory_space<vmem>>, vector<1x4x128xf32>
    %4 = vector.shape_cast %3 : vector<1x4x128xf32> to vector<4x128xf32>
    %5 = vector.shape_cast %4 : vector<4x128xf32> to vector<1x4x128xf32>
    %6 = vector.broadcast %5 : vector<1x4x128xf32> to vector<16x4x128xf32>
    %cst_6 = arith.constant dense<0.000000e+00> : vector<16x16x128xf32>
    %7 = tpu.matmul %2, %6, %cst_6 {dimension_numbers = #tpu.dot_dimension_numbers<[2], [1], [1], [2], [0, 0, 0, 1, 1, 2], [0], [0]>} : vector<16x16x4xf32>, vector<16x4x128xf32>, vector<16x16x128xf32> -> vector<16x16x128xf32>
    %8 = arith.addf %0, %7 : vector<16x16x128xf32>
    %c0_7 = arith.constant 0 : index
    %c0_8 = arith.constant 0 : index
    %c1 = arith.constant 1 : index
    %c0_9 = arith.constant 0 : index
    %9 = vector.load %arg1[%c0_7, %c0_8, %c1, %c0_9] : memref<1x18x18x4xf32, #tpu.memory_space<vmem>>, vector<1x16x16x4xf32>
    %10 = vector.shape_cast %9 : vector<1x16x16x4xf32> to vector<16x16x4xf32>
    %c1_10 = arith.constant 1 : index
    %c0_11 = arith.constant 0 : index
    %c0_12 = arith.constant 0 : index
    %11 = vector.load %arg2[%c1_10, %c0_11, %c0_12] : memref<9x4x128xf32, #tpu.memory_space<vmem>>, vector<1x4x128xf32>
    %12 = vector.shape_cast %11 : vector<1x4x128xf32> to vector<4x128xf32>
    %13 = vector.shape_cast %12 : vector<4x128xf32> to vector<1x4x128xf32>
    %14 = vector.broadcast %13 : vector<1x4x128xf32> to vector<16x4x128xf32>
    %cst_13 = arith.constant dense<0.000000e+00> : vector<16x16x128xf32>
    %15 = tpu.matmul %10, %14, %cst_13 {dimension_numbers = #tpu.dot_dimension_numbers<[2], [1], [1], [2], [0, 0, 0, 1, 1, 2], [0], [0]>} : vector<16x16x4xf32>, vector<16x4x128xf32>, vector<16x16x128xf32> -> vector<16x16x128xf32>
    %16 = arith.addf %8, %15 : vector<16x16x128xf32>
    %c0_14 = arith.constant 0 : index
    %c0_15 = arith.constant 0 : index
    %c2 = arith.constant 2 : index
    %c0_16 = arith.constant 0 : index
    %17 = vector.load %arg1[%c0_14, %c0_15, %c2, %c0_16] : memref<1x18x18x4xf32, #tpu.memory_space<vmem>>, vector<1x16x16x4xf32>
    %18 = vector.shape_cast %17 : vector<1x16x16x4xf32> to vector<16x16x4xf32>
    %c2_17 = arith.constant 2 : index
    %c0_18 = arith.constant 0 : index
    %c0_19 = arith.constant 0 : index
    %19 = vector.load %arg2[%c2_17, %c0_18, %c0_19] : memref<9x4x128xf32, #tpu.memory_space<vmem>>, vector<1x4x128xf32>
    %20 = vector.shape_cast %19 : vector<1x4x128xf32> to vector<4x128xf32>
    %21 = vector.shape_cast %20 : vector<4x128xf32> to vector<1x4x128xf32>
    %22 = vector.broadcast %21 : vector<1x4x128xf32> to vector<16x4x128xf32>
    %cst_20 = arith.constant dense<0.000000e+00> : vector<16x16x128xf32>
    %23 = tpu.matmul %18, %22, %cst_20 {dimension_numbers = #tpu.dot_dimension_numbers<[2], [1], [1], [2], [0, 0, 0, 1, 1, 2], [0], [0]>} : vector<16x16x4xf32>, vector<16x4x128xf32>, vector<16x16x128xf32> -> vector<16x16x128xf32>
    %24 = arith.addf %16, %23 : vector<16x16x128xf32>
    %c0_21 = arith.constant 0 : index
    %c1_22 = arith.constant 1 : index
    %c0_23 = arith.constant 0 : index
    %c0_24 = arith.constant 0 : index
    %25 = vector.load %arg1[%c0_21, %c1_22, %c0_23, %c0_24] : memref<1x18x18x4xf32, #tpu.memory_space<vmem>>, vector<1x16x16x4xf32>
    %26 = vector.shape_cast %25 : vector<1x16x16x4xf32> to vector<16x16x4xf32>
    %c3 = arith.constant 3 : index
    %c0_25 = arith.constant 0 : index
    %c0_26 = arith.constant 0 : index
    %27 = vector.load %arg2[%c3, %c0_25, %c0_26] : memref<9x4x128xf32, #tpu.memory_space<vmem>>, vector<1x4x128xf32>
    %28 = vector.shape_cast %27 : vector<1x4x128xf32> to vector<4x128xf32>
    %29 = vector.shape_cast %28 : vector<4x128xf32> to vector<1x4x128xf32>
    %30 = vector.broadcast %29 : vector<1x4x128xf32> to vector<16x4x128xf32>
    %cst_27 = arith.constant dense<0.000000e+00> : vector<16x16x128xf32>
    %31 = tpu.matmul %26, %30, %cst_27 {dimension_numbers = #tpu.dot_dimension_numbers<[2], [1], [1], [2], [0, 0, 0, 1, 1, 2], [0], [0]>} : vector<16x16x4xf32>, vector<16x4x128xf32>, vector<16x16x128xf32> -> vector<16x16x128xf32>
    %32 = arith.addf %24, %31 : vector<16x16x128xf32>
    %c0_28 = arith.constant 0 : index
    %c1_29 = arith.constant 1 : index
    %c1_30 = arith.constant 1 : index
    %c0_31 = arith.constant 0 : index
    %33 = vector.load %arg1[%c0_28, %c1_29, %c1_30, %c0_31] : memref<1x18x18x4xf32, #tpu.memory_space<vmem>>, vector<1x16x16x4xf32>
    %34 = vector.shape_cast %33 : vector<1x16x16x4xf32> to vector<16x16x4xf32>
    %c4 = arith.constant 4 : index
    %c0_32 = arith.constant 0 : index
    %c0_33 = arith.constant 0 : index
    %35 = vector.load %arg2[%c4, %c0_32, %c0_33] : memref<9x4x128xf32, #tpu.memory_space<vmem>>, vector<1x4x128xf32>
    %36 = vector.shape_cast %35 : vector<1x4x128xf32> to vector<4x128xf32>
    %37 = vector.shape_cast %36 : vector<4x128xf32> to vector<1x4x128xf32>
    %38 = vector.broadcast %37 : vector<1x4x128xf32> to vector<16x4x128xf32>
    %cst_34 = arith.constant dense<0.000000e+00> : vector<16x16x128xf32>
    %39 = tpu.matmul %34, %38, %cst_34 {dimension_numbers = #tpu.dot_dimension_numbers<[2], [1], [1], [2], [0, 0, 0, 1, 1, 2], [0], [0]>} : vector<16x16x4xf32>, vector<16x4x128xf32>, vector<16x16x128xf32> -> vector<16x16x128xf32>
    %40 = arith.addf %32, %39 : vector<16x16x128xf32>
    %c0_35 = arith.constant 0 : index
    %c1_36 = arith.constant 1 : index
    %c2_37 = arith.constant 2 : index
    %c0_38 = arith.constant 0 : index
    %41 = vector.load %arg1[%c0_35, %c1_36, %c2_37, %c0_38] : memref<1x18x18x4xf32, #tpu.memory_space<vmem>>, vector<1x16x16x4xf32>
    %42 = vector.shape_cast %41 : vector<1x16x16x4xf32> to vector<16x16x4xf32>
    %c5 = arith.constant 5 : index
    %c0_39 = arith.constant 0 : index
    %c0_40 = arith.constant 0 : index
    %43 = vector.load %arg2[%c5, %c0_39, %c0_40] : memref<9x4x128xf32, #tpu.memory_space<vmem>>, vector<1x4x128xf32>
    %44 = vector.shape_cast %43 : vector<1x4x128xf32> to vector<4x128xf32>
    %45 = vector.shape_cast %44 : vector<4x128xf32> to vector<1x4x128xf32>
    %46 = vector.broadcast %45 : vector<1x4x128xf32> to vector<16x4x128xf32>
    %cst_41 = arith.constant dense<0.000000e+00> : vector<16x16x128xf32>
    %47 = tpu.matmul %42, %46, %cst_41 {dimension_numbers = #tpu.dot_dimension_numbers<[2], [1], [1], [2], [0, 0, 0, 1, 1, 2], [0], [0]>} : vector<16x16x4xf32>, vector<16x4x128xf32>, vector<16x16x128xf32> -> vector<16x16x128xf32>
    %48 = arith.addf %40, %47 : vector<16x16x128xf32>
    %c0_42 = arith.constant 0 : index
    %c2_43 = arith.constant 2 : index
    %c0_44 = arith.constant 0 : index
    %c0_45 = arith.constant 0 : index
    %49 = vector.load %arg1[%c0_42, %c2_43, %c0_44, %c0_45] : memref<1x18x18x4xf32, #tpu.memory_space<vmem>>, vector<1x16x16x4xf32>
    %50 = vector.shape_cast %49 : vector<1x16x16x4xf32> to vector<16x16x4xf32>
    %c6 = arith.constant 6 : index
    %c0_46 = arith.constant 0 : index
    %c0_47 = arith.constant 0 : index
    %51 = vector.load %arg2[%c6, %c0_46, %c0_47] : memref<9x4x128xf32, #tpu.memory_space<vmem>>, vector<1x4x128xf32>
    %52 = vector.shape_cast %51 : vector<1x4x128xf32> to vector<4x128xf32>
    %53 = vector.shape_cast %52 : vector<4x128xf32> to vector<1x4x128xf32>
    %54 = vector.broadcast %53 : vector<1x4x128xf32> to vector<16x4x128xf32>
    %cst_48 = arith.constant dense<0.000000e+00> : vector<16x16x128xf32>
    %55 = tpu.matmul %50, %54, %cst_48 {dimension_numbers = #tpu.dot_dimension_numbers<[2], [1], [1], [2], [0, 0, 0, 1, 1, 2], [0], [0]>} : vector<16x16x4xf32>, vector<16x4x128xf32>, vector<16x16x128xf32> -> vector<16x16x128xf32>
    %56 = arith.addf %48, %55 : vector<16x16x128xf32>
    %c0_49 = arith.constant 0 : index
    %c2_50 = arith.constant 2 : index
    %c1_51 = arith.constant 1 : index
    %c0_52 = arith.constant 0 : index
    %57 = vector.load %arg1[%c0_49, %c2_50, %c1_51, %c0_52] : memref<1x18x18x4xf32, #tpu.memory_space<vmem>>, vector<1x16x16x4xf32>
    %58 = vector.shape_cast %57 : vector<1x16x16x4xf32> to vector<16x16x4xf32>
    %c7 = arith.constant 7 : index
    %c0_53 = arith.constant 0 : index
    %c0_54 = arith.constant 0 : index
    %59 = vector.load %arg2[%c7, %c0_53, %c0_54] : memref<9x4x128xf32, #tpu.memory_space<vmem>>, vector<1x4x128xf32>
    %60 = vector.shape_cast %59 : vector<1x4x128xf32> to vector<4x128xf32>
    %61 = vector.shape_cast %60 : vector<4x128xf32> to vector<1x4x128xf32>
    %62 = vector.broadcast %61 : vector<1x4x128xf32> to vector<16x4x128xf32>
    %cst_55 = arith.constant dense<0.000000e+00> : vector<16x16x128xf32>
    %63 = tpu.matmul %58, %62, %cst_55 {dimension_numbers = #tpu.dot_dimension_numbers<[2], [1], [1], [2], [0, 0, 0, 1, 1, 2], [0], [0]>} : vector<16x16x4xf32>, vector<16x4x128xf32>, vector<16x16x128xf32> -> vector<16x16x128xf32>
    %64 = arith.addf %56, %63 : vector<16x16x128xf32>
    %c0_56 = arith.constant 0 : index
    %c2_57 = arith.constant 2 : index
    %c2_58 = arith.constant 2 : index
    %c0_59 = arith.constant 0 : index
    %65 = vector.load %arg1[%c0_56, %c2_57, %c2_58, %c0_59] : memref<1x18x18x4xf32, #tpu.memory_space<vmem>>, vector<1x16x16x4xf32>
    %66 = vector.shape_cast %65 : vector<1x16x16x4xf32> to vector<16x16x4xf32>
    %c8 = arith.constant 8 : index
    %c0_60 = arith.constant 0 : index
    %c0_61 = arith.constant 0 : index
    %67 = vector.load %arg2[%c8, %c0_60, %c0_61] : memref<9x4x128xf32, #tpu.memory_space<vmem>>, vector<1x4x128xf32>
    %68 = vector.shape_cast %67 : vector<1x4x128xf32> to vector<4x128xf32>
    %69 = vector.shape_cast %68 : vector<4x128xf32> to vector<1x4x128xf32>
    %70 = vector.broadcast %69 : vector<1x4x128xf32> to vector<16x4x128xf32>
    %cst_62 = arith.constant dense<0.000000e+00> : vector<16x16x128xf32>
    %71 = tpu.matmul %66, %70, %cst_62 {dimension_numbers = #tpu.dot_dimension_numbers<[2], [1], [1], [2], [0, 0, 0, 1, 1, 2], [0], [0]>} : vector<16x16x4xf32>, vector<16x4x128xf32>, vector<16x16x128xf32> -> vector<16x16x128xf32>
    %72 = arith.addf %64, %71 : vector<16x16x128xf32>
    %c0_63 = arith.constant 0 : index
    %c0_64 = arith.constant 0 : index
    %73 = vector.load %arg3[%c0_63, %c0_64] : memref<1x128xf32, #tpu.memory_space<vmem>>, vector<1x128xf32>
    %74 = vector.shape_cast %73 : vector<1x128xf32> to vector<128xf32>
    %75 = vector.shape_cast %74 : vector<128xf32> to vector<1x1x128xf32>
    %76 = vector.broadcast %75 : vector<1x1x128xf32> to vector<16x16x128xf32>
    %77 = arith.addf %72, %76 : vector<16x16x128xf32>
    %cst_65 = arith.constant 0.000000e+00 : f32
    %78 = vector.broadcast %cst_65 : f32 to vector<16x16x128xf32>
    %79 = arith.maximumf %77, %78 : vector<16x16x128xf32>
    %cst_66 = arith.constant dense<0.000000e+00> : vector<16x128xf32>
    %80 = vector.multi_reduction <add>, %79, %cst_66 [0] : vector<16x16x128xf32> to vector<16x128xf32>
    %cst_67 = arith.constant dense<0.000000e+00> : vector<128xf32>
    %81 = vector.multi_reduction <add>, %80, %cst_67 [0] : vector<16x128xf32> to vector<128xf32>
    %82 = vector.shape_cast %81 : vector<128xf32> to vector<1x128xf32>
    %cst_68 = arith.constant 3.906250e-03 : f32
    %83 = vector.broadcast %cst_68 : f32 to vector<1x128xf32>
    %84 = arith.mulf %82, %83 : vector<1x128xf32>
    %c0_69 = arith.constant 0 : index
    %c0_70 = arith.constant 0 : index
    %85 = vector.load %arg4[%c0_69, %c0_70] : memref<128x1024xf32, #tpu.memory_space<vmem>>, vector<128x1024xf32>
    %cst_71 = arith.constant dense<0.000000e+00> : vector<1x1024xf32>
    %86 = tpu.matmul %84, %85, %cst_71 {dimension_numbers = #tpu.dot_dimension_numbers<[1], [0], [0], [1], [0, 0, 1, 1], [], []>} : vector<1x128xf32>, vector<128x1024xf32>, vector<1x1024xf32> -> vector<1x1024xf32>
    %c0_72 = arith.constant 0 : index
    %c0_73 = arith.constant 0 : index
    %87 = vector.load %arg5[%c0_72, %c0_73] : memref<1x1024xf32, #tpu.memory_space<vmem>>, vector<1x1024xf32>
    %88 = arith.addf %86, %87 : vector<1x1024xf32>
    %c0_74 = arith.constant 0 : index
    %c0_75 = arith.constant 0 : index
    %89 = vector.load %arg6[%c0_74, %c0_75] : memref<1024x128xf32, #tpu.memory_space<vmem>>, vector<1024x128xf32>
    %cst_76 = arith.constant dense<0.000000e+00> : vector<1x128xf32>
    %90 = tpu.matmul %88, %89, %cst_76 {dimension_numbers = #tpu.dot_dimension_numbers<[1], [0], [0], [1], [0, 0, 1, 1], [], []>} : vector<1x1024xf32>, vector<1024x128xf32>, vector<1x128xf32> -> vector<1x128xf32>
    %c0_77 = arith.constant 0 : index
    %c0_78 = arith.constant 0 : index
    %91 = vector.load %arg7[%c0_77, %c0_78] : memref<1x128xf32, #tpu.memory_space<vmem>>, vector<1x128xf32>
    %92 = arith.addf %90, %91 : vector<1x128xf32>
    %93 = math.tanh %92 : vector<1x128xf32>
    %c0_79 = arith.constant 0 : index
    %c0_80 = arith.constant 0 : index
    %94 = vector.load %arg8[%c0_79, %c0_80] : memref<128x128xf32, #tpu.memory_space<vmem>>, vector<128x128xf32>
    %cst_81 = arith.constant dense<0.000000e+00> : vector<1x128xf32>
    %95 = tpu.matmul %93, %94, %cst_81 {dimension_numbers = #tpu.dot_dimension_numbers<[1], [0], [0], [1], [0, 0, 1, 1], [], []>} : vector<1x128xf32>, vector<128x128xf32>, vector<1x128xf32> -> vector<1x128xf32>
    %c0_82 = arith.constant 0 : index
    %c0_83 = arith.constant 0 : index
    %96 = vector.load %arg9[%c0_82, %c0_83] : memref<1x128xf32, #tpu.memory_space<vmem>>, vector<1x128xf32>
    %97 = arith.addf %95, %96 : vector<1x128xf32>
    %98 = math.tanh %88 : vector<1x1024xf32>
    %99 = math.tanh %97 : vector<1x128xf32>
    %c0_84 = arith.constant 0 : index
    %c0_85 = arith.constant 0 : index
    %100 = vector.load %arg10[%c0_84, %c0_85] : memref<1024x128xf32, #tpu.memory_space<vmem>>, vector<1024x128xf32>
    %cst_86 = arith.constant dense<0.000000e+00> : vector<1x128xf32>
    %101 = tpu.matmul %98, %100, %cst_86 {dimension_numbers = #tpu.dot_dimension_numbers<[1], [0], [0], [1], [0, 0, 1, 1], [], []>} : vector<1x1024xf32>, vector<1024x128xf32>, vector<1x128xf32> -> vector<1x128xf32>
    %c0_87 = arith.constant 0 : index
    %c0_88 = arith.constant 0 : index
    %102 = vector.load %arg11[%c0_87, %c0_88] : memref<128x128xf32, #tpu.memory_space<vmem>>, vector<128x128xf32>
    %cst_89 = arith.constant dense<0.000000e+00> : vector<1x128xf32>
    %103 = tpu.matmul %99, %102, %cst_89 {dimension_numbers = #tpu.dot_dimension_numbers<[1], [0], [0], [1], [0, 0, 1, 1], [], []>} : vector<1x128xf32>, vector<128x128xf32>, vector<1x128xf32> -> vector<1x128xf32>
    %104 = arith.addf %101, %103 : vector<1x128xf32>
    %c0_90 = arith.constant 0 : index
    %c0_91 = arith.constant 0 : index
    %105 = vector.load %arg12[%c0_90, %c0_91] : memref<1x128xf32, #tpu.memory_space<vmem>>, vector<1x128xf32>
    %106 = arith.addf %104, %105 : vector<1x128xf32>
    %107 = math.tanh %106 : vector<1x128xf32>
    %c0_92 = arith.constant 0 : index
    %c0_93 = arith.constant 0 : index
    %108 = vector.load %arg13[%c0_92, %c0_93] : memref<128x128xf32, #tpu.memory_space<vmem>>, vector<128x128xf32>
    %cst_94 = arith.constant dense<0.000000e+00> : vector<1x128xf32>
    %109 = tpu.matmul %107, %108, %cst_94 {dimension_numbers = #tpu.dot_dimension_numbers<[1], [0], [0], [1], [0, 0, 1, 1], [], []>} : vector<1x128xf32>, vector<128x128xf32>, vector<1x128xf32> -> vector<1x128xf32>
    %c0_95 = arith.constant 0 : index
    %c0_96 = arith.constant 0 : index
    %110 = vector.load %arg14[%c0_95, %c0_96] : memref<1x128xf32, #tpu.memory_space<vmem>>, vector<1x128xf32>
    %111 = arith.addf %109, %110 : vector<1x128xf32>
    %112 = math.tanh %111 : vector<1x128xf32>
    %c0_97 = arith.constant 0 : index
    %c0_98 = arith.constant 0 : index
    %113 = vector.load %arg15[%c0_97, %c0_98] : memref<128x128xf32, #tpu.memory_space<vmem>>, vector<128x128xf32>
    %cst_99 = arith.constant dense<0.000000e+00> : vector<1x128xf32>
    %114 = tpu.matmul %112, %113, %cst_99 {dimension_numbers = #tpu.dot_dimension_numbers<[1], [0], [0], [1], [0, 0, 1, 1], [], []>} : vector<1x128xf32>, vector<128x128xf32>, vector<1x128xf32> -> vector<1x128xf32>
    %c0_100 = arith.constant 0 : index
    %c0_101 = arith.constant 0 : index
    %115 = vector.load %arg16[%c0_100, %c0_101] : memref<1x128xf32, #tpu.memory_space<vmem>>, vector<1x128xf32>
    %116 = arith.addf %114, %115 : vector<1x128xf32>
    %117 = vector.shape_cast %116 : vector<1x128xf32> to vector<1x1x128xf32>
    %118 = vector.shape_cast %117 : vector<1x1x128xf32> to vector<1x1x128xf32>
    %119 = vector.broadcast %118 : vector<1x1x128xf32> to vector<1x8x128xf32>
    %c0_102 = arith.constant 0 : index
    %c0_103 = arith.constant 0 : index
    %c0_104 = arith.constant 0 : index
    %120 = vector.load %arg17[%c0_102, %c0_103, %c0_104] : memref<1x8x128xf32, #tpu.memory_space<vmem>>, vector<1x8x128xf32>
    tpu.vector_store %arg17[%c0_102, %c0_103, %c0_104], %119 {strides = array<i32>} : memref<1x8x128xf32, #tpu.memory_space<vmem>>, vector<1x8x128xf32>,
    return
  }
  func.func @transform_0(%arg0: i32) -> (i32, i32, i32, i32) {
    %c0_i32 = arith.constant 0 : i32
    %c0_i32_0 = arith.constant 0 : i32
    %c0_i32_1 = arith.constant 0 : i32
    %c0_i32_2 = arith.constant 0 : i32
    return %arg0, %c0_i32, %c0_i32_0, %c0_i32_1 : i32, i32, i32, i32
  }
  func.func @transform_1(%arg0: i32) -> (i32, i32, i32) {
    %c0_i32 = arith.constant 0 : i32
    %c0_i32_0 = arith.constant 0 : i32
    %c0_i32_1 = arith.constant 0 : i32
    %c0_i32_2 = arith.constant 0 : i32
    return %c0_i32, %c0_i32_0, %c0_i32_1 : i32, i32, i32
  }
  func.func @transform_2(%arg0: i32) -> (i32, i32) {
    %c0_i32 = arith.constant 0 : i32
    %c0_i32_0 = arith.constant 0 : i32
    %c0_i32_1 = arith.constant 0 : i32
    return %c0_i32, %c0_i32_0 : i32, i32
  }
  func.func @transform_3(%arg0: i32) -> (i32, i32) {
    %c0_i32 = arith.constant 0 : i32
    %c0_i32_0 = arith.constant 0 : i32
    %c0_i32_1 = arith.constant 0 : i32
    return %c0_i32, %c0_i32_0 : i32, i32
  }
  func.func @transform_4(%arg0: i32) -> (i32, i32) {
    %c0_i32 = arith.constant 0 : i32
    %c0_i32_0 = arith.constant 0 : i32
    %c0_i32_1 = arith.constant 0 : i32
    return %c0_i32, %c0_i32_0 : i32, i32
  }
  func.func @transform_5(%arg0: i32) -> (i32, i32) {
    %c0_i32 = arith.constant 0 : i32
    %c0_i32_0 = arith.constant 0 : i32
    %c0_i32_1 = arith.constant 0 : i32
    return %c0_i32, %c0_i32_0 : i32, i32
  }
  func.func @transform_6(%arg0: i32) -> (i32, i32) {
    %c0_i32 = arith.constant 0 : i32
    %c0_i32_0 = arith.constant 0 : i32
    %c0_i32_1 = arith.constant 0 : i32
    return %c0_i32, %c0_i32_0 : i32, i32
  }
  func.func @transform_7(%arg0: i32) -> (i32, i32) {
    %c0_i32 = arith.constant 0 : i32
    %c0_i32_0 = arith.constant 0 : i32
    %c0_i32_1 = arith.constant 0 : i32
    return %c0_i32, %c0_i32_0 : i32, i32
  }
  func.func @transform_8(%arg0: i32) -> (i32, i32) {
    %c0_i32 = arith.constant 0 : i32
    %c0_i32_0 = arith.constant 0 : i32
    %c0_i32_1 = arith.constant 0 : i32
    return %c0_i32, %c0_i32_0 : i32, i32
  }
  func.func @transform_9(%arg0: i32) -> (i32, i32) {
    %c0_i32 = arith.constant 0 : i32
    %c0_i32_0 = arith.constant 0 : i32
    %c0_i32_1 = arith.constant 0 : i32
    return %c0_i32, %c0_i32_0 : i32, i32
  }
  func.func @transform_10(%arg0: i32) -> (i32, i32) {
    %c0_i32 = arith.constant 0 : i32
    %c0_i32_0 = arith.constant 0 : i32
    %c0_i32_1 = arith.constant 0 : i32
    return %c0_i32, %c0_i32_0 : i32, i32
  }
  func.func @transform_11(%arg0: i32) -> (i32, i32) {
    %c0_i32 = arith.constant 0 : i32
    %c0_i32_0 = arith.constant 0 : i32
    %c0_i32_1 = arith.constant 0 : i32
    return %c0_i32, %c0_i32_0 : i32, i32
  }
  func.func @transform_12(%arg0: i32) -> (i32, i32) {
    %c0_i32 = arith.constant 0 : i32
    %c0_i32_0 = arith.constant 0 : i32
    %c0_i32_1 = arith.constant 0 : i32
    return %c0_i32, %c0_i32_0 : i32, i32
  }
  func.func @transform_13(%arg0: i32) -> (i32, i32) {
    %c0_i32 = arith.constant 0 : i32
    %c0_i32_0 = arith.constant 0 : i32
    %c0_i32_1 = arith.constant 0 : i32
    return %c0_i32, %c0_i32_0 : i32, i32
  }
  func.func @transform_14(%arg0: i32) -> (i32, i32) {
    %c0_i32 = arith.constant 0 : i32
    %c0_i32_0 = arith.constant 0 : i32
    %c0_i32_1 = arith.constant 0 : i32
    return %c0_i32, %c0_i32_0 : i32, i32
  }
  func.func @transform_15(%arg0: i32) -> (i32, i32) {
    %c0_i32 = arith.constant 0 : i32
    %c0_i32_0 = arith.constant 0 : i32
    %c0_i32_1 = arith.constant 0 : i32
    return %c0_i32, %c0_i32_0 : i32, i32
  }
  func.func @transform_16(%arg0: i32) -> (i32, i32, i32) {
    %c0_i32 = arith.constant 0 : i32
    %c0_i32_0 = arith.constant 0 : i32
    %c0_i32_1 = arith.constant 0 : i32
    return %arg0, %c0_i32, %c0_i32_0 : i32, i32, i32
  }
}

</mosaic_0001>

<bundles_post_ra>
// kernel: trivial_cnn_forward.1
= control target key start
LH: loop header
LB: loop body
LE: loop exit
PB: predicated region body
PF: predicated region fallthrough
CT: control target
= control target key end

     0   :  { %s20873_s0 = inlined_call_operand.vmem [shape: f32[2,18,18,4], index: 0, kind: input, shape index: {}]   ;;  %s20874_s1 = inlined_call_operand.hbm [shape: f32[9,4,128], index: 1, kind: input, shape index: {}]   ;;  %s20875_s2 = inlined_call_operand.vmem [shape: f32[1,128], index: 2, kind: input, shape index: {}]   ;;  %s20876_s3 = inlined_call_operand.vmem [shape: f32[128,1024], index: 3, kind: input, shape index: {}]   ;;  %s20877_s4 = inlined_call_operand.hbm [shape: f32[1,1024], index: 4, kind: input, shape index: {}]   ;;  %s20878_s5 = inlined_call_operand.hbm [shape: f32[1024,128], index: 5, kind: input, shape index: {}]   ;;  %s20879_s6 = inlined_call_operand.vmem [shape: f32[1,128], index: 6, kind: input, shape index: {}]   ;;  %s20880_s7 = inlined_call_operand.hbm [shape: f32[128,128], index: 7, kind: input, shape index: {}]   ;;  %s20881_s8 = inlined_call_operand.vmem [shape: f32[1,128], index: 8, kind: input, shape index: {}]   ;;  %s20882_s9 = inlined_call_operand.vmem [shape: f32[1024,128], index: 9, kind: input, shape index: {}]   ;;  %s20883_s10 = inlined_call_operand.hbm [shape: f32[128,128], index: 10, kind: input, shape index: {}]   ;;  %s20884_s11 = inlined_call_operand.hbm [shape: f32[1,128], index: 11, kind: input, shape index: {}]   ;;  %s20885_s12 = inlined_call_operand.hbm [shape: f32[128,128], index: 12, kind: input, shape index: {}]   ;;  %s20886_s13 = inlined_call_operand.vmem [shape: f32[1,128], index: 13, kind: input, shape index: {}]   ;;  %s20887_s14 = inlined_call_operand.hbm [shape: f32[128,128], index: 14, kind: input, shape index: {}]   ;;  %s20888_s15 = inlined_call_operand.vmem [shape: f32[1,128], index: 15, kind: input, shape index: {}]   ;;  %s20889_s16 = inlined_call_operand.vmem [shape: f32[2,8,128], index: 16, kind: output, shape index: {}]  }
   0x1   :  { %20925 = sst [smem:[#allocation49_spill]] %s20873_s0 }
   0x2   :  { %20926 = sst [smem:[#allocation50_spill]] %s20877_s4 }
   0x3   :  { %20927 = sst [smem:[#allocation51_spill]] %s20880_s7 }
   0x4   :  { %20928 = sst [smem:[#allocation52_spill]] %s20884_s11 }
   0x5   :  { %20929 = sst [smem:[#allocation53_spill]] %s20888_s15 }
   0x6   :  { %20930 = sst [smem:[#allocation54_spill]] %s20889_s16 }
   0x7   :  { %21 = vsyncpa [#allocation3], 0 }
   0x8   :  { %22 = vsyncpa [#allocation5], 0 }
   0x9   :  { %23 = vsyncpa [#allocation8], 0 }
   0xa   :  { %24 = vsyncpa [#allocation11], 0 }
   0xb   :  { %25 = vsyncpa [#allocation14], 0  ;;  %s18234_s21 = smov 0  }
   0xc LB: > { %20931 = sst [smem:[#allocation20_spill]] %s18132_s21  ;;  %s18134_s22 = smov [#allocation4]   ;;  %s18132_s21 = sphi %s18234_s21, %s31_s21  }
   0xd   : > { %s435_s23 = sshll.u32 %s18134_s22, 4  ;;  %s18240_s24 = sadd.s32 4294967295, %s18132_s21   ;;  %s18245_s23 = int_to_ptr.vmem [resolvable:$true] %s435_s23 }
   0xe   : > { %p14737_p0 = scmp.ge.s32.totalorder %s18132_s21, 1  ;;  %p403_p1 = scmp.lt.s32.totalorder %s18132_s21, 3 }
   0xf   : > { %p20891_p2 = scmp.eq.s32.totalorder %s18240_s24, 0  ;;  %s18135_s26 = smov [#allocation7]  }
  0x10   : > { %p18247_p3 = pnand %p14737_p0, %p403_p1  ;;  %s461_s27 = sshll.u32 %s18135_s26, 4  ;;  %s18253_s27 = int_to_ptr.vmem [resolvable:$true] %s461_s27 }
  0x11   : > { %s18136_s29 = smov [#allocation10]   ;;  %s18137_s0 = smov [#allocation2]  }
  0x12   : > { %s20932_s25 = scalar_select %p18247_p3, 1, 0 }
  0x13   : > { %p17794_p4 = pneg %p18247_p3  ;;  %s494_s30 = sshll.u32 %s18136_s29, 4  ;;  %s18261_s30 = int_to_ptr.vmem [resolvable:$true] %s494_s30 }
  0x14   : > { %s18263_s17 = sshll.u32 %s18137_s0, 4  ;;  %s20934_s4 = sld [smem:[#allocation50_spill]]  ;;  %s416_s17 = int_to_ptr.vmem [resolvable:$true] %s18263_s17 }
  0x15   : > { %p18257_p5 = pnand %p20891_p2, %p17794_p4 }
  0x17   : > { %p18273_p7 = pneg %p18257_p5 }
  0x1a   : > { %s17882_s20 = scalar_lea.hbm %s20934_s4, 128 }
  0x1b   : > { %p17883_p6 = scmp.ne.s32.totalorder %s20934_s4, %s17882_s20  ;;  %p17889_p10 = scmp.lt.u32.totalorder %s17882_s20, %s20934_s4 }
  0x1d   : > { %p17885_p8 = pnand %p18273_p7, %p17883_p6 }
  0x1f   : > { %p17886_p9 = pneg %p17885_p8 }
  0x21   : > { %p17891_p11 = pnand %p17889_p10, %p17886_p9 }
  0x23   : > { %17894 = shalt.err (!%p17891_p11)
}
  0x24   : > { %s17895_s18 = scalar_lea.vmem %s18245_s23, 128  ;;  %p17903_p1 = scmp.lt.s32.totalorder %s18245_s23, %s18245_s23 }
  0x25   : > { %p17896_p12 = scmp.ne.s32.totalorder %s18245_s23, %s17895_s18  ;;  %p17904_p4 = scmp.lt.s32.totalorder %s17895_s18, %s17895_s18 }
  0x27   : > { %p17898_p13 = pnand %p17896_p12, %p18273_p7  ;;  %p17905_p6 = por %p17904_p4, %p17903_p1 }
  0x29   : > { %p17899_p0 = pneg %p17898_p13 }
  0x2b   : > { %p17906_p8 = pnand %p17905_p6, %p17899_p0 }
  0x2d   : > { %17909 = shalt.err (!%p17906_p8)
}
  0x2e   : > { %17800 = dma.hbm_to_vmem [thread:$0]  (!%p18257_p5), %s20934_s4, 128, %s18245_s23, [#allocation5]  }
  0x2f   : > { %s20936_s7 = sld [smem:[#allocation51_spill]] }
  0x35   : > { %s17910_s29 = scalar_lea.hbm %s20936_s7, 2048 }
  0x36   : > { %p17911_p9 = scmp.ne.s32.totalorder %s20936_s7, %s17910_s29  ;;  %p17917_p12 = scmp.lt.u32.totalorder %s17910_s29, %s20936_s7 }
  0x38   : > { %p17913_p10 = pnand %p17911_p9, %p18273_p7 }
  0x3a   : > { %p17914_p11 = pneg %p17913_p10 }
  0x3c   : > { %p17919_p13 = pnand %p17917_p12, %p17914_p11 }
  0x3e   : > { %17922 = shalt.err (!%p17919_p13)
}
  0x3f   : > { %s17923_s23 = scalar_lea.vmem %s18253_s27, 2048  ;;  %p17931_p6 = scmp.lt.s32.totalorder %s18253_s27, %s18253_s27 }
  0x40   : > { %p17924_p0 = scmp.ne.s32.totalorder %s18253_s27, %s17923_s23  ;;  %p17932_p8 = scmp.lt.s32.totalorder %s17923_s23, %s17923_s23 }
  0x42   : > { %p17926_p1 = pnand %p17924_p0, %p18273_p7  ;;  %p17933_p9 = por %p17932_p8, %p17931_p6 }
  0x44   : > { %p17927_p4 = pneg %p17926_p1 }
  0x46   : > { %p17934_p10 = pnand %p17933_p9, %p17927_p4 }
  0x48   : > { %17937 = shalt.err (!%p17934_p10)
}
  0x49   : > { %s20893_s16 = smov 128   ;;  %s20895_s15 = smov 8  }
  0x4a   : > { %17806 = dma.hbm_to_vmem [thread:$0]  (!%p18257_p5), %s20936_s7, 2048, %s18253_s27, [#allocation8], %s20893_s16, %s20893_s16, %s20895_s15  }
  0x4b   : > { %s20937_s11 = sld [smem:[#allocation52_spill]] }
  0x51   : > { %s17938_s29 = scalar_lea.hbm %s20937_s11, 16 }
  0x52   : > { %p17939_p11 = scmp.ne.s32.totalorder %s20937_s11, %s17938_s29  ;;  %p17945_p0 = scmp.lt.u32.totalorder %s17938_s29, %s20937_s11 }
  0x54   : > { %p17941_p12 = pnand %p17939_p11, %p18273_p7 }
  0x56   : > { %p17942_p13 = pneg %p17941_p12 }
  0x58   : > { %p17947_p1 = pnand %p17945_p0, %p17942_p13 }
  0x5a   : > { %17950 = shalt.err (!%p17947_p1)
}
  0x5b   : > { %s17951_s27 = scalar_lea.vmem %s18261_s30, 16  ;;  %s17958_s19 = scalar_lea.vmem %s18261_s30, 32 }
  0x5c   : > { %p17952_p4 = scmp.ne.s32.totalorder %s18261_s30, %s17951_s27  ;;  %p17959_p9 = scmp.lt.s32.totalorder %s18261_s30, %s18261_s30 }
  0x5d   : > { %p17960_p10 = scmp.lt.s32.totalorder %s17958_s19, %s17951_s27 }
  0x5e   : > { %p17954_p6 = pnand %p17952_p4, %p18273_p7 }
  0x5f   : > { %p17961_p11 = por %p17960_p10, %p17959_p9 }
  0x60   : > { %p17955_p8 = pneg %p17954_p6 }
  0x62   : > { %p17962_p12 = pnand %p17961_p11, %p17955_p8 }
  0x64   : > { %17965 = shalt.err (!%p17962_p12)
}
  0x65   : > { %17812 = dma.hbm_to_vmem [thread:$0]  (!%p18257_p5), %s20937_s11, 16, %s18261_s30, [#allocation11]  }
  0x66   : > { %s17966_s29 = scalar_lea.hbm %s20874_s1, 576 }
  0x67   : > { %p17967_p13 = scmp.ne.s32.totalorder %s20874_s1, %s17966_s29  ;;  %p17973_p4 = scmp.lt.u32.totalorder %s17966_s29, %s20874_s1 }
  0x69   : > { %p17969_p0 = pnand %p17967_p13, %p18273_p7 }
  0x6b   : > { %p17970_p1 = pneg %p17969_p0 }
  0x6d   : > { %p17975_p6 = pnand %p17973_p4, %p17970_p1 }
  0x6f   : > { %17978 = shalt.err (!%p17975_p6)
}
  0x70   : > { %s17979_s19 = scalar_lea.vmem %s416_s17, 576  ;;  %p17987_p11 = scmp.lt.s32.totalorder %s416_s17, %s416_s17 }
  0x71   : > { %p17980_p8 = scmp.ne.s32.totalorder %s416_s17, %s17979_s19  ;;  %p17988_p12 = scmp.lt.s32.totalorder %s17979_s19, %s17979_s19 }
  0x73   : > { %p17982_p9 = pnand %p17980_p8, %p18273_p7  ;;  %p17989_p2 = por %p17988_p12, %p17987_p11 }
  0x75   : > { %p17983_p10 = pneg %p17982_p9 }
  0x77   : > { %p17990_p3 = pnand %p17989_p2, %p17983_p10 }
  0x79   : > { %17993 = shalt.err (!%p17990_p3)
}
  0x7a   : > { %s18140_s30 = smov 64   ;;  %s18141_s4 = smov 4  }
  0x7b   : > { %17797 = dma.hbm_to_vmem [thread:$0]  (!%p18257_p5), %s20874_s1, 576, %s416_s17, [#allocation3], %s18140_s30, %s18140_s30, %s18141_s4  }
  0x7c   : > { %s18142_s26 = smov [#allocation6]   ;;  %s18143_s0 = smov [#allocation9]  }
  0x7d   : > { %s445_s29 = sshll.u32 %s18142_s26, 4  ;;  %s480_s18 = sshll.u32 %s18143_s0, 4  ;;  %s446_s29 = int_to_ptr.vmem [resolvable:$true] %s445_s29  ;;  %s481_s18 = int_to_ptr.vmem [resolvable:$true] %s480_s18 }
  0x7e   : > { %s17994_s19 = scalar_lea.hbm %s20878_s5, 16384 }
  0x7f   : > { %p17995_p2 = scmp.ne.s32.totalorder %s20878_s5, %s17994_s19  ;;  %p18001_p0 = scmp.lt.u32.totalorder %s17994_s19, %s20878_s5 }
  0x81   : > { %p17997_p3 = pnand %p17995_p2, %p18273_p7 }
  0x83   : > { %p17998_p13 = pneg %p17997_p3 }
  0x85   : > { %p18003_p1 = pnand %p18001_p0, %p17998_p13 }
  0x87   : > { %18006 = shalt.err (!%p18003_p1)
}
  0x88   : > { %s18007_s17 = scalar_lea.vmem %s446_s29, 16384  ;;  %p18015_p9 = scmp.lt.s32.totalorder %s446_s29, %s446_s29 }
  0x89   : > { %p18008_p4 = scmp.ne.s32.totalorder %s446_s29, %s18007_s17  ;;  %p18016_p10 = scmp.lt.s32.totalorder %s18007_s17, %s18007_s17 }
  0x8b   : > { %p18010_p6 = pnand %p18008_p4, %p18273_p7  ;;  %p18017_p11 = por %p18016_p10, %p18015_p9 }
  0x8d   : > { %p18011_p8 = pneg %p18010_p6 }
  0x8f   : > { %p18018_p12 = pnand %p18017_p11, %p18011_p8 }
  0x91   : > { %18021 = shalt.err (!%p18018_p12)
}
  0x92   : > { %s20938_s16 = smov 8   ;;  %s20939_s15 = smov 128  }
  0x93   : > { %17803 = dma.hbm_to_vmem [thread:$0]  (!%p18257_p5), %s20878_s5, 16384, %s446_s29, [#allocation5], %s20939_s15, %s20939_s15, %s20938_s16  }
  0x94   : > { %s18022_s20 = scalar_lea.hbm %s20883_s10, 2048 }
  0x95   : > { %p18023_p2 = scmp.ne.s32.totalorder %s20883_s10, %s18022_s20  ;;  %p18029_p0 = scmp.lt.u32.totalorder %s18022_s20, %s20883_s10 }
  0x97   : > { %p18025_p3 = pnand %p18023_p2, %p18273_p7 }
  0x99   : > { %p18026_p13 = pneg %p18025_p3 }
  0x9b   : > { %p18031_p1 = pnand %p18029_p0, %p18026_p13 }
  0x9d   : > { %18034 = shalt.err (!%p18031_p1)
}
  0x9e   : > { %s18035_s27 = scalar_lea.vmem %s481_s18, 2048  ;;  %p18043_p9 = scmp.lt.s32.totalorder %s481_s18, %s481_s18 }
  0x9f   : > { %p18036_p4 = scmp.ne.s32.totalorder %s481_s18, %s18035_s27  ;;  %p18044_p10 = scmp.lt.s32.totalorder %s18035_s27, %s18035_s27 }
  0xa1   : > { %p18038_p6 = pnand %p18036_p4, %p18273_p7  ;;  %p18045_p11 = por %p18044_p10, %p18043_p9 }
  0xa3   : > { %p18039_p8 = pneg %p18038_p6 }
  0xa5   : > { %p18046_p12 = pnand %p18045_p11, %p18039_p8 }
  0xa7   : > { %18049 = shalt.err (!%p18046_p12)
}
  0xa8   : > { %17809 = dma.hbm_to_vmem [thread:$0]  (!%p18257_p5), %s20883_s10, 2048, %s481_s18, [#allocation8], %s20939_s15, %s20939_s15, %s20938_s16  }
  0xa9   : > { %s18144_s17 = smov [#allocation12]   ;;  %s18145_s11 = smov [#allocation13]  }
  0xaa   : > { %s504_s7 = sshll.u32 %s18144_s17, 4  ;;  %s520_s30 = sshll.u32 %s18145_s11, 4  ;;  %s505_s7 = int_to_ptr.vmem [resolvable:$true] %s504_s7  ;;  %s521_s30 = int_to_ptr.vmem [resolvable:$true] %s520_s30 }
  0xab   : > { %s18050_s22 = scalar_lea.hbm %s20885_s12, 2048 }
  0xac   : > { %p18051_p2 = scmp.ne.s32.totalorder %s20885_s12, %s18050_s22  ;;  %p18057_p0 = scmp.lt.u32.totalorder %s18050_s22, %s20885_s12 }
  0xae   : > { %p18053_p3 = pnand %p18051_p2, %p18273_p7 }
  0xb0   : > { %p18054_p13 = pneg %p18053_p3 }
  0xb2   : > { %p18059_p1 = pnand %p18057_p0, %p18054_p13 }
  0xb4   : > { %18062 = shalt.err (!%p18059_p1)
}
  0xb5   : > { %s18063_s18 = scalar_lea.vmem %s505_s7, 2048  ;;  %p18071_p9 = scmp.lt.s32.totalorder %s505_s7, %s505_s7 }
  0xb6   : > { %p18064_p4 = scmp.ne.s32.totalorder %s505_s7, %s18063_s18  ;;  %p18072_p10 = scmp.lt.s32.totalorder %s18063_s18, %s18063_s18 }
  0xb8   : > { %p18066_p6 = pnand %p18064_p4, %p18273_p7  ;;  %p18073_p11 = por %p18072_p10, %p18071_p9 }
  0xba   : > { %p18067_p8 = pneg %p18066_p6 }
  0xbc   : > { %p18074_p12 = pnand %p18073_p11, %p18067_p8 }
  0xbe   : > { %18077 = shalt.err (!%p18074_p12)
}
  0xbf   : > { %17815 = dma.hbm_to_vmem [thread:$0]  (!%p18257_p5), %s20885_s12, 2048, %s505_s7, [#allocation11], %s20939_s15, %s20939_s15, %s20938_s16  }
  0xc0   : > { %s18078_s4 = scalar_lea.hbm %s20887_s14, 2048 }
  0xc1   : > { %p18079_p2 = scmp.ne.s32.totalorder %s20887_s14, %s18078_s4  ;;  %p18085_p0 = scmp.lt.u32.totalorder %s18078_s4, %s20887_s14 }
  0xc3   : > { %p18081_p3 = pnand %p18079_p2, %p18273_p7 }
  0xc5   : > { %p18082_p13 = pneg %p18081_p3 }
  0xc7   : > { %p18087_p1 = pnand %p18085_p0, %p18082_p13 }
  0xc9   : > { %18090 = shalt.err (!%p18087_p1)
}
  0xca   : > { %s18091_s23 = scalar_lea.vmem %s521_s30, 2048  ;;  %p18099_p9 = scmp.lt.s32.totalorder %s521_s30, %s521_s30 }
  0xcb   : > { %p18092_p4 = scmp.ne.s32.totalorder %s521_s30, %s18091_s23  ;;  %p18100_p10 = scmp.lt.s32.totalorder %s18091_s23, %s18091_s23 }
  0xcd   : > { %p18094_p6 = pnand %p18092_p4, %p18273_p7  ;;  %p18101_p11 = por %p18100_p10, %p18099_p9 }
  0xcf   : > { %p18095_p8 = pneg %p18094_p6 }
  0xd1   : > { %p18102_p12 = pnand %p18101_p11, %p18095_p8 }
  0xd3   : > { %18105 = shalt.err (!%p18102_p12)
}
  0xd4   : > { %17818 = dma.hbm_to_vmem [thread:$0]  (!%p18257_p5), %s20887_s14, 2048, %s521_s30, [#allocation14], %s20939_s15, %s20939_s15, %s20938_s16  }
  0xd5   : > { %p20940_p2 = scmp.ne.s32.totalorder %s20932_s25, 0 }
  0xd7   : > { %547 = sbr.rel (%p20940_p2) target bundleno = 2207 (0x89f), region = 84 }
  0xde   : > { %p20941_p7 = scmp.eq.s32.totalorder %s18240_s24, 0 }
  0xe0   : > { %18111 = dma.done.wait (%p20941_p7), [#allocation3], 576   ;;  %p20942_p3 = pmov %p20941_p7 }
  0xe2   : > { %18113 = vsyncadd (%p20942_p3), [#allocation3], 4294966720  ;;  %p20943_p13 = pmov %p20942_p3 }
  0xe3   : > { %p20944_p0 = pmov %p20942_p3 }
  0xe4   : > { %18115 = dma.done.wait (%p20943_p13), [#allocation5], 16512  }
  0xe5   : > { %18117 = vsyncadd (%p20944_p0), [#allocation5], 4294950784  ;;  %p20945_p1 = pmov %p20944_p0 }
  0xe6   : > { %p20946_p5 = pmov %p20944_p0 }
  0xe7   : > { %18119 = dma.done.wait (%p20945_p1), [#allocation8], 4096  }
  0xe8   : > { %18121 = vsyncadd (%p20946_p5), [#allocation8], 4294963200  ;;  %p20947_p4 = pmov %p20944_p0 }
  0xe9   : > { %p20948_p6 = pmov %p20944_p0 }
  0xea   : > { %18123 = dma.done.wait (%p20947_p4), [#allocation11], 2064  }
  0xeb   : > { %18125 = vsyncadd (%p20948_p6), [#allocation11], 4294965232  ;;  %p20949_p8 = pmov %p20944_p0 }
  0xec   : > { %p20950_p9 = pmov %p20944_p0 }
  0xed   : > { %18127 = dma.done.wait (%p20949_p8), [#allocation14], 2048  }
  0xee   : > { %18129 = vsyncadd (%p20950_p9), [#allocation14], 4294965248  ;;  %p624_p10 = scmp.lt.s32.totalorder %s18240_s24, 1  ;;  %vm707_vm0 = vcmask 1043456   ;;  %s20951_s16 = sld [smem:[#allocation49_spill]]  ;;  %vm700_vm1 = vcmask 31744  }
  0xef   : > { %v18479_v0 = vld [vmem:[#allocation2 + $0x4] sm:$0xf]  ;;  %v18691_v33 = vld [vmem:[#allocation2] sm:$0xf]  ;;  %vm18148_vm2 = vmmov 0   ;;  %s21008_s26 = sld [smem:[#allocation53_spill]] }
  0xf0   : > { %s21012_s24 = smov (!%p624_p10, %s18240_s24), 1  ;;  %16165 = vmatprep.subr.msk.mxu0 %vm707_vm0, %v18479_v0  ;;  %16170 = vmatprep.subr.msk.mxu1 %vm707_vm0, %v18479_v0  ;;  %s21009_s27 = sld [smem:[#allocation54_spill]] }
  0xf1   : > { %s17761_s21 = smul.u32 432, %s21012_s24  ;;  %16166 = vmatpush3.msk.msra.mxu0 %vm707_vm0, %v18479_v0  ;;  %16171 = vmatpush3.msk.msra.mxu1 %vm707_vm0, %v18479_v0  ;;  %s14757_s0 = sshll.u32 %s21012_s24, 3 }
  0xf2   : > { %16175 = vmatprep.subr.msk.mxu0 %vm707_vm0, %v18479_v0  ;;  %16180 = vmatprep.subr.msk.mxu1 %vm707_vm0, %v18479_v0 }
  0xf4   : > { %s18477_s15 = scalar_lea.vmem %s20951_s16, %s17761_s21 }
  0xf5   : > { %v666_v1 = vld [vmem:[%s18477_s15 + $0x1] sm:$0xff]  ;;  %v18483_v2 = vld [vmem:[%s18477_s15 + $0x19] sm:$0xff]  ;;  %v667_v3 = vld [vmem:[%s18477_s15 + $0x9] sm:$0xff] }
  0xf6   : > { %v18491_v4 = vld [vmem:[%s18477_s15 + $0x21] sm:$0xff]  ;;  %16167 = vmatprep.mubr.msk.f32.mxu0 %vm700_vm1, %v666_v1  ;;  %16172 = vmatprep.mubr.msk.f32.mxu1 %vm700_vm1, %v18483_v2  ;;  %v18501_v5 = vld [vmem:[%s18477_s15 + $0x31] sm:$0xff]  ;;  %v18507_v6 = vld [vmem:[%s18477_s15 + $0x49] sm:$0xff]  ;;  %s632_s21 = scalar_lea.vmem %s21009_s27, %s14757_s0 }
  0xf7   : > { %16168 = vmatmul.mubr.msk.f32.vlgmr.msra.gmra.mrb[0].mxu0 %vm700_vm1, %v667_v3  ;;  %16173 = vmatmul.mubr.msk.f32.vlgmr.msra.gmra.mrb[0].mxu1 %vm700_vm1, %v18491_v4  ;;  %v18514_v7 = vld [vmem:[%s18477_s15 + $0x39] sm:$0xff]  ;;  %v18517_v8 = vld [vmem:[%s18477_s15 + $0x51] sm:$0xff]  ;;  %v18528_v9 = vld [vmem:[%s18477_s15 + $0x61] sm:$0xff] }
  0xf8   : > { %16176 = vmatpush3.msk.msra.mxu0 %vm707_vm0, %v18479_v0  ;;  %16177 = vmatprep.mubr.msk.f32.mxu0 %vm700_vm1, %v18501_v5  ;;  %v18535_v10 = vld [vmem:[%s18477_s15 + $0x79] sm:$0xff]  ;;  %v18542_v11 = vld [vmem:[%s18477_s15 + $0x69] sm:$0xff]  ;;  %v18545_v12 = vld [vmem:[%s18477_s15 + $0x81] sm:$0xff] }
  0xf9   : > { %16181 = vmatpush3.msk.msra.mxu1 %vm707_vm0, %v18479_v0  ;;  %16182 = vmatprep.mubr.msk.f32.mxu1 %vm700_vm1, %v18507_v6  ;;  %v18556_v13 = vld [vmem:[%s18477_s15 + $0x91] sm:$0xff]  ;;  %v18563_v14 = vld [vmem:[%s18477_s15 + $0xa9] sm:$0xff]  ;;  %v18570_v15 = vld [vmem:[%s18477_s15 + $0x99] sm:$0xff] }
  0xfa   : > { %16185 = vmatprep.subr.msk.mxu0 %vm707_vm0, %v18479_v0  ;;  %16190 = vmatprep.subr.msk.mxu1 %vm707_vm0, %v18479_v0  ;;  %v18573_v16 = vld [vmem:[%s18477_s15 + $0xb1] sm:$0xff]  ;;  %v18584_v17 = vld [vmem:[%s18477_s15 + $0xc1] sm:$0xff]  ;;  %v18591_v18 = vld [vmem:[%s18477_s15 + $0xd9] sm:$0xff] }
  0xfb   : > { %16178 = vmatmul.mubr.msk.f32.vlgmr.msra.gmra.mrb[2].mxu0 %vm700_vm1, %v18514_v7  ;;  %16183 = vmatmul.mubr.msk.f32.vlgmr.msra.gmra.mrb[2].mxu1 %vm700_vm1, %v18517_v8  ;;  %v18598_v19 = vld [vmem:[%s18477_s15 + $0xc9] sm:$0xff]  ;;  %v18601_v20 = vld [vmem:[%s18477_s15 + $0xe1] sm:$0xff]  ;;  %v18612_v21 = vld [vmem:[%s18477_s15 + $0xf1] sm:$0xff] }
  0xfc   : > { %16186 = vmatpush3.msk.msra.mxu0 %vm707_vm0, %v18479_v0  ;;  %16187 = vmatprep.mubr.msk.f32.mxu0 %vm700_vm1, %v18528_v9  ;;  %v18619_v22 = vld [vmem:[%s18477_s15 + $0x109] sm:$0xff]  ;;  %v18626_v23 = vld [vmem:[%s18477_s15 + $0xf9] sm:$0xff]  ;;  %v18629_v24 = vld [vmem:[%s18477_s15 + $0x111] sm:$0xff] }
  0xfd   : > { %16191 = vmatpush3.msk.msra.mxu1 %vm707_vm0, %v18479_v0  ;;  %16192 = vmatprep.mubr.msk.f32.mxu1 %vm700_vm1, %v18535_v10  ;;  %v18640_v25 = vld [vmem:[%s18477_s15 + $0x121] sm:$0xff]  ;;  %v18647_v26 = vld [vmem:[%s18477_s15 + $0x139] sm:$0xff]  ;;  %v18654_v27 = vld [vmem:[%s18477_s15 + $0x129] sm:$0xff] }
  0xfe   : > { %16195 = vmatprep.subr.msk.mxu0 %vm707_vm0, %v18479_v0  ;;  %16200 = vmatprep.subr.msk.mxu1 %vm707_vm0, %v18479_v0  ;;  %v18657_v28 = vld [vmem:[%s18477_s15 + $0x141] sm:$0xff]  ;;  %v18668_v29 = vld [vmem:[%s18477_s15 + $0x151] sm:$0xff]  ;;  %v18675_v30 = vld [vmem:[%s18477_s15 + $0x169] sm:$0xff] }
  0xff   : > { %16188 = vmatmul.mubr.msk.f32.vlgmr.msra.gmra.mrb[4].mxu0 %vm700_vm1, %v18542_v11  ;;  %16193 = vmatmul.mubr.msk.f32.vlgmr.msra.gmra.mrb[4].mxu1 %vm700_vm1, %v18545_v12  ;;  %20952 = vst [vmem:[#allocation21_spill] sm:$0xff] %v18657_v28  ;;  %20953 = vst [vmem:[#allocation22_spill] sm:$0xff] %v18675_v30  ;;  %v18682_v31 = vld [vmem:[%s18477_s15 + $0x159] sm:$0xff]  ;;  %v18685_v32 = vld [vmem:[%s18477_s15 + $0x171] sm:$0xff] }
 0x100   : > { %16196 = vmatpush3.msk.msra.mxu0 %vm707_vm0, %v18479_v0  ;;  %16197 = vmatprep.mubr.msk.f32.mxu0 %vm700_vm1, %v18556_v13  ;;  %20954 = vst [vmem:[#allocation23_spill] sm:$0xff] %v18682_v31  ;;  %20955 = vst [vmem:[#allocation24_spill] sm:$0xff] %v18685_v32  ;;  %v633_v34 = vld [vmem:[%s18477_s15] sm:$0xff]  ;;  %v18703_v35 = vld [vmem:[%s18477_s15 + $0x18] sm:$0xff] }
 0x101   : > { %16201 = vmatpush3.msk.msra.mxu1 %vm707_vm0, %v18479_v0  ;;  %16202 = vmatprep.mubr.msk.f32.mxu1 %vm700_vm1, %v18563_v14  ;;  %v634_v36 = vld [vmem:[%s18477_s15 + $0x8] sm:$0xff]  ;;  %v18711_v37 = vld [vmem:[%s18477_s15 + $0x20] sm:$0xff]  ;;  %v18721_v38 = vld [vmem:[%s18477_s15 + $0x30] sm:$0xff] }
 0x102   : > { %16205 = vmatprep.subr.msk.mxu0 %vm707_vm0, %v18479_v0  ;;  %16210 = vmatprep.subr.msk.mxu1 %vm707_vm0, %v18479_v0  ;;  %v18727_v39 = vld [vmem:[%s18477_s15 + $0x48] sm:$0xff]  ;;  %v18734_v40 = vld [vmem:[%s18477_s15 + $0x38] sm:$0xff]  ;;  %v18737_v41 = vld [vmem:[%s18477_s15 + $0x50] sm:$0xff] }
 0x103   : > { %16198 = vmatmul.mubr.msk.f32.vlgmr.msra.gmra.mrb[6].mxu0 %vm700_vm1, %v18570_v15  ;;  %16203 = vmatmul.mubr.msk.f32.vlgmr.msra.gmra.mrb[6].mxu1 %vm700_vm1, %v18573_v16  ;;  %v18748_v42 = vld [vmem:[%s18477_s15 + $0x60] sm:$0xff]  ;;  %v18755_v43 = vld [vmem:[%s18477_s15 + $0x78] sm:$0xff]  ;;  %v18762_v44 = vld [vmem:[%s18477_s15 + $0x68] sm:$0xff] }
 0x104   : > { %16206 = vmatpush3.msk.msra.mxu0 %vm707_vm0, %v18479_v0  ;;  %16207 = vmatprep.mubr.msk.f32.mxu0 %vm700_vm1, %v18584_v17  ;;  %v18765_v45 = vld [vmem:[%s18477_s15 + $0x80] sm:$0xff]  ;;  %v18776_v46 = vld [vmem:[%s18477_s15 + $0x90] sm:$0xff]  ;;  %v18783_v47 = vld [vmem:[%s18477_s15 + $0xa8] sm:$0xff] }
 0x105   : > { %16211 = vmatpush3.msk.msra.mxu1 %vm707_vm0, %v18479_v0  ;;  %16212 = vmatprep.mubr.msk.f32.mxu1 %vm700_vm1, %v18591_v18  ;;  %v18790_v48 = vld [vmem:[%s18477_s15 + $0x98] sm:$0xff]  ;;  %v18793_v49 = vld [vmem:[%s18477_s15 + $0xb0] sm:$0xff]  ;;  %v18804_v50 = vld [vmem:[%s18477_s15 + $0xc0] sm:$0xff] }
 0x106   : > { %16215 = vmatprep.subr.msk.mxu0 %vm707_vm0, %v18479_v0  ;;  %16220 = vmatprep.subr.msk.mxu1 %vm707_vm0, %v18479_v0  ;;  %v18811_v51 = vld [vmem:[%s18477_s15 + $0xd8] sm:$0xff]  ;;  %v18818_v52 = vld [vmem:[%s18477_s15 + $0xc8] sm:$0xff]  ;;  %v18821_v53 = vld [vmem:[%s18477_s15 + $0xe0] sm:$0xff] }
 0x107   : > { %16208 = vmatmul.mubr.msk.f32.vlgmr.msra.gmra.mrb[8].mxu0 %vm700_vm1, %v18598_v19  ;;  %16213 = vmatmul.mubr.msk.f32.vlgmr.msra.gmra.mrb[8].mxu1 %vm700_vm1, %v18601_v20  ;;  %v18832_v54 = vld [vmem:[%s18477_s15 + $0xf0] sm:$0xff]  ;;  %v18839_v55 = vld [vmem:[%s18477_s15 + $0x108] sm:$0xff]  ;;  %v18846_v56 = vld [vmem:[%s18477_s15 + $0xf8] sm:$0xff] }
 0x108   : > { %16216 = vmatpush3.msk.msra.mxu0 %vm707_vm0, %v18479_v0  ;;  %16217 = vmatprep.mubr.msk.f32.mxu0 %vm700_vm1, %v18612_v21  ;;  %v18849_v57 = vld [vmem:[%s18477_s15 + $0x110] sm:$0xff]  ;;  %v18860_v58 = vld [vmem:[%s18477_s15 + $0x120] sm:$0xff]  ;;  %v18867_v59 = vld [vmem:[%s18477_s15 + $0x138] sm:$0xff] }
 0x109   : > { %16221 = vmatpush3.msk.msra.mxu1 %vm707_vm0, %v18479_v0  ;;  %16222 = vmatprep.mubr.msk.f32.mxu1 %vm700_vm1, %v18619_v22  ;;  %v18874_v60 = vld [vmem:[%s18477_s15 + $0x128] sm:$0xff]  ;;  %v18877_v61 = vld [vmem:[%s18477_s15 + $0x140] sm:$0xff]  ;;  %v18888_v62 = vld [vmem:[%s18477_s15 + $0x150] sm:$0xff] }
 0x10a   : > { %16225 = vmatprep.subr.msk.mxu0 %vm707_vm0, %v18479_v0  ;;  %16230 = vmatprep.subr.msk.mxu1 %vm707_vm0, %v18479_v0  ;;  %v18895_v63 = vld [vmem:[%s18477_s15 + $0x168] sm:$0xff]  ;;  %v18905_v1 = vld [vmem:[%s18477_s15 + $0x170] sm:$0xff] }
 0x10b   : > { %16218 = vmatmul.mubr.msk.f32.vlgmr.msra.gmra.mrb[10].mxu0 %vm700_vm1, %v18626_v23  ;;  %16223 = vmatmul.mubr.msk.f32.vlgmr.msra.gmra.mrb[10].mxu1 %vm700_vm1, %v18629_v24  ;;  %v18911_v3 = vld [vmem:[#allocation2 + $0x8] sm:$0xf] }
 0x10c   : > { %16226 = vmatpush3.msk.msra.mxu0 %vm707_vm0, %v18479_v0  ;;  %16227 = vmatprep.mubr.msk.f32.mxu0 %vm700_vm1, %v18640_v25 }
 0x10d   : > { %16231 = vmatpush3.msk.msra.mxu1 %vm707_vm0, %v18479_v0  ;;  %16232 = vmatprep.mubr.msk.f32.mxu1 %vm700_vm1, %v18647_v26 }
 0x10e   : > { %16235 = vmatprep.subr.msk.mxu0 %vm707_vm0, %v18479_v0  ;;  %16240 = vmatprep.subr.msk.mxu1 %vm707_vm0, %v18479_v0 }
 0x10f   : > { %16228 = vmatmul.mubr.msk.f32.vlgmr.msra.gmra.mrb[12].mxu0 %vm700_vm1, %v18654_v27  ;;  %16233 = vmatmul.mubr.msk.f32.vlgmr.msra.gmra.mrb[12].mxu1 %vm700_vm1, %v18657_v28  ;;  %v19125_v28 = vld [vmem:[%s18477_s15 + $0x172] sm:$0xff] }
 0x110   : > { %16236 = vmatpush3.msk.msra.mxu0 %vm707_vm0, %v18479_v0  ;;  %16237 = vmatprep.mubr.msk.f32.mxu0 %vm700_vm1, %v18668_v29 }
 0x111   : > { %16241 = vmatpush3.msk.msra.mxu1 %vm707_vm0, %v18479_v0  ;;  %16242 = vmatprep.mubr.msk.f32.mxu1 %vm700_vm1, %v18675_v30  ;;  %v18902_v0 = vld [vmem:[%s18477_s15 + $0x158] sm:$0xff] }
 0x112   : > { %16245 = vmatprep.subr.msk.mxu0 %vm707_vm0, %v18691_v33  ;;  %16250 = vmatprep.subr.msk.mxu1 %vm707_vm0, %v18691_v33  ;;  %v18941_v30 = vld [vmem:[%s18477_s15 + $0x32] sm:$0xff] }
 0x113   : > { %16238 = vmatmul.mubr.msk.f32.vlgmr.msra.gmra.mrb[14].mxu0 %vm700_vm1, %v18682_v31  ;;  %16243 = vmatmul.mubr.msk.f32.vlgmr.msra.gmra.mrb[14].mxu1 %vm700_vm1, %v18685_v32  ;;  %v18931_v32 = vld [vmem:[%s18477_s15 + $0x22] sm:$0xff]  ;;  %20958 = vst [vmem:[#allocation27_spill] sm:$0xff] %v18941_v30  ;;  %v18947_v31 = vld [vmem:[%s18477_s15 + $0x4a] sm:$0xff] }
 0x114   : > { %16246 = vmatpush3.msk.msra.mxu0 %vm707_vm0, %v18691_v33  ;;  %16247 = vmatprep.mubr.msk.f32.mxu0 %vm700_vm1, %v633_v34  ;;  %v3300_v34 = vld [vmem:[%s18477_s15 + $0x2] sm:$0xff]  ;;  %20957 = vst [vmem:[#allocation26_spill] sm:$0xff] %v18931_v32  ;;  %20959 = vst [vmem:[#allocation28_spill] sm:$0xff] %v18947_v31 }
 0x115   : > { %16251 = vmatpush3.msk.msra.mxu1 %vm707_vm0, %v18691_v33  ;;  %16252 = vmatprep.mubr.msk.f32.mxu1 %vm700_vm1, %v18703_v35 }
 0x116   : > { %16255 = vmatprep.subr.msk.mxu0 %vm707_vm0, %v18691_v33  ;;  %16260 = vmatprep.subr.msk.mxu1 %vm707_vm0, %v18691_v33 }
 0x117   : > { %16248 = vmatmul.mubr.msk.f32.vlgmr.msra.gmra.mrb[0].mxu0 %vm700_vm1, %v634_v36  ;;  %16253 = vmatmul.mubr.msk.f32.vlgmr.msra.gmra.mrb[0].mxu1 %vm700_vm1, %v18711_v37  ;;  %v18923_v36 = vld [vmem:[%s18477_s15 + $0x1a] sm:$0xff] }
 0x118   : > { %16256 = vmatpush3.msk.msra.mxu0 %vm707_vm0, %v18691_v33  ;;  %16257 = vmatprep.mubr.msk.f32.mxu0 %vm700_vm1, %v18721_v38  ;;  %20956 = vst [vmem:[#allocation25_spill] sm:$0xff] %v18923_v36 }
 0x119   : > { %16261 = vmatpush3.msk.msra.mxu1 %vm707_vm0, %v18691_v33  ;;  %16262 = vmatprep.mubr.msk.f32.mxu1 %vm700_vm1, %v18727_v39 }
 0x11a   : > { %16265 = vmatprep.subr.msk.mxu0 %vm707_vm0, %v18691_v33  ;;  %16270 = vmatprep.subr.msk.mxu1 %vm707_vm0, %v18691_v33 }
 0x11b   : > { %16258 = vmatmul.mubr.msk.f32.vlgmr.msra.gmra.mrb[2].mxu0 %vm700_vm1, %v18734_v40  ;;  %16263 = vmatmul.mubr.msk.f32.vlgmr.msra.gmra.mrb[2].mxu1 %vm700_vm1, %v18737_v41 }
 0x11c   : > { %16266 = vmatpush3.msk.msra.mxu0 %vm707_vm0, %v18691_v33  ;;  %16267 = vmatprep.mubr.msk.f32.mxu0 %vm700_vm1, %v18748_v42 }
 0x11d   : > { %16271 = vmatpush3.msk.msra.mxu1 %vm707_vm0, %v18691_v33  ;;  %16272 = vmatprep.mubr.msk.f32.mxu1 %vm700_vm1, %v18755_v43 }
 0x11e   : > { %16275 = vmatprep.subr.msk.mxu0 %vm707_vm0, %v18691_v33  ;;  %16280 = vmatprep.subr.msk.mxu1 %vm707_vm0, %v18691_v33 }
 0x11f   : > { %16268 = vmatmul.mubr.msk.f32.vlgmr.msra.gmra.mrb[4].mxu0 %vm700_vm1, %v18762_v44  ;;  %16273 = vmatmul.mubr.msk.f32.vlgmr.msra.gmra.mrb[4].mxu1 %vm700_vm1, %v18765_v45 }
 0x120   : > { %16276 = vmatpush3.msk.msra.mxu0 %vm707_vm0, %v18691_v33  ;;  %16277 = vmatprep.mubr.msk.f32.mxu0 %vm700_vm1, %v18776_v46 }
 0x121   : > { %16281 = vmatpush3.msk.msra.mxu1 %vm707_vm0, %v18691_v33  ;;  %16282 = vmatprep.mubr.msk.f32.mxu1 %vm700_vm1, %v18783_v47 }
 0x122   : > { %16285 = vmatprep.subr.msk.mxu0 %vm707_vm0, %v18691_v33  ;;  %16290 = vmatprep.subr.msk.mxu1 %vm707_vm0, %v18691_v33 }
 0x123   : > { %16278 = vmatmul.mubr.msk.f32.vlgmr.msra.gmra.mrb[6].mxu0 %vm700_vm1, %v18790_v48  ;;  %16283 = vmatmul.mubr.msk.f32.vlgmr.msra.gmra.mrb[6].mxu1 %vm700_vm1, %v18793_v49 }
 0x124   : > { %16286 = vmatpush3.msk.msra.mxu0 %vm707_vm0, %v18691_v33  ;;  %16287 = vmatprep.mubr.msk.f32.mxu0 %vm700_vm1, %v18804_v50 }
 0x125   : > { %16291 = vmatpush3.msk.msra.mxu1 %vm707_vm0, %v18691_v33  ;;  %16292 = vmatprep.mubr.msk.f32.mxu1 %vm700_vm1, %v18811_v51 }
 0x126   : > { %16295 = vmatprep.subr.msk.mxu0 %vm707_vm0, %v18691_v33  ;;  %16300 = vmatprep.subr.msk.mxu1 %vm707_vm0, %v18691_v33 }
 0x127   : > { %16288 = vmatmul.mubr.msk.f32.vlgmr.msra.gmra.mrb[8].mxu0 %vm700_vm1, %v18818_v52  ;;  %16293 = vmatmul.mubr.msk.f32.vlgmr.msra.gmra.mrb[8].mxu1 %vm700_vm1, %v18821_v53 }
 0x128   : > { %16296 = vmatpush3.msk.msra.mxu0 %vm707_vm0, %v18691_v33  ;;  %16297 = vmatprep.mubr.msk.f32.mxu0 %vm700_vm1, %v18832_v54 }
 0x129   : > { %16301 = vmatpush3.msk.msra.mxu1 %vm707_vm0, %v18691_v33  ;;  %16302 = vmatprep.mubr.msk.f32.mxu1 %vm700_vm1, %v18839_v55 }
 0x12a   : > { %16305 = vmatprep.subr.msk.mxu0 %vm707_vm0, %v18691_v33  ;;  %16310 = vmatprep.subr.msk.mxu1 %vm707_vm0, %v18691_v33 }
 0x12b   : > { %16298 = vmatmul.mubr.msk.f32.vlgmr.msra.gmra.mrb[10].mxu0 %vm700_vm1, %v18846_v56  ;;  %16303 = vmatmul.mubr.msk.f32.vlgmr.msra.gmra.mrb[10].mxu1 %vm700_vm1, %v18849_v57 }
 0x12c   : > { %16306 = vmatpush3.msk.msra.mxu0 %vm707_vm0, %v18691_v33  ;;  %16307 = vmatprep.mubr.msk.f32.mxu0 %vm700_vm1, %v18860_v58 }
 0x12d   : > { %16311 = vmatpush3.msk.msra.mxu1 %vm707_vm0, %v18691_v33  ;;  %16312 = vmatprep.mubr.msk.f32.mxu1 %vm700_vm1, %v18867_v59 }
 0x12e   : > { %16315 = vmatprep.subr.msk.mxu0 %vm707_vm0, %v18691_v33  ;;  %16320 = vmatprep.subr.msk.mxu1 %vm707_vm0, %v18691_v33 }
 0x12f   : > { %16308 = vmatmul.mubr.msk.f32.vlgmr.msra.gmra.mrb[12].mxu0 %vm700_vm1, %v18874_v60  ;;  %16313 = vmatmul.mubr.msk.f32.vlgmr.msra.gmra.mrb[12].mxu1 %vm700_vm1, %v18877_v61 }
 0x130   : > { %16316 = vmatpush3.msk.msra.mxu0 %vm707_vm0, %v18691_v33  ;;  %16317 = vmatprep.mubr.msk.f32.mxu0 %vm700_vm1, %v18888_v62 }
 0x131   : > { %16321 = vmatpush3.msk.msra.mxu1 %vm707_vm0, %v18691_v33  ;;  %16322 = vmatprep.mubr.msk.f32.mxu1 %vm700_vm1, %v18895_v63  ;;  %v3301_v33 = vld [vmem:[%s18477_s15 + $0xa] sm:$0xff] }
 0x132   : > { %16325 = vmatprep.subr.msk.mxu0 %vm707_vm0, %v18911_v3  ;;  %16330 = vmatprep.subr.msk.mxu1 %vm707_vm0, %v18911_v3 }
 0x133   : > { %16318 = vmatmul.mubr.msk.f32.vlgmr.msra.gmra.mrb[14].mxu0 %vm700_vm1, %v18902_v0  ;;  %16323 = vmatmul.mubr.msk.f32.vlgmr.msra.gmra.mrb[14].mxu1 %vm700_vm1, %v18905_v1 }
 0x134   : > { %16326 = vmatpush3.msk.msra.mxu0 %vm707_vm0, %v18911_v3  ;;  %16327 = vmatprep.mubr.msk.f32.mxu0 %vm700_vm1, %v3300_v34  ;;  %v18954_v34 = vld [vmem:[%s18477_s15 + $0x3a] sm:$0xff] }
 0x135   : > { %16331 = vmatpush3.msk.msra.mxu1 %vm707_vm0, %v18911_v3  ;;  %16332 = vmatprep.mubr.msk.f32.mxu1 %vm700_vm1, %v18923_v36  ;;  %20960 = vst [vmem:[#allocation29_spill] sm:$0xff] %v18954_v34  ;;  %v18957_v36 = vld [vmem:[%s18477_s15 + $0x52] sm:$0xff] }
 0x136   : > { %16335 = vmatprep.subr.msk.mxu0 %vm707_vm0, %v18911_v3  ;;  %16340 = vmatprep.subr.msk.mxu1 %vm707_vm0, %v18911_v3  ;;  %20961 = vst [vmem:[#allocation30_spill] sm:$0xff] %v18957_v36 }
 0x137   : > { %16328 = vmatmul.mubr.msk.f32.vlgmr.msra.gmra.mrb[0].mxu0 %vm700_vm1, %v3301_v33  ;;  %16333 = vmatmul.mubr.msk.f32.vlgmr.msra.gmra.mrb[0].mxu1 %vm700_vm1, %v18931_v32  ;;  %v18968_v33 = vld [vmem:[%s18477_s15 + $0x62] sm:$0xff]  ;;  %v18975_v32 = vld [vmem:[%s18477_s15 + $0x7a] sm:$0xff] }
 0x138   : > { %16336 = vmatpush3.msk.msra.mxu0 %vm707_vm0, %v18911_v3  ;;  %16337 = vmatprep.mubr.msk.f32.mxu0 %vm700_vm1, %v18941_v30  ;;  %20962 = vst [vmem:[#allocation31_spill] sm:$0xff] %v18968_v33  ;;  %20963 = vst [vmem:[#allocation32_spill] sm:$0xff] %v18975_v32  ;;  %v18985_v30 = vld [vmem:[%s18477_s15 + $0x82] sm:$0xff] }
 0x139   : > { %16341 = vmatpush3.msk.msra.mxu1 %vm707_vm0, %v18911_v3  ;;  %16342 = vmatprep.mubr.msk.f32.mxu1 %vm700_vm1, %v18947_v31  ;;  %v18982_v31 = vld [vmem:[%s18477_s15 + $0x6a] sm:$0xff]  ;;  %20965 = vst [vmem:[#allocation34_spill] sm:$0xff] %v18985_v30 }
 0x13a   : > { %16345 = vmatprep.subr.msk.mxu0 %vm707_vm0, %v18911_v3  ;;  %16350 = vmatprep.subr.msk.mxu1 %vm707_vm0, %v18911_v3  ;;  %20964 = vst [vmem:[#allocation33_spill] sm:$0xff] %v18982_v31 }
 0x13b   : > { %16338 = vmatmul.mubr.msk.f32.vlgmr.msra.gmra.mrb[2].mxu0 %vm700_vm1, %v18954_v34  ;;  %16343 = vmatmul.mubr.msk.f32.vlgmr.msra.gmra.mrb[2].mxu1 %vm700_vm1, %v18957_v36  ;;  %v18996_v36 = vld [vmem:[%s18477_s15 + $0x92] sm:$0xff]  ;;  %v19003_v34 = vld [vmem:[%s18477_s15 + $0xaa] sm:$0xff] }
 0x13c   : > { %16346 = vmatpush3.msk.msra.mxu0 %vm707_vm0, %v18911_v3  ;;  %16347 = vmatprep.mubr.msk.f32.mxu0 %vm700_vm1, %v18968_v33  ;;  %20966 = vst [vmem:[#allocation35_spill] sm:$0xff] %v18996_v36  ;;  %20967 = vst [vmem:[#allocation36_spill] sm:$0xff] %v19003_v34  ;;  %v19013_v33 = vld [vmem:[%s18477_s15 + $0xb2] sm:$0xff] }
 0x13d   : > { %16351 = vmatpush3.msk.msra.mxu1 %vm707_vm0, %v18911_v3  ;;  %16352 = vmatprep.mubr.msk.f32.mxu1 %vm700_vm1, %v18975_v32  ;;  %v19010_v32 = vld [vmem:[%s18477_s15 + $0x9a] sm:$0xff]  ;;  %20969 = vst [vmem:[#allocation38_spill] sm:$0xff] %v19013_v33 }
 0x13e   : > { %16355 = vmatprep.subr.msk.mxu0 %vm707_vm0, %v18911_v3  ;;  %16360 = vmatprep.subr.msk.mxu1 %vm707_vm0, %v18911_v3  ;;  %20968 = vst [vmem:[#allocation37_spill] sm:$0xff] %v19010_v32 }
 0x13f   : > { %16348 = vmatmul.mubr.msk.f32.vlgmr.msra.gmra.mrb[4].mxu0 %vm700_vm1, %v18982_v31  ;;  %16353 = vmatmul.mubr.msk.f32.vlgmr.msra.gmra.mrb[4].mxu1 %vm700_vm1, %v18985_v30  ;;  %v19024_v30 = vld [vmem:[%s18477_s15 + $0xc2] sm:$0xff]  ;;  %v19031_v31 = vld [vmem:[%s18477_s15 + $0xda] sm:$0xff] }
 0x140   : > { %16356 = vmatpush3.msk.msra.mxu0 %vm707_vm0, %v18911_v3  ;;  %16357 = vmatprep.mubr.msk.f32.mxu0 %vm700_vm1, %v18996_v36  ;;  %20970 = vst [vmem:[#allocation39_spill] sm:$0xff] %v19024_v30  ;;  %20971 = vst [vmem:[#allocation40_spill] sm:$0xff] %v19031_v31  ;;  %v19041_v36 = vld [vmem:[%s18477_s15 + $0xe2] sm:$0xff] }
 0x141   : > { %16361 = vmatpush3.msk.msra.mxu1 %vm707_vm0, %v18911_v3  ;;  %16362 = vmatprep.mubr.msk.f32.mxu1 %vm700_vm1, %v19003_v34  ;;  %v19038_v34 = vld [vmem:[%s18477_s15 + $0xca] sm:$0xff]  ;;  %20973 = vst [vmem:[#allocation42_spill] sm:$0xff] %v19041_v36 }
 0x142   : > { %16365 = vmatprep.subr.msk.mxu0 %vm707_vm0, %v18911_v3  ;;  %16370 = vmatprep.subr.msk.mxu1 %vm707_vm0, %v18911_v3  ;;  %20972 = vst [vmem:[#allocation41_spill] sm:$0xff] %v19038_v34 }
 0x143   : > { %16358 = vmatmul.mubr.msk.f32.vlgmr.msra.gmra.mrb[6].mxu0 %vm700_vm1, %v19010_v32  ;;  %16363 = vmatmul.mubr.msk.f32.vlgmr.msra.gmra.mrb[6].mxu1 %vm700_vm1, %v19013_v33  ;;  %v19052_v33 = vld [vmem:[%s18477_s15 + $0xf2] sm:$0xff]  ;;  %v19059_v32 = vld [vmem:[%s18477_s15 + $0x10a] sm:$0xff] }
 0x144   : > { %16366 = vmatpush3.msk.msra.mxu0 %vm707_vm0, %v18911_v3  ;;  %16367 = vmatprep.mubr.msk.f32.mxu0 %vm700_vm1, %v19024_v30  ;;  %20974 = vst [vmem:[#allocation43_spill] sm:$0xff] %v19052_v33  ;;  %20975 = vst [vmem:[#allocation44_spill] sm:$0xff] %v19059_v32  ;;  %v19069_v30 = vld [vmem:[%s18477_s15 + $0x112] sm:$0xff] }
 0x145   : > { %16371 = vmatpush3.msk.msra.mxu1 %vm707_vm0, %v18911_v3  ;;  %16372 = vmatprep.mubr.msk.f32.mxu1 %vm700_vm1, %v19031_v31  ;;  %v19066_v31 = vld [vmem:[%s18477_s15 + $0xfa] sm:$0xff]  ;;  %20977 = vst [vmem:[#allocation46_spill] sm:$0xff] %v19069_v30 }
 0x146   : > { %16375 = vmatprep.subr.msk.mxu0 %vm707_vm0, %v18911_v3  ;;  %16380 = vmatprep.subr.msk.mxu1 %vm707_vm0, %v18911_v3  ;;  %20976 = vst [vmem:[#allocation45_spill] sm:$0xff] %v19066_v31 }
 0x147   : > { %16368 = vmatmul.mubr.msk.f32.vlgmr.msra.gmra.mrb[8].mxu0 %vm700_vm1, %v19038_v34  ;;  %16373 = vmatmul.mubr.msk.f32.vlgmr.msra.gmra.mrb[8].mxu1 %vm700_vm1, %v19041_v36  ;;  %v19080_v36 = vld [vmem:[%s18477_s15 + $0x122] sm:$0xff]  ;;  %v19087_v34 = vld [vmem:[%s18477_s15 + $0x13a] sm:$0xff] }
 0x148   : > { %16376 = vmatpush3.msk.msra.mxu0 %vm707_vm0, %v18911_v3  ;;  %16377 = vmatprep.mubr.msk.f32.mxu0 %vm700_vm1, %v19052_v33  ;;  %20978 = vst [vmem:[#allocation47_spill] sm:$0xff] %v19080_v36  ;;  %20979 = vst [vmem:[#allocation48_spill] sm:$0xff] %v19087_v34  ;;  %v19097_v33 = vld [vmem:[%s18477_s15 + $0x142] sm:$0xff] }
 0x149   : > { %16381 = vmatpush3.msk.msra.mxu1 %vm707_vm0, %v18911_v3  ;;  %16382 = vmatprep.mubr.msk.f32.mxu1 %vm700_vm1, %v19059_v32  ;;  %v19094_v32 = vld [vmem:[%s18477_s15 + $0x12a] sm:$0xff] }
 0x14a   : > { %16385 = vmatprep.subr.msk.mxu0 %vm707_vm0, %v18911_v3  ;;  %16390 = vmatprep.subr.msk.mxu1 %vm707_vm0, %v18911_v3 }
 0x14b   : > { %16378 = vmatmul.mubr.msk.f32.vlgmr.msra.gmra.mrb[10].mxu0 %vm700_vm1, %v19066_v31  ;;  %16383 = vmatmul.mubr.msk.f32.vlgmr.msra.gmra.mrb[10].mxu1 %vm700_vm1, %v19069_v30  ;;  %v19108_v30 = vld [vmem:[%s18477_s15 + $0x152] sm:$0xff]  ;;  %v19115_v31 = vld [vmem:[%s18477_s15 + $0x16a] sm:$0xff] }
 0x14c   : > { %16386 = vmatpush3.msk.msra.mxu0 %vm707_vm0, %v18911_v3  ;;  %16387 = vmatprep.mubr.msk.f32.mxu0 %vm700_vm1, %v19080_v36  ;;  %v19122_v36 = vld [vmem:[%s18477_s15 + $0x15a] sm:$0xff] }
 0x14d   : > { %16391 = vmatpush3.msk.msra.mxu1 %vm707_vm0, %v18911_v3  ;;  %16392 = vmatprep.mubr.msk.f32.mxu1 %vm700_vm1, %v19087_v34  ;;  %v19131_v34 = vld [vmem:[#allocation2 + $0xc] sm:$0xf] }
 0x14e   : > { %16395 = vmatprep.subr.msk.mxu0 %vm707_vm0, %v18911_v3  ;;  %16400 = vmatprep.subr.msk.mxu1 %vm707_vm0, %v18911_v3 }
 0x14f   : > { %16388 = vmatmul.mubr.msk.f32.vlgmr.msra.gmra.mrb[12].mxu0 %vm700_vm1, %v19094_v32  ;;  %16393 = vmatmul.mubr.msk.f32.vlgmr.msra.gmra.mrb[12].mxu1 %vm700_vm1, %v19097_v33 }
 0x150   : > { %16396 = vmatpush3.msk.msra.mxu0 %vm707_vm0, %v18911_v3  ;;  %16397 = vmatprep.mubr.msk.f32.mxu0 %vm700_vm1, %v19108_v30 }
 0x151   : > { %16401 = vmatpush3.msk.msra.mxu1 %vm707_vm0, %v18911_v3  ;;  %16402 = vmatprep.mubr.msk.f32.mxu1 %vm700_vm1, %v19115_v31  ;;  %v19267_v3 = vld [vmem:[#allocation2 + $0x10] sm:$0xf] }
 0x152   : > { %16405 = vmatprep.subr.msk.mxu0 %vm707_vm0, %v19131_v34  ;;  %16410 = vmatprep.subr.msk.mxu1 %vm707_vm0, %v19131_v34 }
 0x153   : > { %16398 = vmatmul.mubr.msk.f32.vlgmr.msra.gmra.mrb[14].mxu0 %vm700_vm1, %v19122_v36  ;;  %16403 = vmatmul.mubr.msk.f32.vlgmr.msra.gmra.mrb[14].mxu1 %vm700_vm1, %v19125_v28 }
 0x154   : > { %16406 = vmatpush3.msk.msra.mxu0 %vm707_vm0, %v19131_v34  ;;  %16407 = vmatprep.mubr.msk.f32.mxu0 %vm700_vm1, %v18703_v35  ;;  %v19254_v35 = vld [vmem:[%s18477_s15 + $0x180] sm:$0xff] }
 0x155   : > { %16411 = vmatpush3.msk.msra.mxu1 %vm707_vm0, %v19131_v34  ;;  %16412 = vmatprep.mubr.msk.f32.mxu1 %vm700_vm1, %v18721_v38 }
 0x156   : > { %16415 = vmatprep.subr.msk.mxu0 %vm707_vm0, %v19131_v34  ;;  %16420 = vmatprep.subr.msk.mxu1 %vm707_vm0, %v19131_v34 }
 0x157   : > { %16408 = vmatmul.mubr.msk.f32.vlgmr.msra.gmra.mrb[0].mxu0 %vm700_vm1, %v18711_v37  ;;  %16413 = vmatmul.mubr.msk.f32.vlgmr.msra.gmra.mrb[0].mxu1 %vm700_vm1, %v18734_v40  ;;  %v19261_v37 = vld [vmem:[%s18477_s15 + $0x188] sm:$0xff] }
 0x158   : > { %16416 = vmatpush3.msk.msra.mxu0 %vm707_vm0, %v19131_v34  ;;  %16417 = vmatprep.mubr.msk.f32.mxu0 %vm700_vm1, %v18727_v39 }
 0x159   : > { %16421 = vmatpush3.msk.msra.mxu1 %vm707_vm0, %v19131_v34  ;;  %16422 = vmatprep.mubr.msk.f32.mxu1 %vm700_vm1, %v18748_v42 }
 0x15a   : > { %16425 = vmatprep.subr.msk.mxu0 %vm707_vm0, %v19131_v34  ;;  %16430 = vmatprep.subr.msk.mxu1 %vm707_vm0, %v19131_v34 }
 0x15b   : > { %16418 = vmatmul.mubr.msk.f32.vlgmr.msra.gmra.mrb[2].mxu0 %vm700_vm1, %v18737_v41  ;;  %16423 = vmatmul.mubr.msk.f32.vlgmr.msra.gmra.mrb[2].mxu1 %vm700_vm1, %v18762_v44 }
 0x15c   : > { %16426 = vmatpush3.msk.msra.mxu0 %vm707_vm0, %v19131_v34  ;;  %16427 = vmatprep.mubr.msk.f32.mxu0 %vm700_vm1, %v18755_v43 }
 0x15d   : > { %16431 = vmatpush3.msk.msra.mxu1 %vm707_vm0, %v19131_v34  ;;  %16432 = vmatprep.mubr.msk.f32.mxu1 %vm700_vm1, %v18776_v46 }
 0x15e   : > { %16435 = vmatprep.subr.msk.mxu0 %vm707_vm0, %v19131_v34  ;;  %16440 = vmatprep.subr.msk.mxu1 %vm707_vm0, %v19131_v34 }
 0x15f   : > { %16428 = vmatmul.mubr.msk.f32.vlgmr.msra.gmra.mrb[4].mxu0 %vm700_vm1, %v18765_v45  ;;  %16433 = vmatmul.mubr.msk.f32.vlgmr.msra.gmra.mrb[4].mxu1 %vm700_vm1, %v18790_v48 }
 0x160   : > { %16436 = vmatpush3.msk.msra.mxu0 %vm707_vm0, %v19131_v34  ;;  %16437 = vmatprep.mubr.msk.f32.mxu0 %vm700_vm1, %v18783_v47 }
 0x161   : > { %16441 = vmatpush3.msk.msra.mxu1 %vm707_vm0, %v19131_v34  ;;  %16442 = vmatprep.mubr.msk.f32.mxu1 %vm700_vm1, %v18804_v50 }
 0x162   : > { %16445 = vmatprep.subr.msk.mxu0 %vm707_vm0, %v19131_v34  ;;  %16450 = vmatprep.subr.msk.mxu1 %vm707_vm0, %v19131_v34 }
 0x163   : > { %16438 = vmatmul.mubr.msk.f32.vlgmr.msra.gmra.mrb[6].mxu0 %vm700_vm1, %v18793_v49  ;;  %16443 = vmatmul.mubr.msk.f32.vlgmr.msra.gmra.mrb[6].mxu1 %vm700_vm1, %v18818_v52 }
 0x164   : > { %16446 = vmatpush3.msk.msra.mxu0 %vm707_vm0, %v19131_v34  ;;  %16447 = vmatprep.mubr.msk.f32.mxu0 %vm700_vm1, %v18811_v51 }
 0x165   : > { %16451 = vmatpush3.msk.msra.mxu1 %vm707_vm0, %v19131_v34  ;;  %16452 = vmatprep.mubr.msk.f32.mxu1 %vm700_vm1, %v18832_v54 }
 0x166   : > { %16455 = vmatprep.subr.msk.mxu0 %vm707_vm0, %v19131_v34  ;;  %16460 = vmatprep.subr.msk.mxu1 %vm707_vm0, %v19131_v34 }
 0x167   : > { %16448 = vmatmul.mubr.msk.f32.vlgmr.msra.gmra.mrb[8].mxu0 %vm700_vm1, %v18821_v53  ;;  %16453 = vmatmul.mubr.msk.f32.vlgmr.msra.gmra.mrb[8].mxu1 %vm700_vm1, %v18846_v56 }
 0x168   : > { %16456 = vmatpush3.msk.msra.mxu0 %vm707_vm0, %v19131_v34  ;;  %16457 = vmatprep.mubr.msk.f32.mxu0 %vm700_vm1, %v18839_v55 }
 0x169   : > { %16461 = vmatpush3.msk.msra.mxu1 %vm707_vm0, %v19131_v34  ;;  %16462 = vmatprep.mubr.msk.f32.mxu1 %vm700_vm1, %v18860_v58 }
 0x16a   : > { %16465 = vmatprep.subr.msk.mxu0 %vm707_vm0, %v19131_v34  ;;  %16470 = vmatprep.subr.msk.mxu1 %vm707_vm0, %v19131_v34 }
 0x16b   : > { %16458 = vmatmul.mubr.msk.f32.vlgmr.msra.gmra.mrb[10].mxu0 %vm700_vm1, %v18849_v57  ;;  %16463 = vmatmul.mubr.msk.f32.vlgmr.msra.gmra.mrb[10].mxu1 %vm700_vm1, %v18874_v60 }
 0x16c   : > { %16466 = vmatpush3.msk.msra.mxu0 %vm707_vm0, %v19131_v34  ;;  %16467 = vmatprep.mubr.msk.f32.mxu0 %vm700_vm1, %v18867_v59 }
 0x16d   : > { %16471 = vmatpush3.msk.msra.mxu1 %vm707_vm0, %v19131_v34  ;;  %16472 = vmatprep.mubr.msk.f32.mxu1 %vm700_vm1, %v18888_v62 }
 0x16e   : > { %16475 = vmatprep.subr.msk.mxu0 %vm707_vm0, %v19131_v34  ;;  %16480 = vmatprep.subr.msk.mxu1 %vm707_vm0, %v19131_v34 }
 0x16f   : > { %16468 = vmatmul.mubr.msk.f32.vlgmr.msra.gmra.mrb[12].mxu0 %vm700_vm1, %v18877_v61  ;;  %16473 = vmatmul.mubr.msk.f32.vlgmr.msra.gmra.mrb[12].mxu1 %vm700_vm1, %v18902_v0 }
 0x170   : > { %16476 = vmatpush3.msk.msra.mxu0 %vm707_vm0, %v19131_v34  ;;  %16477 = vmatprep.mubr.msk.f32.mxu0 %vm700_vm1, %v18895_v63 }
 0x171   : > { %16481 = vmatpush3.msk.msra.mxu1 %vm707_vm0, %v19131_v34  ;;  %16482 = vmatprep.mubr.msk.f32.mxu1 %vm700_vm1, %v19254_v35  ;;  %v21003_v34 = vld [vmem:[#allocation45_spill] sm:$0xff] }
 0x172   : > { %16485 = vmatprep.subr.msk.mxu0 %vm707_vm0, %v19267_v3  ;;  %16490 = vmatprep.subr.msk.mxu1 %vm707_vm0, %v19267_v3 }
 0x173   : > { %16478 = vmatmul.mubr.msk.f32.vlgmr.msra.gmra.mrb[14].mxu0 %vm700_vm1, %v18905_v1  ;;  %16483 = vmatmul.mubr.msk.f32.vlgmr.msra.gmra.mrb[14].mxu1 %vm700_vm1, %v19261_v37 }
 0x174   : > { %16486 = vmatpush3.msk.msra.mxu0 %vm707_vm0, %v19267_v3  ;;  %16487 = vmatprep.mubr.msk.f32.mxu0 %vm700_vm1, %v18483_v2  ;;  %v20980_v2 = vld [vmem:[#allocation21_spill] sm:$0xff] }
 0x175   : > { %16491 = vmatpush3.msk.msra.mxu1 %vm707_vm0, %v19267_v3  ;;  %16492 = vmatprep.mubr.msk.f32.mxu1 %vm700_vm1, %v18501_v5  ;;  %v19390_v5 = vld [vmem:[%s18477_s15 + $0x181] sm:$0xff] }
 0x176   : > { %16495 = vmatprep.subr.msk.mxu0 %vm707_vm0, %v19267_v3  ;;  %16500 = vmatprep.subr.msk.mxu1 %vm707_vm0, %v19267_v3 }
 0x177   : > { %16488 = vmatmul.mubr.msk.f32.vlgmr.msra.gmra.mrb[0].mxu0 %vm700_vm1, %v18491_v4  ;;  %16493 = vmatmul.mubr.msk.f32.vlgmr.msra.gmra.mrb[0].mxu1 %vm700_vm1, %v18514_v7  ;;  %v20981_v4 = vld [vmem:[#allocation23_spill] sm:$0xff]  ;;  %v20982_v7 = vld [vmem:[#allocation22_spill] sm:$0xff] }
 0x178   : > { %16496 = vmatpush3.msk.msra.mxu0 %vm707_vm0, %v19267_v3  ;;  %16497 = vmatprep.mubr.msk.f32.mxu0 %vm700_vm1, %v18507_v6  ;;  %v19397_v6 = vld [vmem:[%s18477_s15 + $0x189] sm:$0xff] }
 0x179   : > { %16501 = vmatpush3.msk.msra.mxu1 %vm707_vm0, %v19267_v3  ;;  %16502 = vmatprep.mubr.msk.f32.mxu1 %vm700_vm1, %v18528_v9  ;;  %v20983_v9 = vld [vmem:[#allocation24_spill] sm:$0xff] }
 0x17a   : > { %16505 = vmatprep.subr.msk.mxu0 %vm707_vm0, %v19267_v3  ;;  %16510 = vmatprep.subr.msk.mxu1 %vm707_vm0, %v19267_v3 }
 0x17b   : > { %16498 = vmatmul.mubr.msk.f32.vlgmr.msra.gmra.mrb[2].mxu0 %vm700_vm1, %v18517_v8  ;;  %16503 = vmatmul.mubr.msk.f32.vlgmr.msra.gmra.mrb[2].mxu1 %vm700_vm1, %v18542_v11  ;;  %v19403_v8 = vld [vmem:[#allocation2 + $0x14] sm:$0xf]  ;;  %v20985_v11 = vld [vmem:[#allocation27_spill] sm:$0xff] }
 0x17c   : > { %16506 = vmatpush3.msk.msra.mxu0 %vm707_vm0, %v19267_v3  ;;  %16507 = vmatprep.mubr.msk.f32.mxu0 %vm700_vm1, %v18535_v10  ;;  %v20984_v10 = vld [vmem:[#allocation25_spill] sm:$0xff] }
 0x17d   : > { %16511 = vmatpush3.msk.msra.mxu1 %vm707_vm0, %v19267_v3  ;;  %16512 = vmatprep.mubr.msk.f32.mxu1 %vm700_vm1, %v18556_v13  ;;  %v20987_v13 = vld [vmem:[#allocation29_spill] sm:$0xff] }
 0x17e   : > { %16515 = vmatprep.subr.msk.mxu0 %vm707_vm0, %v19267_v3  ;;  %16520 = vmatprep.subr.msk.mxu1 %vm707_vm0, %v19267_v3 }
 0x17f   : > { %16508 = vmatmul.mubr.msk.f32.vlgmr.msra.gmra.mrb[4].mxu0 %vm700_vm1, %v18545_v12  ;;  %16513 = vmatmul.mubr.msk.f32.vlgmr.msra.gmra.mrb[4].mxu1 %vm700_vm1, %v18570_v15  ;;  %v20986_v12 = vld [vmem:[#allocation26_spill] sm:$0xff]  ;;  %v20989_v15 = vld [vmem:[#allocation31_spill] sm:$0xff] }
 0x180   : > { %16516 = vmatpush3.msk.msra.mxu0 %vm707_vm0, %v19267_v3  ;;  %16517 = vmatprep.mubr.msk.f32.mxu0 %vm700_vm1, %v18563_v14  ;;  %v20988_v14 = vld [vmem:[#allocation28_spill] sm:$0xff] }
 0x181   : > { %16521 = vmatpush3.msk.msra.mxu1 %vm707_vm0, %v19267_v3  ;;  %16522 = vmatprep.mubr.msk.f32.mxu1 %vm700_vm1, %v18584_v17  ;;  %v20991_v17 = vld [vmem:[#allocation33_spill] sm:$0xff] }
 0x182   : > { %16525 = vmatprep.subr.msk.mxu0 %vm707_vm0, %v19267_v3  ;;  %16530 = vmatprep.subr.msk.mxu1 %vm707_vm0, %v19267_v3 }
 0x183   : > { %16518 = vmatmul.mubr.msk.f32.vlgmr.msra.gmra.mrb[6].mxu0 %vm700_vm1, %v18573_v16  ;;  %16523 = vmatmul.mubr.msk.f32.vlgmr.msra.gmra.mrb[6].mxu1 %vm700_vm1, %v18598_v19  ;;  %v20990_v16 = vld [vmem:[#allocation30_spill] sm:$0xff]  ;;  %v20993_v19 = vld [vmem:[#allocation35_spill] sm:$0xff] }
 0x184   : > { %16526 = vmatpush3.msk.msra.mxu0 %vm707_vm0, %v19267_v3  ;;  %16527 = vmatprep.mubr.msk.f32.mxu0 %vm700_vm1, %v18591_v18  ;;  %v20992_v18 = vld [vmem:[#allocation32_spill] sm:$0xff] }
 0x185   : > { %16531 = vmatpush3.msk.msra.mxu1 %vm707_vm0, %v19267_v3  ;;  %16532 = vmatprep.mubr.msk.f32.mxu1 %vm700_vm1, %v18612_v21  ;;  %v20995_v21 = vld [vmem:[#allocation37_spill] sm:$0xff] }
 0x186   : > { %16535 = vmatprep.subr.msk.mxu0 %vm707_vm0, %v19267_v3  ;;  %16540 = vmatprep.subr.msk.mxu1 %vm707_vm0, %v19267_v3 }
 0x187   : > { %16528 = vmatmul.mubr.msk.f32.vlgmr.msra.gmra.mrb[8].mxu0 %vm700_vm1, %v18601_v20  ;;  %16533 = vmatmul.mubr.msk.f32.vlgmr.msra.gmra.mrb[8].mxu1 %vm700_vm1, %v18626_v23  ;;  %v20994_v20 = vld [vmem:[#allocation34_spill] sm:$0xff]  ;;  %v20997_v23 = vld [vmem:[#allocation39_spill] sm:$0xff] }
 0x188   : > { %16536 = vmatpush3.msk.msra.mxu0 %vm707_vm0, %v19267_v3  ;;  %16537 = vmatprep.mubr.msk.f32.mxu0 %vm700_vm1, %v18619_v22  ;;  %v20996_v22 = vld [vmem:[#allocation36_spill] sm:$0xff] }
 0x189   : > { %16541 = vmatpush3.msk.msra.mxu1 %vm707_vm0, %v19267_v3  ;;  %16542 = vmatprep.mubr.msk.f32.mxu1 %vm700_vm1, %v18640_v25  ;;  %v20999_v25 = vld [vmem:[#allocation41_spill] sm:$0xff] }
 0x18a   : > { %16545 = vmatprep.subr.msk.mxu0 %vm707_vm0, %v19267_v3  ;;  %16550 = vmatprep.subr.msk.mxu1 %vm707_vm0, %v19267_v3 }
 0x18b   : > { %16538 = vmatmul.mubr.msk.f32.vlgmr.msra.gmra.mrb[10].mxu0 %vm700_vm1, %v18629_v24  ;;  %16543 = vmatmul.mubr.msk.f32.vlgmr.msra.gmra.mrb[10].mxu1 %vm700_vm1, %v18654_v27  ;;  %v20998_v24 = vld [vmem:[#allocation38_spill] sm:$0xff]  ;;  %v21001_v27 = vld [vmem:[#allocation43_spill] sm:$0xff] }
 0x18c   : > { %16546 = vmatpush3.msk.msra.mxu0 %vm707_vm0, %v19267_v3  ;;  %16547 = vmatprep.mubr.msk.f32.mxu0 %vm700_vm1, %v18647_v26  ;;  %v21000_v26 = vld [vmem:[#allocation40_spill] sm:$0xff] }
 0x18d   : > { %16551 = vmatpush3.msk.msra.mxu1 %vm707_vm0, %v19267_v3  ;;  %16552 = vmatprep.mubr.msk.f32.mxu1 %vm700_vm1, %v18668_v29  ;;  %v21002_v29 = vld [vmem:[#allocation42_spill] sm:$0xff] }
 0x18e   : > { %16555 = vmatprep.subr.msk.mxu0 %vm707_vm0, %v19267_v3  ;;  %16560 = vmatprep.subr.msk.mxu1 %vm707_vm0, %v19267_v3 }
 0x18f   : > { %16548 = vmatmul.mubr.msk.f32.vlgmr.msra.gmra.mrb[12].mxu0 %vm700_vm1, %v20980_v2  ;;  %16553 = vmatmul.mubr.msk.f32.vlgmr.msra.gmra.mrb[12].mxu1 %vm700_vm1, %v20981_v4  ;;  %v21005_v2 = vld [vmem:[#allocation47_spill] sm:$0xff]  ;;  %v21006_v4 = vld [vmem:[#allocation46_spill] sm:$0xff] }
 0x190   : > { %16556 = vmatpush3.msk.msra.mxu0 %vm707_vm0, %v19267_v3  ;;  %16557 = vmatprep.mubr.msk.f32.mxu0 %vm700_vm1, %v20982_v7  ;;  %v21007_v7 = vld [vmem:[#allocation48_spill] sm:$0xff] }
 0x191   : > { %16561 = vmatpush3.msk.msra.mxu1 %vm707_vm0, %v19267_v3  ;;  %16562 = vmatprep.mubr.msk.f32.mxu1 %vm700_vm1, %v19390_v5  ;;  %v21004_v3 = vld [vmem:[#allocation44_spill] sm:$0xff] }
 0x192   : > { %16565 = vmatprep.subr.msk.mxu0 %vm707_vm0, %v19403_v8  ;;  %16570 = vmatprep.subr.msk.mxu1 %vm707_vm0, %v19403_v8 }
 0x193   : > { %16558 = vmatmul.mubr.msk.f32.vlgmr.msra.gmra.mrb[14].mxu0 %vm700_vm1, %v20983_v9  ;;  %16563 = vmatmul.mubr.msk.f32.vlgmr.msra.gmra.mrb[14].mxu1 %vm700_vm1, %v19397_v6  ;;  %v19533_v9 = vld [vmem:[%s18477_s15 + $0x18a] sm:$0xff] }
 0x194   : > { %16566 = vmatpush3.msk.msra.mxu0 %vm707_vm0, %v19403_v8  ;;  %16567 = vmatprep.mubr.msk.f32.mxu0 %vm700_vm1, %v20984_v10  ;;  %v15304_v10 = vld [vmem:[%s18477_s15 + $0x4a] sm:$0xff] }
 0x195   : > { %16571 = vmatpush3.msk.msra.mxu1 %vm707_vm0, %v19403_v8  ;;  %16572 = vmatprep.mubr.msk.f32.mxu1 %vm700_vm1, %v20985_v11  ;;  %v15305_v11 = vld [vmem:[%s18477_s15 + $0x52] sm:$0xff] }
 0x196   : > { %16575 = vmatprep.subr.msk.mxu0 %vm707_vm0, %v19403_v8  ;;  %16580 = vmatprep.subr.msk.mxu1 %vm707_vm0, %v19403_v8 }
 0x197   : > { %16568 = vmatmul.mubr.msk.f32.vlgmr.msra.gmra.mrb[0].mxu0 %vm700_vm1, %v20986_v12  ;;  %16573 = vmatmul.mubr.msk.f32.vlgmr.msra.gmra.mrb[0].mxu1 %vm700_vm1, %v20987_v13  ;;  %v15308_v12 = vld [vmem:[%s18477_s15 + $0x7a] sm:$0xff]  ;;  %v15307_v13 = vld [vmem:[%s18477_s15 + $0x6a] sm:$0xff] }
 0x198   : > { %16576 = vmatpush3.msk.msra.mxu0 %vm707_vm0, %v19403_v8  ;;  %16577 = vmatprep.mubr.msk.f32.mxu0 %vm700_vm1, %v20988_v14  ;;  %v15309_v14 = vld [vmem:[%s18477_s15 + $0x82] sm:$0xff] }
 0x199   : > { %16581 = vmatpush3.msk.msra.mxu1 %vm707_vm0, %v19403_v8  ;;  %16582 = vmatprep.mubr.msk.f32.mxu1 %vm700_vm1, %v20989_v15  ;;  %v15310_v15 = vld [vmem:[%s18477_s15 + $0x92] sm:$0xff] }
 0x19a   : > { %16585 = vmatprep.subr.msk.mxu0 %vm707_vm0, %v19403_v8  ;;  %16590 = vmatprep.subr.msk.mxu1 %vm707_vm0, %v19403_v8 }
 0x19b   : > { %16578 = vmatmul.mubr.msk.f32.vlgmr.msra.gmra.mrb[2].mxu0 %vm700_vm1, %v20990_v16  ;;  %16583 = vmatmul.mubr.msk.f32.vlgmr.msra.gmra.mrb[2].mxu1 %vm700_vm1, %v20991_v17  ;;  %v15312_v16 = vld [vmem:[%s18477_s15 + $0xaa] sm:$0xff]  ;;  %v15311_v17 = vld [vmem:[%s18477_s15 + $0x9a] sm:$0xff] }
 0x19c   : > { %16586 = vmatpush3.msk.msra.mxu0 %vm707_vm0, %v19403_v8  ;;  %16587 = vmatprep.mubr.msk.f32.mxu0 %vm700_vm1, %v20992_v18  ;;  %v15313_v18 = vld [vmem:[%s18477_s15 + $0xb2] sm:$0xff] }
 0x19d   : > { %16591 = vmatpush3.msk.msra.mxu1 %vm707_vm0, %v19403_v8  ;;  %16592 = vmatprep.mubr.msk.f32.mxu1 %vm700_vm1, %v20993_v19  ;;  %v15314_v19 = vld [vmem:[%s18477_s15 + $0xc2] sm:$0xff] }
 0x19e   : > { %16595 = vmatprep.subr.msk.mxu0 %vm707_vm0, %v19403_v8  ;;  %16600 = vmatprep.subr.msk.mxu1 %vm707_vm0, %v19403_v8 }
 0x19f   : > { %16588 = vmatmul.mubr.msk.f32.vlgmr.msra.gmra.mrb[4].mxu0 %vm700_vm1, %v20994_v20  ;;  %16593 = vmatmul.mubr.msk.f32.vlgmr.msra.gmra.mrb[4].mxu1 %vm700_vm1, %v20995_v21  ;;  %v15316_v20 = vld [vmem:[%s18477_s15 + $0xda] sm:$0xff]  ;;  %v15315_v21 = vld [vmem:[%s18477_s15 + $0xca] sm:$0xff] }
 0x1a0   : > { %16596 = vmatpush3.msk.msra.mxu0 %vm707_vm0, %v19403_v8  ;;  %16597 = vmatprep.mubr.msk.f32.mxu0 %vm700_vm1, %v20996_v22  ;;  %v15317_v22 = vld [vmem:[%s18477_s15 + $0xe2] sm:$0xff] }
 0x1a1   : > { %16601 = vmatpush3.msk.msra.mxu1 %vm707_vm0, %v19403_v8  ;;  %16602 = vmatprep.mubr.msk.f32.mxu1 %vm700_vm1, %v20997_v23  ;;  %v15318_v23 = vld [vmem:[%s18477_s15 + $0xf2] sm:$0xff] }
 0x1a2   : > { %16605 = vmatprep.subr.msk.mxu0 %vm707_vm0, %v19403_v8  ;;  %16610 = vmatprep.subr.msk.mxu1 %vm707_vm0, %v19403_v8 }
 0x1a3   : > { %16598 = vmatmul.mubr.msk.f32.vlgmr.msra.gmra.mrb[6].mxu0 %vm700_vm1, %v20998_v24  ;;  %16603 = vmatmul.mubr.msk.f32.vlgmr.msra.gmra.mrb[6].mxu1 %vm700_vm1, %v20999_v25  ;;  %v15320_v24 = vld [vmem:[%s18477_s15 + $0x10a] sm:$0xff]  ;;  %v15319_v25 = vld [vmem:[%s18477_s15 + $0xfa] sm:$0xff] }
 0x1a4   : > { %16606 = vmatpush3.msk.msra.mxu0 %vm707_vm0, %v19403_v8  ;;  %16607 = vmatprep.mubr.msk.f32.mxu0 %vm700_vm1, %v21000_v26  ;;  %v15321_v26 = vld [vmem:[%s18477_s15 + $0x112] sm:$0xff] }
 0x1a5   : > { %16611 = vmatpush3.msk.msra.mxu1 %vm707_vm0, %v19403_v8  ;;  %16612 = vmatprep.mubr.msk.f32.mxu1 %vm700_vm1, %v21001_v27  ;;  %v15322_v27 = vld [vmem:[%s18477_s15 + $0x122] sm:$0xff] }
 0x1a6   : > { %16615 = vmatprep.subr.msk.mxu0 %vm707_vm0, %v19403_v8  ;;  %16620 = vmatprep.subr.msk.mxu1 %vm707_vm0, %v19403_v8 }
 0x1a7   : > { %16608 = vmatmul.mubr.msk.f32.vlgmr.msra.gmra.mrb[8].mxu0 %vm700_vm1, %v21002_v29  ;;  %16613 = vmatmul.mubr.msk.f32.vlgmr.msra.gmra.mrb[8].mxu1 %vm700_vm1, %v21003_v34  ;;  %v15324_v29 = vld [vmem:[%s18477_s15 + $0x13a] sm:$0xff]  ;;  %v15323_v34 = vld [vmem:[%s18477_s15 + $0x12a] sm:$0xff] }
 0x1a8   : > { %16616 = vmatpush3.msk.msra.mxu0 %vm707_vm0, %v19403_v8  ;;  %16617 = vmatprep.mubr.msk.f32.mxu0 %vm700_vm1, %v21004_v3  ;;  %v15325_v3 = vld [vmem:[%s18477_s15 + $0x142] sm:$0xff] }
 0x1a9   : > { %16621 = vmatpush3.msk.msra.mxu1 %vm707_vm0, %v19403_v8  ;;  %16622 = vmatprep.mubr.msk.f32.mxu1 %vm700_vm1, %v21005_v2  ;;  %v15326_v2 = vld [vmem:[%s18477_s15 + $0x152] sm:$0xff] }
 0x1aa   : > { %16625 = vmatprep.subr.msk.mxu0 %vm707_vm0, %v19403_v8  ;;  %16630 = vmatprep.subr.msk.mxu1 %vm707_vm0, %v19403_v8 }
 0x1ab   : > { %16618 = vmatmul.mubr.msk.f32.vlgmr.msra.gmra.mrb[10].mxu0 %vm700_vm1, %v21006_v4  ;;  %16623 = vmatmul.mubr.msk.f32.vlgmr.msra.gmra.mrb[10].mxu1 %vm700_vm1, %v19094_v32  ;;  %v19526_v32 = vld [vmem:[%s18477_s15 + $0x182] sm:$0xff]  ;;  %v15328_v4 = vld [vmem:[%s18477_s15 + $0x16a] sm:$0xff] }
 0x1ac   : > { %16626 = vmatpush3.msk.msra.mxu0 %vm707_vm0, %v19403_v8  ;;  %16627 = vmatprep.mubr.msk.f32.mxu0 %vm700_vm1, %v21007_v7  ;;  %v15327_v7 = vld [vmem:[%s18477_s15 + $0x15a] sm:$0xff] }
 0x1ad   : > { %16631 = vmatpush3.msk.msra.mxu1 %vm707_vm0, %v19403_v8  ;;  %16632 = vmatprep.mubr.msk.f32.mxu1 %vm700_vm1, %v19108_v30  ;;  %v19539_v30 = vld [vmem:[#allocation2 + $0x18] sm:$0xf] }
 0x1ae   : > { %16635 = vmatprep.subr.msk.mxu0 %vm707_vm0, %v19403_v8  ;;  %16640 = vmatprep.subr.msk.mxu1 %vm707_vm0, %v19403_v8 }
 0x1af   : > { %16628 = vmatmul.mubr.msk.f32.vlgmr.msra.gmra.mrb[12].mxu0 %vm700_vm1, %v19097_v33  ;;  %16633 = vmatmul.mubr.msk.f32.vlgmr.msra.gmra.mrb[12].mxu1 %vm700_vm1, %v19122_v36  ;;  %v15249_v36 = vld [vmem:[%s18477_s15 + $0x171] sm:$0xff]  ;;  %v15252_v33 = vld [vmem:[%s18477_s15 + $0x199] sm:$0xff] }
 0x1b0   : > { %16636 = vmatpush3.msk.msra.mxu0 %vm707_vm0, %v19403_v8  ;;  %16637 = vmatprep.mubr.msk.f32.mxu0 %vm700_vm1, %v19115_v31  ;;  %v15173_v31 = vld [vmem:[%s18477_s15 + $0x1a0] sm:$0xff] }
 0x1b1   : > { %16641 = vmatpush3.msk.msra.mxu1 %vm707_vm0, %v19403_v8  ;;  %16642 = vmatprep.mubr.msk.f32.mxu1 %vm700_vm1, %v19526_v32  ;;  %v15302_v8 = vld [vmem:[%s18477_s15 + $0x32] sm:$0xff] }
 0x1b2   : > { %16645 = vmatprep.subr.msk.mxu0 %vm707_vm0, %v19539_v30  ;;  %16650 = vmatprep.subr.msk.mxu1 %vm707_vm0, %v19539_v30 }
 0x1b3   : > { %16638 = vmatmul.mubr.msk.f32.vlgmr.msra.gmra.mrb[14].mxu0 %vm700_vm1, %v19125_v28  ;;  %16643 = vmatmul.mubr.msk.f32.vlgmr.msra.gmra.mrb[14].mxu1 %vm700_vm1, %v19533_v9  ;;  %v15172_v28 = vld [vmem:[%s18477_s15 + $0x198] sm:$0xff] }
 0x1b4   : > { %16646 = vmatpush3.msk.msra.mxu0 %vm707_vm0, %v19539_v30  ;;  %16647 = vmatprep.mubr.msk.f32.mxu0 %vm700_vm1, %v18721_v38  ;;  %v19671_v38 = vld [vmem:[#allocation2 + $0x1c] sm:$0xf] }
 0x1b5   : > { %16651 = vmatpush3.msk.msra.mxu1 %vm707_vm0, %v19539_v30  ;;  %16652 = vmatprep.mubr.msk.f32.mxu1 %vm700_vm1, %v18727_v39  ;;  %v15222_v39 = vld [vmem:[%s18477_s15 + $0x31] sm:$0xff] }
 0x1b6   : > { %16655 = vmatprep.subr.msk.mxu0 %vm707_vm0, %v19539_v30  ;;  %16660 = vmatprep.subr.msk.mxu1 %vm707_vm0, %v19539_v30 }
 0x1b7   : > { %16648 = vmatmul.mubr.msk.f32.vlgmr.msra.gmra.mrb[0].mxu0 %vm700_vm1, %v18734_v40  ;;  %16653 = vmatmul.mubr.msk.f32.vlgmr.msra.gmra.mrb[0].mxu1 %vm700_vm1, %v18737_v41  ;;  %v15224_v40 = vld [vmem:[%s18477_s15 + $0x49] sm:$0xff]  ;;  %v15223_v41 = vld [vmem:[%s18477_s15 + $0x39] sm:$0xff] }
 0x1b8   : > { %16656 = vmatpush3.msk.msra.mxu0 %vm707_vm0, %v19539_v30  ;;  %16657 = vmatprep.mubr.msk.f32.mxu0 %vm700_vm1, %v18748_v42  ;;  %v15225_v42 = vld [vmem:[%s18477_s15 + $0x51] sm:$0xff] }
 0x1b9   : > { %16661 = vmatpush3.msk.msra.mxu1 %vm707_vm0, %v19539_v30  ;;  %16662 = vmatprep.mubr.msk.f32.mxu1 %vm700_vm1, %v18755_v43  ;;  %v15226_v43 = vld [vmem:[%s18477_s15 + $0x61] sm:$0xff] }
 0x1ba   : > { %16665 = vmatprep.subr.msk.mxu0 %vm707_vm0, %v19539_v30  ;;  %16670 = vmatprep.subr.msk.mxu1 %vm707_vm0, %v19539_v30 }
 0x1bb   : > { %16658 = vmatmul.mubr.msk.f32.vlgmr.msra.gmra.mrb[2].mxu0 %vm700_vm1, %v18762_v44  ;;  %16663 = vmatmul.mubr.msk.f32.vlgmr.msra.gmra.mrb[2].mxu1 %vm700_vm1, %v18765_v45  ;;  %v15228_v44 = vld [vmem:[%s18477_s15 + $0x79] sm:$0xff]  ;;  %v15227_v45 = vld [vmem:[%s18477_s15 + $0x69] sm:$0xff] }
 0x1bc   : > { %16666 = vmatpush3.msk.msra.mxu0 %vm707_vm0, %v19539_v30  ;;  %16667 = vmatprep.mubr.msk.f32.mxu0 %vm700_vm1, %v18776_v46  ;;  %v15229_v46 = vld [vmem:[%s18477_s15 + $0x81] sm:$0xff] }
 0x1bd   : > { %16671 = vmatpush3.msk.msra.mxu1 %vm707_vm0, %v19539_v30  ;;  %16672 = vmatprep.mubr.msk.f32.mxu1 %vm700_vm1, %v18783_v47  ;;  %v15230_v47 = vld [vmem:[%s18477_s15 + $0x91] sm:$0xff] }
 0x1be   : > { %16675 = vmatprep.subr.msk.mxu0 %vm707_vm0, %v19539_v30  ;;  %16680 = vmatprep.subr.msk.mxu1 %vm707_vm0, %v19539_v30 }
 0x1bf   : > { %16668 = vmatmul.mubr.msk.f32.vlgmr.msra.gmra.mrb[4].mxu0 %vm700_vm1, %v18790_v48  ;;  %16673 = vmatmul.mubr.msk.f32.vlgmr.msra.gmra.mrb[4].mxu1 %vm700_vm1, %v18793_v49  ;;  %v15232_v48 = vld [vmem:[%s18477_s15 + $0xa9] sm:$0xff]  ;;  %v15231_v49 = vld [vmem:[%s18477_s15 + $0x99] sm:$0xff] }
 0x1c0   : > { %16676 = vmatpush3.msk.msra.mxu0 %vm707_vm0, %v19539_v30  ;;  %16677 = vmatprep.mubr.msk.f32.mxu0 %vm700_vm1, %v18804_v50  ;;  %v15233_v50 = vld [vmem:[%s18477_s15 + $0xb1] sm:$0xff] }
 0x1c1   : > { %16681 = vmatpush3.msk.msra.mxu1 %vm707_vm0, %v19539_v30  ;;  %16682 = vmatprep.mubr.msk.f32.mxu1 %vm700_vm1, %v18811_v51  ;;  %v15234_v51 = vld [vmem:[%s18477_s15 + $0xc1] sm:$0xff] }
 0x1c2   : > { %16685 = vmatprep.subr.msk.mxu0 %vm707_vm0, %v19539_v30  ;;  %16690 = vmatprep.subr.msk.mxu1 %vm707_vm0, %v19539_v30 }
 0x1c3   : > { %16678 = vmatmul.mubr.msk.f32.vlgmr.msra.gmra.mrb[6].mxu0 %vm700_vm1, %v18818_v52  ;;  %16683 = vmatmul.mubr.msk.f32.vlgmr.msra.gmra.mrb[6].mxu1 %vm700_vm1, %v18821_v53  ;;  %v15236_v52 = vld [vmem:[%s18477_s15 + $0xd9] sm:$0xff]  ;;  %v15235_v53 = vld [vmem:[%s18477_s15 + $0xc9] sm:$0xff] }
 0x1c4   : > { %16686 = vmatpush3.msk.msra.mxu0 %vm707_vm0, %v19539_v30  ;;  %16687 = vmatprep.mubr.msk.f32.mxu0 %vm700_vm1, %v18832_v54  ;;  %v15237_v54 = vld [vmem:[%s18477_s15 + $0xe1] sm:$0xff] }
 0x1c5   : > { %16691 = vmatpush3.msk.msra.mxu1 %vm707_vm0, %v19539_v30  ;;  %16692 = vmatprep.mubr.msk.f32.mxu1 %vm700_vm1, %v18839_v55  ;;  %v15238_v55 = vld [vmem:[%s18477_s15 + $0xf1] sm:$0xff] }
 0x1c6   : > { %16695 = vmatprep.subr.msk.mxu0 %vm707_vm0, %v19539_v30  ;;  %16700 = vmatprep.subr.msk.mxu1 %vm707_vm0, %v19539_v30 }
 0x1c7   : > { %16688 = vmatmul.mubr.msk.f32.vlgmr.msra.gmra.mrb[8].mxu0 %vm700_vm1, %v18846_v56  ;;  %16693 = vmatmul.mubr.msk.f32.vlgmr.msra.gmra.mrb[8].mxu1 %vm700_vm1, %v18849_v57  ;;  %v15240_v56 = vld [vmem:[%s18477_s15 + $0x109] sm:$0xff]  ;;  %v15239_v57 = vld [vmem:[%s18477_s15 + $0xf9] sm:$0xff] }
 0x1c8   : > { %16696 = vmatpush3.msk.msra.mxu0 %vm707_vm0, %v19539_v30  ;;  %16697 = vmatprep.mubr.msk.f32.mxu0 %vm700_vm1, %v18860_v58  ;;  %v15241_v58 = vld [vmem:[%s18477_s15 + $0x111] sm:$0xff] }
 0x1c9   : > { %16701 = vmatpush3.msk.msra.mxu1 %vm707_vm0, %v19539_v30  ;;  %16702 = vmatprep.mubr.msk.f32.mxu1 %vm700_vm1, %v18867_v59  ;;  %v15242_v59 = vld [vmem:[%s18477_s15 + $0x121] sm:$0xff] }
 0x1ca   : > { %16705 = vmatprep.subr.msk.mxu0 %vm707_vm0, %v19539_v30  ;;  %16710 = vmatprep.subr.msk.mxu1 %vm707_vm0, %v19539_v30 }
 0x1cb   : > { %16698 = vmatmul.mubr.msk.f32.vlgmr.msra.gmra.mrb[10].mxu0 %vm700_vm1, %v18874_v60  ;;  %16703 = vmatmul.mubr.msk.f32.vlgmr.msra.gmra.mrb[10].mxu1 %vm700_vm1, %v18877_v61  ;;  %v15244_v60 = vld [vmem:[%s18477_s15 + $0x139] sm:$0xff]  ;;  %v15243_v61 = vld [vmem:[%s18477_s15 + $0x129] sm:$0xff] }
 0x1cc   : > { %16706 = vmatpush3.msk.msra.mxu0 %vm707_vm0, %v19539_v30  ;;  %16707 = vmatprep.mubr.msk.f32.mxu0 %vm700_vm1, %v18888_v62  ;;  %v15245_v62 = vld [vmem:[%s18477_s15 + $0x141] sm:$0xff] }
 0x1cd   : > { %16711 = vmatpush3.msk.msra.mxu1 %vm707_vm0, %v19539_v30  ;;  %16712 = vmatprep.mubr.msk.f32.mxu1 %vm700_vm1, %v18895_v63  ;;  %v15246_v63 = vld [vmem:[%s18477_s15 + $0x151] sm:$0xff] }
 0x1ce   : > { %16715 = vmatprep.subr.msk.mxu0 %vm707_vm0, %v19539_v30  ;;  %16720 = vmatprep.subr.msk.mxu1 %vm707_vm0, %v19539_v30 }
 0x1cf   : > { %16708 = vmatmul.mubr.msk.f32.vlgmr.msra.gmra.mrb[12].mxu0 %vm700_vm1, %v18902_v0  ;;  %16713 = vmatmul.mubr.msk.f32.vlgmr.msra.gmra.mrb[12].mxu1 %vm700_vm1, %v18905_v1  ;;  %v15248_v0 = vld [vmem:[%s18477_s15 + $0x169] sm:$0xff]  ;;  %v15247_v1 = vld [vmem:[%s18477_s15 + $0x159] sm:$0xff] }
 0x1d0   : > { %16716 = vmatpush3.msk.msra.mxu0 %vm707_vm0, %v19539_v30  ;;  %16717 = vmatprep.mubr.msk.f32.mxu0 %vm700_vm1, %v19254_v35  ;;  %v15253_v35 = vld [vmem:[%s18477_s15 + $0x1a1] sm:$0xff] }
 0x1d1   : > { %16721 = vmatpush3.msk.msra.mxu1 %vm707_vm0, %v19539_v30  ;;  %16722 = vmatprep.mubr.msk.f32.mxu1 %vm700_vm1, %v15172_v28  ;;  %v15329_v30 = vld [vmem:[%s18477_s15 + $0x172] sm:$0xff]  ;;  %v15332_v28 = vld [vmem:[%s18477_s15 + $0x19a] sm:$0xff] }
 0x1d2   : > { %16725 = vmatprep.subr.msk.mxu0 %vm707_vm0, %v19671_v38  ;;  %16730 = vmatprep.subr.msk.mxu1 %vm707_vm0, %v19671_v38 }
 0x1d3   : > { %16718 = vmatmul.mubr.msk.f32.vlgmr.msra.gmra.mrb[14].mxu0 %vm700_vm1, %v19261_v37  ;;  %16723 = vmatmul.mubr.msk.f32.vlgmr.msra.gmra.mrb[14].mxu1 %vm700_vm1, %v15173_v31  ;;  %v19801_v37 = vld [vmem:[#allocation2 + $0x20] sm:$0xf] }
 0x1d4   : > { %16726 = vmatpush3.msk.msra.mxu0 %vm707_vm0, %v19671_v38  ;;  %16727 = vmatprep.mubr.msk.f32.mxu0 %vm700_vm1, %v15222_v39  ;;  %v15333_v31 = vld [vmem:[%s18477_s15 + $0x1a2] sm:$0xff] }
 0x1d5   : > { %16731 = vmatpush3.msk.msra.mxu1 %vm707_vm0, %v19671_v38  ;;  %16732 = vmatprep.mubr.msk.f32.mxu1 %vm700_vm1, %v15224_v40  ;;  %v12975_v39 = vld [vmem:[%s20876_s3 + $0x48] sm:$0xff] }
 0x1d6   : > { %16735 = vmatprep.subr.msk.mxu0 %vm707_vm0, %v19671_v38  ;;  %16740 = vmatprep.subr.msk.mxu1 %vm707_vm0, %v19671_v38 }
 0x1d7   : > { %16728 = vmatmul.mubr.msk.f32.vlgmr.msra.gmra.mrb[0].mxu0 %vm700_vm1, %v15223_v41  ;;  %16733 = vmatmul.mubr.msk.f32.vlgmr.msra.gmra.mrb[0].mxu1 %vm700_vm1, %v15225_v42  ;;  %v12977_v41 = vld [vmem:[%s20876_s3 + $0x58] sm:$0xff]  ;;  %v12974_v42 = vld [vmem:[%s20876_s3 + $0x40] sm:$0xff] }
 0x1d8   : > { %16736 = vmatpush3.msk.msra.mxu0 %vm707_vm0, %v19671_v38  ;;  %16737 = vmatprep.mubr.msk.f32.mxu0 %vm700_vm1, %v15226_v43 }
 0x1d9   : > { %16741 = vmatpush3.msk.msra.mxu1 %vm707_vm0, %v19671_v38  ;;  %16742 = vmatprep.mubr.msk.f32.mxu1 %vm700_vm1, %v15228_v44 }
 0x1da   : > { %16745 = vmatprep.subr.msk.mxu0 %vm707_vm0, %v19671_v38  ;;  %16750 = vmatprep.subr.msk.mxu1 %vm707_vm0, %v19671_v38 }
 0x1db   : > { %16738 = vmatmul.mubr.msk.f32.vlgmr.msra.gmra.mrb[2].mxu0 %vm700_vm1, %v15227_v45  ;;  %16743 = vmatmul.mubr.msk.f32.vlgmr.msra.gmra.mrb[2].mxu1 %vm700_vm1, %v15229_v46  ;;  %v12968_v45 = vld [vmem:[%s20876_s3 + $0x10] sm:$0xff] }
 0x1dc   : > { %16746 = vmatpush3.msk.msra.mxu0 %vm707_vm0, %v19671_v38  ;;  %16747 = vmatprep.mubr.msk.f32.mxu0 %vm700_vm1, %v15230_v47  ;;  %v12976_v46 = vld [vmem:[%s20876_s3 + $0x50] sm:$0xff] }
 0x1dd   : > { %16751 = vmatpush3.msk.msra.mxu1 %vm707_vm0, %v19671_v38  ;;  %16752 = vmatprep.mubr.msk.f32.mxu1 %vm700_vm1, %v15232_v48  ;;  %v17059_v47 = vpack.c.bf16 %v12976_v46, %v12968_v45  ;;  %v12983_v48 = vld [vmem:[%s20876_s3 + $0x88] sm:$0xff]  ;;  %v13065_v46 = vld [vmem:[%s20876_s3 + $0x318] sm:$0xff] }
 0x1de   : > { %16755 = vmatprep.subr.msk.mxu0 %vm707_vm0, %v19671_v38  ;;  %16760 = vmatprep.subr.msk.mxu1 %vm707_vm0, %v19671_v38  ;;  %v13071_v45 = vld [vmem:[%s20876_s3 + $0x348] sm:$0xff] }
 0x1df   : > { %16748 = vmatmul.mubr.msk.f32.vlgmr.msra.gmra.mrb[4].mxu0 %vm700_vm1, %v15231_v49  ;;  %16753 = vmatmul.mubr.msk.f32.vlgmr.msra.gmra.mrb[4].mxu1 %vm700_vm1, %v15233_v50  ;;  %v12991_v49 = vld [vmem:[%s20876_s3 + $0xc8] sm:$0xff]  ;;  %v12985_v50 = vld [vmem:[%s20876_s3 + $0x98] sm:$0xff] }
 0x1e0   : > { %16756 = vmatpush3.msk.msra.mxu0 %vm707_vm0, %v19671_v38  ;;  %16757 = vmatprep.mubr.msk.f32.mxu0 %vm700_vm1, %v15234_v51  ;;  %v17029_v51 = vpack.c.bf16 %v12991_v49, %v12983_v48  ;;  %v13073_v48 = vld [vmem:[%s20876_s3 + $0x358] sm:$0xff]  ;;  %v13062_v49 = vld [vmem:[%s20876_s3 + $0x300] sm:$0xff] }
 0x1e1   : > { %16761 = vmatpush3.msk.msra.mxu1 %vm707_vm0, %v19671_v38  ;;  %16762 = vmatprep.mubr.msk.f32.mxu1 %vm700_vm1, %v15236_v52  ;;  %v12993_v52 = vld [vmem:[%s20876_s3 + $0xd8] sm:$0xff] }
 0x1e2   : > { %16765 = vmatprep.subr.msk.mxu0 %vm707_vm0, %v19671_v38  ;;  %16770 = vmatprep.subr.msk.mxu1 %vm707_vm0, %v19671_v38 }
 0x1e3   : > { %16758 = vmatmul.mubr.msk.f32.vlgmr.msra.gmra.mrb[6].mxu0 %vm700_vm1, %v15235_v53  ;;  %16763 = vmatmul.mubr.msk.f32.vlgmr.msra.gmra.mrb[6].mxu1 %vm700_vm1, %v15237_v54  ;;  %v12982_v53 = vld [vmem:[%s20876_s3 + $0x80] sm:$0xff] }
 0x1e4   : > { %16766 = vmatpush3.msk.msra.mxu0 %vm707_vm0, %v19671_v38  ;;  %16767 = vmatprep.mubr.msk.f32.mxu0 %vm700_vm1, %v15238_v55  ;;  %v12990_v54 = vld [vmem:[%s20876_s3 + $0xc0] sm:$0xff]  ;;  %v17061_v55 = vpack.c.bf16 %v12993_v52, %v12985_v50 }
 0x1e5   : > { %16771 = vmatpush3.msk.msra.mxu1 %vm707_vm0, %v19671_v38  ;;  %16772 = vmatprep.mubr.msk.f32.mxu1 %vm700_vm1, %v15240_v56  ;;  %v17031_v56 = vpack.c.bf16 %v12990_v54, %v12982_v53  ;;  %v13070_v50 = vld [vmem:[%s20876_s3 + $0x340] sm:$0xff]  ;;  %v13064_v53 = vld [vmem:[%s20876_s3 + $0x310] sm:$0xff] }
 0x1e6   : > { %16775 = vmatprep.subr.msk.mxu0 %vm707_vm0, %v19671_v38  ;;  %16780 = vmatprep.subr.msk.mxu1 %vm707_vm0, %v19671_v38  ;;  %v17051_v52 = vpack.c.bf16 %v13070_v50, %v13062_v49  ;;  %v13072_v54 = vld [vmem:[%s20876_s3 + $0x350] sm:$0xff] }
 0x1e7   : > { %16768 = vmatmul.mubr.msk.f32.vlgmr.msra.gmra.mrb[8].mxu0 %vm700_vm1, %v15239_v57  ;;  %16773 = vmatmul.mubr.msk.f32.vlgmr.msra.gmra.mrb[8].mxu1 %vm700_vm1, %v15241_v58  ;;  %v12984_v57 = vld [vmem:[%s20876_s3 + $0x90] sm:$0xff] }
 0x1e8   : > { %16776 = vmatpush3.msk.msra.mxu0 %vm707_vm0, %v19671_v38  ;;  %16777 = vmatprep.mubr.msk.f32.mxu0 %vm700_vm1, %v15242_v59  ;;  %v12992_v58 = vld [vmem:[%s20876_s3 + $0xd0] sm:$0xff] }
 0x1e9   : > { %16781 = vmatpush3.msk.msra.mxu1 %vm707_vm0, %v19671_v38  ;;  %16782 = vmatprep.mubr.msk.f32.mxu1 %vm700_vm1, %v15244_v60  ;;  %v17063_v59 = vpack.c.bf16 %v12992_v58, %v12984_v57  ;;  %v12999_v60 = vld [vmem:[%s20876_s3 + $0x108] sm:$0xff]  ;;  %v13081_v58 = vld [vmem:[%s20876_s3 + $0x398] sm:$0xff] }
 0x1ea   : > { %16785 = vmatprep.subr.msk.mxu0 %vm707_vm0, %v19671_v38  ;;  %16790 = vmatprep.subr.msk.mxu1 %vm707_vm0, %v19671_v38  ;;  %v13087_v57 = vld [vmem:[%s20876_s3 + $0x3c8] sm:$0xff] }
 0x1eb   : > { %16778 = vmatmul.mubr.msk.f32.vlgmr.msra.gmra.mrb[10].mxu0 %vm700_vm1, %v15243_v61  ;;  %16783 = vmatmul.mubr.msk.f32.vlgmr.msra.gmra.mrb[10].mxu1 %vm700_vm1, %v15245_v62  ;;  %v13007_v61 = vld [vmem:[%s20876_s3 + $0x148] sm:$0xff]  ;;  %v13001_v62 = vld [vmem:[%s20876_s3 + $0x118] sm:$0xff] }
 0x1ec   : > { %16786 = vmatpush3.msk.msra.mxu0 %vm707_vm0, %v19671_v38  ;;  %16787 = vmatprep.mubr.msk.f32.mxu0 %vm700_vm1, %v15246_v63  ;;  %v17033_v63 = vpack.c.bf16 %v13007_v61, %v12999_v60  ;;  %v13089_v60 = vld [vmem:[%s20876_s3 + $0x3d8] sm:$0xff]  ;;  %v13078_v61 = vld [vmem:[%s20876_s3 + $0x380] sm:$0xff] }
 0x1ed   : > { %16791 = vmatpush3.msk.msra.mxu1 %vm707_vm0, %v19671_v38  ;;  %16792 = vmatprep.mubr.msk.f32.mxu1 %vm700_vm1, %v15248_v0  ;;  %v13009_v0 = vld [vmem:[%s20876_s3 + $0x158] sm:$0xff] }
 0x1ee   : > { %16795 = vmatprep.subr.msk.mxu0 %vm707_vm0, %v19671_v38  ;;  %16800 = vmatprep.subr.msk.mxu1 %vm707_vm0, %v19671_v38 }
 0x1ef   : > { %16788 = vmatmul.mubr.msk.f32.vlgmr.msra.gmra.mrb[12].mxu0 %vm700_vm1, %v15247_v1  ;;  %16793 = vmatmul.mubr.msk.f32.vlgmr.msra.gmra.mrb[12].mxu1 %vm700_vm1, %v15249_v36  ;;  %v12998_v1 = vld [vmem:[%s20876_s3 + $0x100] sm:$0xff] }
 0x1f0   : > { %16796 = vmatpush3.msk.msra.mxu0 %vm707_vm0, %v19671_v38  ;;  %16797 = vmatprep.mubr.msk.f32.mxu0 %vm700_vm1, %v19390_v5  ;;  %v15303_v5 = vld [vmem:[%s18477_s15 + $0x3a] sm:$0xff] }
 0x1f1   : > { %16801 = vmatpush3.msk.msra.mxu1 %vm707_vm0, %v19671_v38  ;;  %16802 = vmatprep.mubr.msk.f32.mxu1 %vm700_vm1, %v15252_v33  ;;  %v12967_v38 = vld [vmem:[%s20876_s3 + $0x8] sm:$0xff]  ;;  %v13006_v36 = vld [vmem:[%s20876_s3 + $0x140] sm:$0xff]  ;;  %v17065_v33 = vpack.c.bf16 %v13009_v0, %v13001_v62  ;;  %v17085_v0 = vpack.c.bf16 %v13089_v60, %v13081_v58 }
 0x1f2   : > { %16805 = vmatprep.subr.msk.mxu0 %vm707_vm0, %v19801_v37  ;;  %16810 = vmatprep.subr.msk.mxu1 %vm707_vm0, %v19801_v37  ;;  %v17025_v40 = vpack.c.bf16 %v12975_v39, %v12967_v38  ;;  %v13057_v38 = vld [vmem:[%s20876_s3 + $0x2d8] sm:$0xff]  ;;  %v13046_v39 = vld [vmem:[%s20876_s3 + $0x280] sm:$0xff] }
 0x1f3   : > { %16798 = vmatmul.mubr.msk.f32.vlgmr.msra.gmra.mrb[14].mxu0 %vm700_vm1, %v19397_v6  ;;  %16803 = vmatmul.mubr.msk.f32.vlgmr.msra.gmra.mrb[14].mxu1 %vm700_vm1, %v15253_v35  ;;  %v15306_v6 = vld [vmem:[%s18477_s15 + $0x62] sm:$0xff]  ;;  %v17035_v35 = vpack.c.bf16 %v13006_v36, %v12998_v1  ;;  %v13080_v36 = vld [vmem:[%s20876_s3 + $0x390] sm:$0xff] }
 0x1f4   : > { %16806 = vmatpush3.msk.msra.mxu0 %vm707_vm0, %v19801_v37  ;;  %16807 = vmatprep.mubr.msk.f32.mxu0 %vm700_vm1, %v15302_v8  ;;  %v13008_v8 = vld [vmem:[%s20876_s3 + $0x150] sm:$0xff]  ;;  %v13086_v62 = vld [vmem:[%s20876_s3 + $0x3c0] sm:$0xff] }
 0x1f5   : > { %16811 = vmatpush3.msk.msra.mxu1 %vm707_vm0, %v19801_v37  ;;  %16812 = vmatprep.mubr.msk.f32.mxu1 %vm700_vm1, %v15304_v10  ;;  %v17055_v1 = vpack.c.bf16 %v13086_v62, %v13078_v61 }
 0x1f6   : > { %16815 = vmatprep.subr.msk.mxu0 %vm707_vm0, %v19801_v37  ;;  %16820 = vmatprep.subr.msk.mxu1 %vm707_vm0, %v19801_v37 }
 0x1f7   : > { %16808 = vmatmul.mubr.msk.f32.vlgmr.msra.gmra.mrb[0].mxu0 %vm700_vm1, %v15303_v5  ;;  %16813 = vmatmul.mubr.msk.f32.vlgmr.msra.gmra.mrb[0].mxu1 %vm700_vm1, %v15305_v11  ;;  %v13015_v5 = vld [vmem:[%s20876_s3 + $0x188] sm:$0xff] }
 0x1f8   : > { %16816 = vmatpush3.msk.msra.mxu0 %vm707_vm0, %v19801_v37  ;;  %16817 = vmatprep.mubr.msk.f32.mxu0 %vm700_vm1, %v15306_v6  ;;  %v13023_v11 = vld [vmem:[%s20876_s3 + $0x1c8] sm:$0xff]  ;;  %v13017_v6 = vld [vmem:[%s20876_s3 + $0x198] sm:$0xff] }
 0x1f9   : > { %16821 = vmatpush3.msk.msra.mxu1 %vm707_vm0, %v19801_v37  ;;  %16822 = vmatprep.mubr.msk.f32.mxu1 %vm700_vm1, %v15308_v12  ;;  %v17037_v12 = vpack.c.bf16 %v13023_v11, %v13015_v5  ;;  %v12981_v5 = vld [vmem:[%s20876_s3 + $0x78] sm:$0xff] }
 0x1fa   : > { %16825 = vmatprep.subr.msk.mxu0 %vm707_vm0, %v19801_v37  ;;  %16830 = vmatprep.subr.msk.mxu1 %vm707_vm0, %v19801_v37 }
 0x1fb   : > { %16818 = vmatmul.mubr.msk.f32.vlgmr.msra.gmra.mrb[2].mxu0 %vm700_vm1, %v15307_v13  ;;  %16823 = vmatmul.mubr.msk.f32.vlgmr.msra.gmra.mrb[2].mxu1 %vm700_vm1, %v15309_v14  ;;  %v13025_v13 = vld [vmem:[%s20876_s3 + $0x1d8] sm:$0xff]  ;;  %v13014_v14 = vld [vmem:[%s20876_s3 + $0x180] sm:$0xff] }
 0x1fc   : > { %16826 = vmatpush3.msk.msra.mxu0 %vm707_vm0, %v19801_v37  ;;  %16827 = vmatprep.mubr.msk.f32.mxu0 %vm700_vm1, %v15310_v15  ;;  %v13022_v15 = vld [vmem:[%s20876_s3 + $0x1c0] sm:$0xff] }
 0x1fd   : > { %16831 = vmatpush3.msk.msra.mxu1 %vm707_vm0, %v19801_v37  ;;  %16832 = vmatprep.mubr.msk.f32.mxu1 %vm700_vm1, %v15312_v16  ;;  %v17069_v16 = vpack.c.bf16 %v13025_v13, %v13017_v6 }
 0x1fe   : > { %16835 = vmatprep.subr.msk.mxu0 %vm707_vm0, %v19801_v37  ;;  %16840 = vmatprep.subr.msk.mxu1 %vm707_vm0, %v19801_v37 }
 0x1ff   : > { %16828 = vmatmul.mubr.msk.f32.vlgmr.msra.gmra.mrb[4].mxu0 %vm700_vm1, %v15311_v17  ;;  %16833 = vmatmul.mubr.msk.f32.vlgmr.msra.gmra.mrb[4].mxu1 %vm700_vm1, %v15313_v18  ;;  %v17039_v17 = vpack.c.bf16 %v13022_v15, %v13014_v14  ;;  %v13016_v18 = vld [vmem:[%s20876_s3 + $0x190] sm:$0xff] }
 0x200   : > { %16836 = vmatpush3.msk.msra.mxu0 %vm707_vm0, %v19801_v37  ;;  %16837 = vmatprep.mubr.msk.f32.mxu0 %vm700_vm1, %v15314_v19  ;;  %v13024_v19 = vld [vmem:[%s20876_s3 + $0x1d0] sm:$0xff] }
 0x201   : > { %16841 = vmatpush3.msk.msra.mxu1 %vm707_vm0, %v19801_v37  ;;  %16842 = vmatprep.mubr.msk.f32.mxu1 %vm700_vm1, %v15316_v20  ;;  %v17071_v20 = vpack.c.bf16 %v13024_v19, %v13016_v18 }
 0x202   : > { %16845 = vmatprep.subr.msk.mxu0 %vm707_vm0, %v19801_v37  ;;  %16850 = vmatprep.subr.msk.mxu1 %vm707_vm0, %v19801_v37 }
 0x203   : > { %16838 = vmatmul.mubr.msk.f32.vlgmr.msra.gmra.mrb[6].mxu0 %vm700_vm1, %v15315_v21  ;;  %16843 = vmatmul.mubr.msk.f32.vlgmr.msra.gmra.mrb[6].mxu1 %vm700_vm1, %v15317_v22  ;;  %v13031_v21 = vld [vmem:[%s20876_s3 + $0x208] sm:$0xff] }
 0x204   : > { %16846 = vmatpush3.msk.msra.mxu0 %vm707_vm0, %v19801_v37  ;;  %16847 = vmatprep.mubr.msk.f32.mxu0 %vm700_vm1, %v15318_v23  ;;  %v13039_v22 = vld [vmem:[%s20876_s3 + $0x248] sm:$0xff]  ;;  %v13033_v23 = vld [vmem:[%s20876_s3 + $0x218] sm:$0xff] }
 0x205   : > { %16851 = vmatpush3.msk.msra.mxu1 %vm707_vm0, %v19801_v37  ;;  %16852 = vmatprep.mubr.msk.f32.mxu1 %vm700_vm1, %v15320_v24  ;;  %v17041_v24 = vpack.c.bf16 %v13039_v22, %v13031_v21 }
 0x206   : > { %16855 = vmatprep.subr.msk.mxu0 %vm707_vm0, %v19801_v37  ;;  %16860 = vmatprep.subr.msk.mxu1 %vm707_vm0, %v19801_v37 }
 0x207   : > { %16848 = vmatmul.mubr.msk.f32.vlgmr.msra.gmra.mrb[8].mxu0 %vm700_vm1, %v15319_v25  ;;  %16853 = vmatmul.mubr.msk.f32.vlgmr.msra.gmra.mrb[8].mxu1 %vm700_vm1, %v15321_v26  ;;  %v13041_v25 = vld [vmem:[%s20876_s3 + $0x258] sm:$0xff]  ;;  %v13030_v26 = vld [vmem:[%s20876_s3 + $0x200] sm:$0xff] }
 0x208   : > { %16856 = vmatpush3.msk.msra.mxu0 %vm707_vm0, %v19801_v37  ;;  %16857 = vmatprep.mubr.msk.f32.mxu0 %vm700_vm1, %v15322_v27  ;;  %v13038_v27 = vld [vmem:[%s20876_s3 + $0x240] sm:$0xff] }
 0x209   : > { %16861 = vmatpush3.msk.msra.mxu1 %vm707_vm0, %v19801_v37  ;;  %16862 = vmatprep.mubr.msk.f32.mxu1 %vm700_vm1, %v15324_v29  ;;  %v17073_v29 = vpack.c.bf16 %v13041_v25, %v13033_v23 }
 0x20a   : > { %16865 = vmatprep.subr.msk.mxu0 %vm707_vm0, %v19801_v37  ;;  %16870 = vmatprep.subr.msk.mxu1 %vm707_vm0, %v19801_v37 }
 0x20b   : > { %16858 = vmatmul.mubr.msk.f32.vlgmr.msra.gmra.mrb[10].mxu0 %vm700_vm1, %v15323_v34  ;;  %16863 = vmatmul.mubr.msk.f32.vlgmr.msra.gmra.mrb[10].mxu1 %vm700_vm1, %v15325_v3  ;;  %v17043_v34 = vpack.c.bf16 %v13038_v27, %v13030_v26  ;;  %v13032_v3 = vld [vmem:[%s20876_s3 + $0x210] sm:$0xff] }
 0x20c   : > { %16866 = vmatpush3.msk.msra.mxu0 %vm707_vm0, %v19801_v37  ;;  %16867 = vmatprep.mubr.msk.f32.mxu0 %vm700_vm1, %v15326_v2  ;;  %v13040_v2 = vld [vmem:[%s20876_s3 + $0x250] sm:$0xff] }
 0x20d   : > { %16871 = vmatpush3.msk.msra.mxu1 %vm707_vm0, %v19801_v37  ;;  %16872 = vmatprep.mubr.msk.f32.mxu1 %vm700_vm1, %v15328_v4  ;;  %v17075_v4 = vpack.c.bf16 %v13040_v2, %v13032_v3 }
 0x20e   : > { %16875 = vmatprep.subr.msk.mxu0 %vm707_vm0, %v19801_v37  ;;  %16880 = vmatprep.subr.msk.mxu1 %vm707_vm0, %v19801_v37 }
 0x20f   : > { %16868 = vmatmul.mubr.msk.f32.vlgmr.msra.gmra.mrb[12].mxu0 %vm700_vm1, %v15327_v7  ;;  %16873 = vmatmul.mubr.msk.f32.vlgmr.msra.gmra.mrb[12].mxu1 %vm700_vm1, %v15329_v30  ;;  %v13047_v7 = vld [vmem:[%s20876_s3 + $0x288] sm:$0xff] }
 0x210   : > { %16876 = vmatpush3.msk.msra.mxu0 %vm707_vm0, %v19801_v37  ;;  %16877 = vmatprep.mubr.msk.f32.mxu0 %vm700_vm1, %v19526_v32  ;;  %v12969_v32 = vld [vmem:[%s20876_s3 + $0x18] sm:$0xff]  ;;  %v13055_v30 = vld [vmem:[%s20876_s3 + $0x2c8] sm:$0xff] }
 0x211   : > { %16881 = vmatpush3.msk.msra.mxu1 %vm707_vm0, %v19801_v37  ;;  %16882 = vmatprep.mubr.msk.f32.mxu1 %vm700_vm1, %v15332_v28  ;;  %v17057_v43 = vpack.c.bf16 %v12977_v41, %v12969_v32  ;;  %v13000_v37 = vld [vmem:[%s20876_s3 + $0x110] sm:$0xff]  ;;  %v13049_v28 = vld [vmem:[%s20876_s3 + $0x298] sm:$0xff]  ;;  %v13054_v32 = vld [vmem:[%s20876_s3 + $0x2c0] sm:$0xff] }
 0x212   : > { %17026 = vmatprep.subr.bf16.mxu0 %v17025_v40  ;;  %v17067_v10 = vpack.c.bf16 %v13008_v8, %v13000_v37  ;;  %v17077_v40 = vpack.c.bf16 %v13057_v38, %v13049_v28  ;;  %v17047_v41 = vpack.c.bf16 %v13054_v32, %v13046_v39  ;;  %v12979_v8 = vld [vmem:[%s20876_s3 + $0x68] sm:$0xff] }
 0x213   : > { %16878 = vmatmul.mubr.msk.f32.vlgmr.msra.gmra.mrb[14].mxu0 %vm700_vm1, %v19533_v9  ;;  %16883 = vmatmul.mubr.msk.f32.vlgmr.msra.gmra.mrb[14].mxu1 %vm700_vm1, %v15333_v31  ;;  %v12966_v9 = vld [vmem:[%s20876_s3] sm:$0xff]  ;;  %v17045_v31 = vpack.c.bf16 %v13055_v30, %v13047_v7 }
 0x214   : > { %v17027_v44 = vpack.c.bf16 %v12974_v42, %v12966_v9  ;;  %17058 = vmatprep.subr.bf16.mxu1 %v17057_v43  ;;  %v13048_v9 = vld [vmem:[%s20876_s3 + $0x290] sm:$0xff] }
 0x215   : > { %17060 = vmatpush1.bf16.msra.mxu1 %v17059_v47  ;;  %v13056_v42 = vld [vmem:[%s20876_s3 + $0x2d0] sm:$0xff] }
 0x216   : > { %17028 = vmatpush1.bf16.msra.mxu0 %v17027_v44  ;;  %17062 = vmatprep.subr.bf16.mxu1 %v17061_v55  ;;  %v17079_v43 = vpack.c.bf16 %v13056_v42, %v13048_v9  ;;  %v13063_v44 = vld [vmem:[%s20876_s3 + $0x308] sm:$0xff]  ;;  %v17083_v55 = vpack.c.bf16 %v13072_v54, %v13064_v53 }
 0x217   : > { %17030 = vmatprep.subr.bf16.mxu0 %v17029_v51  ;;  %v17049_v47 = vpack.c.bf16 %v13071_v45, %v13063_v44  ;;  %v17081_v51 = vpack.c.bf16 %v13073_v48, %v13065_v46 }
 0x219   : > { %17064 = vmatpush1.bf16.msra.mxu1 %v17063_v59 }
 0x21a   : > { %17032 = vmatpush1.bf16.msra.mxu0 %v17031_v56  ;;  %17066 = vmatprep.subr.bf16.mxu1 %v17065_v33  ;;  %v13079_v56 = vld [vmem:[%s20876_s3 + $0x388] sm:$0xff]  ;;  %v13088_v33 = vld [vmem:[%s20876_s3 + $0x3d0] sm:$0xff] }
 0x21b   : > { %17034 = vmatprep.subr.bf16.mxu0 %v17033_v63  ;;  %v17053_v59 = vpack.c.bf16 %v13087_v57, %v13079_v56  ;;  %v18146_v63 = vmov 0.0   ;;  %v17087_v37 = vpack.c.bf16 %v13088_v33, %v13080_v36 }
 0x21c   : > { %13200 = vmatprep.mubr.f32.mxu0 %v18146_v63  ;;  %13271 = vmatprep.mubr.f32.mxu1 %v18146_v63 }
 0x21d   : > { %17068 = vmatpush1.bf16.msra.mxu1 %v17067_v10  ;;  %v12973_v10 = vld [vmem:[%s20876_s3 + $0x38] sm:$0xff] }
 0x21e   : > { %17036 = vmatpush1.bf16.msra.mxu0 %v17035_v35  ;;  %17070 = vmatprep.subr.bf16.mxu1 %v17069_v16  ;;  %v12971_v35 = vld [vmem:[%s20876_s3 + $0x28] sm:$0xff]  ;;  %v17121_v6 = vpack.c.bf16 %v12981_v5, %v12973_v10 }
 0x21f   : > { %17038 = vmatprep.subr.bf16.mxu0 %v17037_v12  ;;  %v17089_v11 = vpack.c.bf16 %v12979_v8, %v12971_v35  ;;  %v20146_v12 = vld [vmem:[%s20875_s2] ss:$0 sm:$0xff] }
 0x221   : > { %17072 = vmatpush1.bf16.msra.mxu1 %v17071_v20 }
 0x222   : > { %17040 = vmatpush1.bf16.msra.mxu0 %v17039_v17  ;;  %17074 = vmatprep.subr.bf16.mxu1 %v17073_v29 }
 0x223   : > { %17042 = vmatprep.subr.bf16.mxu0 %v17041_v24 }
 0x225   : > { %17076 = vmatpush1.bf16.msra.mxu1 %v17075_v4 }
 0x226   : > { %17044 = vmatpush1.bf16.msra.mxu0 %v17043_v34  ;;  %17078 = vmatprep.subr.bf16.mxu1 %v17077_v40 }
 0x227   : > { %17046 = vmatprep.subr.bf16.mxu0 %v17045_v31 }
 0x229   : > { %17080 = vmatpush1.bf16.msra.mxu1 %v17079_v43 }
 0x22a   : > { %17048 = vmatpush1.bf16.msra.mxu0 %v17047_v41  ;;  %17082 = vmatprep.subr.bf16.mxu1 %v17081_v51 }
 0x22b   : > { %17050 = vmatprep.subr.bf16.mxu0 %v17049_v47 }
 0x22d   : > { %17084 = vmatpush1.bf16.msra.mxu1 %v17083_v55 }
 0x22e   : > { %17052 = vmatpush1.bf16.msra.mxu0 %v17051_v52  ;;  %17086 = vmatprep.subr.bf16.mxu1 %v17085_v0 }
 0x22f   : > { %17054 = vmatprep.subr.bf16.mxu0 %v17053_v59 }
 0x231   : > { %17088 = vmatpush1.bf16.msra.mxu1 %v17087_v37 }
 0x232   : > { %17056 = vmatpush1.bf16.msra.mxu0 %v17055_v1  ;;  %17122 = vmatprep.subr.bf16.mxu1 %v17121_v6 }
 0x233   : > { %17090 = vmatprep.subr.bf16.mxu0 %v17089_v11 }
 0x2ca   : > { %v16809_v13 = vpop.f32.mrb[0].mxu0  ;;  %v16814_v14 = vpop.f32.mrb[0].mxu1 }
 0x2cb   : > { %v12865_v15 = vadd.f32 %v16809_v13, %v20146_v12  ;;  %v12867_v16 = vadd.f32 %v16814_v14, %v20146_v12  ;;  %v11601_v17 = vpop.f32.mrb[1].mxu0  ;;  %v11682_v18 = vpop.f32.mrb[1].mxu1 }
 0x2cc   : > { %v12864_v19 = vadd.f32 %v20146_v12, %v11601_v17  ;;  %v12866_v20 = vadd.f32 %v20146_v12, %v11682_v18 }
 0x2cd   : > { %v12897_v21 = vmax.f32 %v12865_v15, 0.0  ;;  %v12899_v22 = vmax.f32 %v12867_v16, 0.0 }
 0x2ce   : > { %v12896_v23 = vmax.f32 %v12864_v19, 0.0  ;;  %v12898_v24 = vmax.f32 %v12866_v20, 0.0  ;;  %v16819_v25 = vpop.f32.mrb[2].mxu0  ;;  %v16824_v26 = vpop.f32.mrb[2].mxu1 }
 0x2cf   : > { %v12943_v27 = vadd.f32 %v12899_v22, %v12897_v21  ;;  %v12869_v29 = vadd.f32 %v16819_v25, %v20146_v12  ;;  %v12871_v34 = vadd.f32 %v16824_v26, %v20146_v12  ;;  %v11763_v3 = vpop.f32.mrb[3].mxu0  ;;  %v11844_v2 = vpop.f32.mrb[3].mxu1 }
 0x2d0   : > { %v12928_v4 = vadd.f32 %v12898_v24, %v12896_v23  ;;  %v12868_v7 = vadd.f32 %v20146_v12, %v11763_v3  ;;  %v12870_v30 = vadd.f32 %v20146_v12, %v11844_v2 }
 0x2d1   : > { %v12901_v28 = vmax.f32 %v12869_v29, 0.0  ;;  %v12903_v40 = vmax.f32 %v12871_v34, 0.0 }
 0x2d2   : > { %v12900_v31 = vmax.f32 %v12868_v7, 0.0  ;;  %v16829_v38 = vpop.f32.mrb[4].mxu0  ;;  %v16834_v39 = vpop.f32.mrb[4].mxu1  ;;  %v12902_v45 = vmax.f32 %v12870_v30, 0.0 }
 0x2d3   : > { %v12944_v32 = vadd.f32 %v12943_v27, %v12901_v28  ;;  %v12873_v41 = vadd.f32 %v16829_v38, %v20146_v12  ;;  %v12875_v9 = vadd.f32 %v16834_v39, %v20146_v12  ;;  %v11925_v42 = vpop.f32.mrb[5].mxu0  ;;  %v12006_v43 = vpop.f32.mrb[5].mxu1 }
 0x2d4   : > { %v12929_v44 = vadd.f32 %v12928_v4, %v12900_v31  ;;  %v12872_v46 = vadd.f32 %v20146_v12, %v11925_v42  ;;  %v12874_v47 = vadd.f32 %v20146_v12, %v12006_v43 }
 0x2d5   : > { %v12945_v48 = vadd.f32 %v12944_v32, %v12903_v40  ;;  %v12905_v49 = vmax.f32 %v12873_v41, 0.0  ;;  %v12907_v55 = vmax.f32 %v12875_v9, 0.0 }
 0x2d6   : > { %v12930_v50 = vadd.f32 %v12929_v44, %v12902_v45  ;;  %v12904_v51 = vmax.f32 %v12872_v46, 0.0  ;;  %v16839_v52 = vpop.f32.mrb[6].mxu0  ;;  %v16844_v53 = vpop.f32.mrb[6].mxu1  ;;  %v12906_v61 = vmax.f32 %v12874_v47, 0.0 }
 0x2d7   : > { %v12946_v54 = vadd.f32 %v12945_v48, %v12905_v49  ;;  %v12877_v56 = vadd.f32 %v16839_v52, %v20146_v12  ;;  %v12879_v57 = vadd.f32 %v16844_v53, %v20146_v12  ;;  %v12087_v58 = vpop.f32.mrb[7].mxu0  ;;  %v12168_v59 = vpop.f32.mrb[7].mxu1 }
 0x2d8   : > { %v12931_v60 = vadd.f32 %v12930_v50, %v12904_v51  ;;  %v12876_v62 = vadd.f32 %v20146_v12, %v12087_v58  ;;  %v12878_v0 = vadd.f32 %v20146_v12, %v12168_v59 }
 0x2d9   : > { %v12947_v1 = vadd.f32 %v12946_v54, %v12907_v55  ;;  %v12909_v36 = vmax.f32 %v12877_v56, 0.0  ;;  %v12911_v5 = vmax.f32 %v12879_v57, 0.0 }
 0x2da   : > { %v12932_v33 = vadd.f32 %v12931_v60, %v12906_v61  ;;  %v12908_v35 = vmax.f32 %v12876_v62, 0.0  ;;  %v16849_v37 = vpop.f32.mrb[8].mxu0  ;;  %v16854_v8 = vpop.f32.mrb[8].mxu1  ;;  %v12910_v16 = vmax.f32 %v12878_v0, 0.0 }
 0x2db   : > { %v12948_v10 = vadd.f32 %v12947_v1, %v12909_v36  ;;  %v12881_v11 = vadd.f32 %v16849_v37, %v20146_v12  ;;  %v12883_v6 = vadd.f32 %v16854_v8, %v20146_v12  ;;  %v12249_v13 = vpop.f32.mrb[9].mxu0  ;;  %v12330_v14 = vpop.f32.mrb[9].mxu1 }
 0x2dc   : > { %v12933_v15 = vadd.f32 %v12932_v33, %v12908_v35  ;;  %v12880_v17 = vadd.f32 %v20146_v12, %v12249_v13  ;;  %v12882_v18 = vadd.f32 %v20146_v12, %v12330_v14 }
 0x2dd   : > { %v12949_v19 = vadd.f32 %v12948_v10, %v12911_v5  ;;  %v12913_v20 = vmax.f32 %v12881_v11, 0.0  ;;  %v12915_v26 = vmax.f32 %v12883_v6, 0.0 }
 0x2de   : > { %v12934_v21 = vadd.f32 %v12933_v15, %v12910_v16  ;;  %v12912_v22 = vmax.f32 %v12880_v17, 0.0  ;;  %v16859_v23 = vpop.f32.mrb[10].mxu0  ;;  %v16864_v24 = vpop.f32.mrb[10].mxu1  ;;  %v12914_v4 = vmax.f32 %v12882_v18, 0.0 }
 0x2df   : > { %v12950_v25 = vadd.f32 %v12949_v19, %v12913_v20  ;;  %v12885_v27 = vadd.f32 %v16859_v23, %v20146_v12  ;;  %v12887_v29 = vadd.f32 %v16864_v24, %v20146_v12  ;;  %v12411_v34 = vpop.f32.mrb[11].mxu0  ;;  %v12492_v3 = vpop.f32.mrb[11].mxu1  ;;  %v12970_v20 = vld [vmem:[%s20876_s3 + $0x20] sm:$0xff]  ;;  %v12980_v23 = vld [vmem:[%s20876_s3 + $0x70] sm:$0xff]  ;;  %v12987_v24 = vld [vmem:[%s20876_s3 + $0xa8] sm:$0xff] }
 0x2e0   : > { %v12935_v2 = vadd.f32 %v12934_v21, %v12912_v22  ;;  %v12884_v7 = vadd.f32 %v20146_v12, %v12411_v34  ;;  %v12886_v30 = vadd.f32 %v20146_v12, %v12492_v3  ;;  %v12972_v22 = vld [vmem:[%s20876_s3 + $0x30] sm:$0xff] }
 0x2e1   : > { %v12951_v28 = vadd.f32 %v12950_v25, %v12915_v26  ;;  %v12917_v31 = vmax.f32 %v12885_v27, 0.0  ;;  %v12919_v9 = vmax.f32 %v12887_v29, 0.0  ;;  %v12995_v25 = vld [vmem:[%s20876_s3 + $0xe8] sm:$0xff]  ;;  %v12989_v26 = vld [vmem:[%s20876_s3 + $0xb8] sm:$0xff]  ;;  %v17123_v3 = vpack.c.bf16 %v12980_v23, %v12972_v22  ;;  %v13060_v22 = vld [vmem:[%s20876_s3 + $0x2f0] sm:$0xff] }
 0x2e2   : > { %v12936_v38 = vadd.f32 %v12935_v2, %v12914_v4  ;;  %v12916_v39 = vmax.f32 %v12884_v7, 0.0  ;;  %v16869_v32 = vpop.f32.mrb[12].mxu0  ;;  %v16874_v40 = vpop.f32.mrb[12].mxu1  ;;  %v12918_v47 = vmax.f32 %v12886_v30, 0.0  ;;  %v12997_v27 = vld [vmem:[%s20876_s3 + $0xf8] sm:$0xff]  ;;  %v12986_v2 = vld [vmem:[%s20876_s3 + $0xa0] sm:$0xff]  ;;  %v17093_v30 = vpack.c.bf16 %v12995_v25, %v12987_v24 }
 0x2e3   : > { %v12952_v41 = vadd.f32 %v12951_v28, %v12917_v31  ;;  %v12889_v42 = vadd.f32 %v16869_v32, %v20146_v12  ;;  %v12891_v43 = vadd.f32 %v16874_v40, %v20146_v12  ;;  %v12573_v44 = vpop.f32.mrb[13].mxu0  ;;  %v12654_v45 = vpop.f32.mrb[13].mxu1  ;;  %v12994_v4 = vld [vmem:[%s20876_s3 + $0xe0] sm:$0xff]  ;;  %v17125_v28 = vpack.c.bf16 %v12997_v27, %v12989_v26  ;;  %v12988_v31 = vld [vmem:[%s20876_s3 + $0xb0] sm:$0xff]  ;;  %v13011_v32 = vld [vmem:[%s20876_s3 + $0x168] sm:$0xff] }
 0x2e4   : > { %v12937_v46 = vadd.f32 %v12936_v38, %v12916_v39  ;;  %v12888_v48 = vadd.f32 %v20146_v12, %v12573_v44  ;;  %v12890_v49 = vadd.f32 %v20146_v12, %v12654_v45  ;;  %v12996_v38 = vld [vmem:[%s20876_s3 + $0xf0] sm:$0xff]  ;;  %v13003_v39 = vld [vmem:[%s20876_s3 + $0x128] sm:$0xff]  ;;  %v13005_v40 = vld [vmem:[%s20876_s3 + $0x138] sm:$0xff] }
 0x2e5   : > { %v12953_v50 = vadd.f32 %v12952_v41, %v12919_v9  ;;  %v12921_v51 = vmax.f32 %v12889_v42, 0.0  ;;  %v12923_v57 = vmax.f32 %v12891_v43, 0.0  ;;  %v13013_v41 = vld [vmem:[%s20876_s3 + $0x178] sm:$0xff]  ;;  %v17095_v9 = vpack.c.bf16 %v12994_v4, %v12986_v2  ;;  %v13002_v43 = vld [vmem:[%s20876_s3 + $0x120] sm:$0xff]  ;;  %v13067_v23 = vld [vmem:[%s20876_s3 + $0x328] sm:$0xff] }
 0x2e6   : > { %v12938_v52 = vadd.f32 %v12937_v46, %v12918_v47  ;;  %v12920_v53 = vmax.f32 %v12888_v48, 0.0  ;;  %v16879_v54 = vpop.f32.mrb[14].mxu0  ;;  %v16884_v55 = vpop.f32.mrb[14].mxu1  ;;  %v12922_v0 = vmax.f32 %v12890_v49, 0.0  ;;  %v17127_v42 = vpack.c.bf16 %v12996_v38, %v12988_v31  ;;  %v13010_v44 = vld [vmem:[%s20876_s3 + $0x160] sm:$0xff]  ;;  %v13004_v47 = vld [vmem:[%s20876_s3 + $0x130] sm:$0xff] }
 0x2e7   : > { %v12954_v56 = vadd.f32 %v12953_v50, %v12921_v51  ;;  %v12893_v58 = vadd.f32 %v16879_v54, %v20146_v12  ;;  %v12895_v59 = vadd.f32 %v16884_v55, %v20146_v12  ;;  %v12735_v60 = vpop.f32.mrb[15].mxu0  ;;  %v12816_v61 = vpop.f32.mrb[15].mxu1  ;;  %v17097_v45 = vpack.c.bf16 %v13011_v32, %v13003_v39  ;;  %v13012_v48 = vld [vmem:[%s20876_s3 + $0x170] sm:$0xff]  ;;  %v13019_v49 = vld [vmem:[%s20876_s3 + $0x1a8] sm:$0xff]  ;;  %v13021_v51 = vld [vmem:[%s20876_s3 + $0x1b8] sm:$0xff] }
 0x2e8   : > { %v12939_v62 = vadd.f32 %v12938_v52, %v12920_v53  ;;  %v12892_v1 = vadd.f32 %v20146_v12, %v12735_v60  ;;  %v12894_v36 = vadd.f32 %v20146_v12, %v12816_v61  ;;  %v12978_v12 = vld [vmem:[%s20876_s3 + $0x60] sm:$0xff]  ;;  %v17129_v46 = vpack.c.bf16 %v13013_v41, %v13005_v40  ;;  %v13027_v50 = vld [vmem:[%s20876_s3 + $0x1e8] sm:$0xff]  ;;  %v13029_v52 = vld [vmem:[%s20876_s3 + $0x1f8] sm:$0xff] }
 0x2e9   : > { %v12955_v33 = vadd.f32 %v12954_v56, %v12923_v57  ;;  %v12925_v35 = vmax.f32 %v12893_v58, 0.0  ;;  %v12927_v5 = vmax.f32 %v12895_v59, 0.0  ;;  %v17091_v34 = vpack.c.bf16 %v12978_v12, %v12970_v20  ;;  %v13018_v55 = vld [vmem:[%s20876_s3 + $0x1a0] sm:$0xff]  ;;  %v13020_v59 = vld [vmem:[%s20876_s3 + $0x1b0] sm:$0xff]  ;;  %v13035_v61 = vld [vmem:[%s20876_s3 + $0x228] sm:$0xff] }
 0x2ea   : > { %v12940_v37 = vadd.f32 %v12939_v62, %v12922_v0  ;;  %v12924_v8 = vmax.f32 %v12892_v1, 0.0  ;;  %v12926_v6 = vmax.f32 %v12894_v36, 0.0  ;;  %v17099_v53 = vpack.c.bf16 %v13010_v44, %v13002_v43  ;;  %v13026_v56 = vld [vmem:[%s20876_s3 + $0x1e0] sm:$0xff]  ;;  %v13028_v60 = vld [vmem:[%s20876_s3 + $0x1f0] sm:$0xff]  ;;  %v13043_v62 = vld [vmem:[%s20876_s3 + $0x268] sm:$0xff] }
 0x2eb   : > { %v12956_v10 = vadd.f32 %v12955_v33, %v12925_v35  ;;  %v17131_v54 = vpack.c.bf16 %v13012_v48, %v13004_v47  ;;  %v17101_v57 = vpack.c.bf16 %v13027_v50, %v13019_v49  ;;  %v17133_v58 = vpack.c.bf16 %v13029_v52, %v13021_v51  ;;  %v13037_v0 = vld [vmem:[%s20876_s3 + $0x238] sm:$0xff]  ;;  %v13034_v35 = vld [vmem:[%s20876_s3 + $0x220] sm:$0xff]  ;;  %v13075_v24 = vld [vmem:[%s20876_s3 + $0x368] sm:$0xff] }
 0x2ec   : > { %v12941_v11 = vadd.f32 %v12940_v37, %v12924_v8  ;;  %v13045_v1 = vld [vmem:[%s20876_s3 + $0x278] sm:$0xff]  ;;  %v17103_v36 = vpack.c.bf16 %v13026_v56, %v13018_v55  ;;  %v17135_v33 = vpack.c.bf16 %v13028_v60, %v13020_v59  ;;  %v13042_v37 = vld [vmem:[%s20876_s3 + $0x260] sm:$0xff]  ;;  %v17105_v8 = vpack.c.bf16 %v13043_v62, %v13035_v61  ;;  %v13083_v31 = vld [vmem:[%s20876_s3 + $0x3a8] sm:$0xff] }
 0x2ed   : > { %v12957_v13 = vadd.f32 %v12956_v10, %v12927_v5  ;;  %v17137_v10 = vpack.c.bf16 %v13045_v1, %v13037_v0  ;;  %v13036_v5 = vld [vmem:[%s20876_s3 + $0x230] sm:$0xff]  ;;  %v13069_v25 = vld [vmem:[%s20876_s3 + $0x338] sm:$0xff]  ;;  %v17113_v2 = vpack.c.bf16 %v13075_v24, %v13067_v23  ;;  %v13091_v38 = vld [vmem:[%s20876_s3 + $0x3e8] sm:$0xff] }
 0x2ee   : > { %v12942_v14 = vadd.f32 %v12941_v11, %v12926_v6  ;;  %v13044_v11 = vld [vmem:[%s20876_s3 + $0x270] sm:$0xff]  ;;  %v13051_v6 = vld [vmem:[%s20876_s3 + $0x2a8] sm:$0xff]  ;;  %v13077_v26 = vld [vmem:[%s20876_s3 + $0x378] sm:$0xff]  ;;  %v17117_v43 = vpack.c.bf16 %v13091_v38, %v13083_v31 }
 0x2ef   : > { %v17145_v4 = vpack.c.bf16 %v13077_v26, %v13069_v25  ;;  %v13085_v39 = vld [vmem:[%s20876_s3 + $0x3b8] sm:$0xff]  ;;  %v13436_v47 = vld [vmem:[#allocation6 + $0x80] sm:$0xff]  ;;  %v13439_v60 = vld [vmem:[#allocation6 + $0x98] sm:$0xff] }
 0x2f0   : > { %v12958_v15 = vadd.f32 %v12957_v13, %v12942_v14  ;;  %v13059_v13 = vld [vmem:[%s20876_s3 + $0x2e8] sm:$0xff]  ;;  %v13053_v14 = vld [vmem:[%s20876_s3 + $0x2b8] sm:$0xff] }
 0x2f1   : > { %v17109_v20 = vpack.c.bf16 %v13059_v13, %v13051_v6  ;;  %v13093_v32 = vld [vmem:[%s20876_s3 + $0x3f8] sm:$0xff]  ;;  %v13468_v49 = vld [vmem:[#allocation6 + $0x180] sm:$0xff]  ;;  %v13471_v62 = vld [vmem:[#allocation6 + $0x198] sm:$0xff] }
 0x2f2   : > { %v12959_v16 = vrot.slane %v12958_v15, 4  ;;  %v17149_v44 = vpack.c.bf16 %v13093_v32, %v13085_v39  ;;  %v13437_v48 = vld [vmem:[#allocation6 + $0x88] sm:$0xff]  ;;  %v13438_v59 = vld [vmem:[#allocation6 + $0x90] sm:$0xff]  ;;  %v13472_v6 = vld [vmem:[#allocation6 + $0x1a0] sm:$0xff] }
 0x2f3   : > { %v13469_v50 = vld [vmem:[#allocation6 + $0x188] sm:$0xff]  ;;  %v17153_v55 = vpack.c.bf16 %v13437_v48, %v13436_v47  ;;  %v13470_v61 = vld [vmem:[#allocation6 + $0x190] sm:$0xff]  ;;  %v13475_v24 = vld [vmem:[#allocation6 + $0x1b8] sm:$0xff] }
 0x2f4   : > { %v12960_v17 = vadd.f32 %v12959_v16, %v12958_v15  ;;  %v13061_v15 = vld [vmem:[%s20876_s3 + $0x2f8] sm:$0xff]  ;;  %v17107_v16 = vpack.c.bf16 %v13042_v37, %v13034_v35  ;;  %v17185_v56 = vpack.c.bf16 %v13469_v50, %v13468_v49  ;;  %v17157_v35 = vpack.c.bf16 %v13439_v60, %v13438_v59  ;;  %v13428_v32 = vld [vmem:[#allocation6 + $0x40] sm:$0xff]  ;;  %v13479_v47 = vld [vmem:[#allocation6 + $0x1d8] sm:$0xff] }
 0x2f5   : > { %v17141_v12 = vpack.c.bf16 %v13061_v15, %v13053_v14  ;;  %v17189_v37 = vpack.c.bf16 %v13471_v62, %v13470_v61  ;;  %v13473_v13 = vld [vmem:[#allocation6 + $0x1a8] sm:$0xff]  ;;  %v13474_v23 = vld [vmem:[#allocation6 + $0x1b0] sm:$0xff]  ;;  %v13432_v62 = vld [vmem:[#allocation6 + $0x60] sm:$0xff] }
 0x2f6   : > { %v12961_v18 = vrot.slane %v12960_v17, 2  ;;  %v13426_v26 = vld [vmem:[#allocation6 + $0x30] sm:$0xff]  ;;  %v13477_v31 = vld [vmem:[#allocation6 + $0x1c8] sm:$0xff] }
 0x2f7   : > { %v13430_v50 = vld [vmem:[#allocation6 + $0x50] sm:$0xff]  ;;  %v13481_v59 = vld [vmem:[#allocation6 + $0x1e8] sm:$0xff] }
 0x2f8   : > { %v12962_v19 = vadd.f32 %v12961_v18, %v12960_v17  ;;  %v17139_v17 = vpack.c.bf16 %v13044_v11, %v13036_v5  ;;  %v13050_v18 = vld [vmem:[%s20876_s3 + $0x2a0] sm:$0xff]  ;;  %v13440_v5 = vld [vmem:[#allocation6 + $0xa0] sm:$0xff]  ;;  %v13441_v11 = vld [vmem:[#allocation6 + $0xa8] sm:$0xff] }
 0x2fa   : > { %v12963_v21 = vrot.slane %v12962_v19, 1 }
 0x2fc   : > { %v12964_v29 = vadd.f32 %v12963_v21, %v12962_v19  ;;  %v13058_v19 = vld [vmem:[%s20876_s3 + $0x2e0] sm:$0xff]  ;;  %v13052_v21 = vld [vmem:[%s20876_s3 + $0x2b0] sm:$0xff] }
 0x2fd   : > { %v17111_v27 = vpack.c.bf16 %v13058_v19, %v13050_v18  ;;  %v17161_v18 = vpack.c.bf16 %v13441_v11, %v13440_v5  ;;  %v17193_v19 = vpack.c.bf16 %v13473_v13, %v13472_v6  ;;  %v13451_v5 = vld [vmem:[#allocation6 + $0xf8] sm:$0xff]  ;;  %v13482_v11 = vld [vmem:[#allocation6 + $0x1f0] sm:$0xff] }
 0x2fe   : > { %v20210_v7 = vmul.f32 0.00390625, %v12964_v29  ;;  %v17143_v29 = vpack.c.bf16 %v13060_v22, %v13052_v21  ;;  %v13442_v21 = vld [vmem:[#allocation6 + $0xb0] sm:$0xff]  ;;  %v13443_v22 = vld [vmem:[#allocation6 + $0xb8] sm:$0xff] }
 0x2ff   : > { %v13483_v13 = vld [vmem:[#allocation6 + $0x1f8] sm:$0xff] }
 0x300   : > { %13201 = vmatmul.mubr.f32.vlgmr.msra.gmra.mrb[16].mxu0 %v20210_v7  ;;  %13272 = vmatmul.mubr.f32.vlgmr.msra.gmra.mrb[16].mxu1 %v20210_v7 }
 0x301   : > { %17092 = vmatpush1.bf16.msra.mxu0 %v17091_v34  ;;  %17124 = vmatpush1.bf16.msra.mxu1 %v17123_v3  ;;  %v13066_v34 = vld [vmem:[%s20876_s3 + $0x320] sm:$0xff] }
 0x302   : > { %17094 = vmatprep.subr.bf16.mxu0 %v17093_v30  ;;  %17126 = vmatprep.subr.bf16.mxu1 %v17125_v28  ;;  %v13074_v3 = vld [vmem:[%s20876_s3 + $0x360] sm:$0xff]  ;;  %v13068_v30 = vld [vmem:[%s20876_s3 + $0x330] sm:$0xff] }
 0x303   : > { %13342 = vmatprep.mubr.f32.mxu0 %v18146_v63  ;;  %13413 = vmatprep.mubr.f32.mxu1 %v18146_v63  ;;  %v13076_v28 = vld [vmem:[%s20876_s3 + $0x370] sm:$0xff]  ;;  %v17115_v40 = vpack.c.bf16 %v13074_v3, %v13066_v34  ;;  %v17197_v34 = vpack.c.bf16 %v13475_v24, %v13474_v23  ;;  %v13458_v3 = vld [vmem:[#allocation6 + $0x130] sm:$0xff] }
 0x304   : > { %v17147_v41 = vpack.c.bf16 %v13076_v28, %v13068_v30  ;;  %v13445_v30 = vld [vmem:[#allocation6 + $0xc8] sm:$0xff]  ;;  %v13476_v28 = vld [vmem:[#allocation6 + $0x1c0] sm:$0xff] }
 0x305   : > { %17096 = vmatpush1.bf16.msra.mxu0 %v17095_v9  ;;  %17128 = vmatpush1.bf16.msra.mxu1 %v17127_v42  ;;  %v13082_v9 = vld [vmem:[%s20876_s3 + $0x3a0] sm:$0xff]  ;;  %v13533_v24 = vld [vmem:[#allocation6 + $0x388] sm:$0xff] }
 0x306   : > { %17098 = vmatprep.subr.bf16.mxu0 %v17097_v45  ;;  %17130 = vmatprep.subr.bf16.mxu1 %v17129_v46  ;;  %v13090_v42 = vld [vmem:[%s20876_s3 + $0x3e0] sm:$0xff]  ;;  %v13084_v45 = vld [vmem:[%s20876_s3 + $0x3b0] sm:$0xff] }
 0x307   : > { %v13092_v46 = vld [vmem:[%s20876_s3 + $0x3f0] sm:$0xff]  ;;  %v17119_v51 = vpack.c.bf16 %v13090_v42, %v13082_v9  ;;  %v17201_v9 = vpack.c.bf16 %v13477_v31, %v13476_v28 }
 0x308   : > { %v17151_v52 = vpack.c.bf16 %v13092_v46, %v13084_v45  ;;  %v13460_v42 = vld [vmem:[#allocation6 + $0x140] sm:$0xff]  ;;  %v13447_v45 = vld [vmem:[#allocation6 + $0xd8] sm:$0xff]  ;;  %v13478_v46 = vld [vmem:[#allocation6 + $0x1d0] sm:$0xff] }
 0x309   : > { %17100 = vmatpush1.bf16.msra.mxu0 %v17099_v53  ;;  %17132 = vmatpush1.bf16.msra.mxu1 %v17131_v54  ;;  %v13420_v53 = vld [vmem:[#allocation6] sm:$0xff]  ;;  %v13421_v54 = vld [vmem:[#allocation6 + $0x8] sm:$0xff] }
 0x30a   : > { %17102 = vmatprep.subr.bf16.mxu0 %v17101_v57  ;;  %17134 = vmatprep.subr.bf16.mxu1 %v17133_v58  ;;  %v13452_v57 = vld [vmem:[#allocation6 + $0x100] sm:$0xff]  ;;  %v13453_v58 = vld [vmem:[#allocation6 + $0x108] sm:$0xff]  ;;  %v17155_v0 = vpack.c.bf16 %v13421_v54, %v13420_v53  ;;  %v17205_v53 = vpack.c.bf16 %v13479_v47, %v13478_v46  ;;  %v13462_v54 = vld [vmem:[#allocation6 + $0x150] sm:$0xff] }
 0x30b   : > { %v17187_v1 = vpack.c.bf16 %v13453_v58, %v13452_v57  ;;  %v13449_v57 = vld [vmem:[#allocation6 + $0xe8] sm:$0xff]  ;;  %v13480_v58 = vld [vmem:[#allocation6 + $0x1e0] sm:$0xff] }
 0x30c   : > { %v13484_v28 = vld [vmem:[#allocation6 + $0x200] sm:$0xff]  ;;  %v13485_v31 = vld [vmem:[#allocation6 + $0x208] sm:$0xff] }
 0x30d   : > { %17104 = vmatpush1.bf16.msra.mxu0 %v17103_v36  ;;  %17136 = vmatpush1.bf16.msra.mxu1 %v17135_v33  ;;  %v13422_v36 = vld [vmem:[#allocation6 + $0x10] sm:$0xff]  ;;  %v13423_v33 = vld [vmem:[#allocation6 + $0x18] sm:$0xff] }
 0x30e   : > { %17106 = vmatprep.subr.bf16.mxu0 %v17105_v8  ;;  %17138 = vmatprep.subr.bf16.mxu1 %v17137_v10  ;;  %v13454_v8 = vld [vmem:[#allocation6 + $0x110] sm:$0xff]  ;;  %v13455_v10 = vld [vmem:[#allocation6 + $0x118] sm:$0xff]  ;;  %v17159_v14 = vpack.c.bf16 %v13423_v33, %v13422_v36  ;;  %v13433_v36 = vld [vmem:[#allocation6 + $0x68] sm:$0xff] }
 0x30f   : > { %v17191_v15 = vpack.c.bf16 %v13455_v10, %v13454_v8  ;;  %v13464_v33 = vld [vmem:[#allocation6 + $0x160] sm:$0xff]  ;;  %v13450_v10 = vld [vmem:[#allocation6 + $0xf0] sm:$0xff] }
 0x310   : > { %v17181_v6 = vpack.c.bf16 %v13451_v5, %v13450_v10  ;;  %v13520_v10 = vld [vmem:[#allocation6 + $0x320] sm:$0xff]  ;;  %v13521_v5 = vld [vmem:[#allocation6 + $0x328] sm:$0xff] }
 0x311   : > { %17108 = vmatpush1.bf16.msra.mxu0 %v17107_v16  ;;  %17140 = vmatpush1.bf16.msra.mxu1 %v17139_v17  ;;  %v13424_v16 = vld [vmem:[#allocation6 + $0x20] sm:$0xff]  ;;  %v13425_v17 = vld [vmem:[#allocation6 + $0x28] sm:$0xff] }
 0x312   : > { %17110 = vmatprep.subr.bf16.mxu0 %v17109_v20  ;;  %17142 = vmatprep.subr.bf16.mxu1 %v17141_v12  ;;  %v13456_v20 = vld [vmem:[#allocation6 + $0x120] sm:$0xff]  ;;  %v13457_v12 = vld [vmem:[#allocation6 + $0x128] sm:$0xff]  ;;  %v17163_v25 = vpack.c.bf16 %v13425_v17, %v13424_v16  ;;  %v13435_v16 = vld [vmem:[#allocation6 + $0x78] sm:$0xff] }
 0x313   : > { %v13466_v17 = vld [vmem:[#allocation6 + $0x170] sm:$0xff] }
 0x315   : > { %17112 = vmatpush1.bf16.msra.mxu0 %v17111_v27  ;;  %17144 = vmatpush1.bf16.msra.mxu1 %v17143_v29  ;;  %v13427_v27 = vld [vmem:[#allocation6 + $0x38] sm:$0xff]  ;;  %v17165_v29 = vpack.c.bf16 %v13443_v22, %v13442_v21  ;;  %v13501_v21 = vld [vmem:[#allocation6 + $0x288] sm:$0xff]  ;;  %v13532_v22 = vld [vmem:[#allocation6 + $0x380] sm:$0xff] }
 0x316   : > { %17114 = vmatprep.subr.bf16.mxu0 %v17113_v2  ;;  %17146 = vmatprep.subr.bf16.mxu1 %v17145_v4  ;;  %v13459_v2 = vld [vmem:[#allocation6 + $0x138] sm:$0xff]  ;;  %v13444_v4 = vld [vmem:[#allocation6 + $0xc0] sm:$0xff]  ;;  %v17167_v38 = vpack.c.bf16 %v13427_v27, %v13426_v26 }
 0x317   : > { %v17199_v39 = vpack.c.bf16 %v13459_v2, %v13458_v3 }
 0x319   : > { %17116 = vmatpush1.bf16.msra.mxu0 %v17115_v40  ;;  %17148 = vmatpush1.bf16.msra.mxu1 %v17147_v41  ;;  %v13429_v40 = vld [vmem:[#allocation6 + $0x48] sm:$0xff]  ;;  %v17169_v41 = vpack.c.bf16 %v13445_v30, %v13444_v4 }
 0x31a   : > { %17118 = vmatprep.subr.bf16.mxu0 %v17117_v43  ;;  %17150 = vmatprep.subr.bf16.mxu1 %v17149_v44  ;;  %v13461_v43 = vld [vmem:[#allocation6 + $0x148] sm:$0xff]  ;;  %v13446_v44 = vld [vmem:[#allocation6 + $0xd0] sm:$0xff]  ;;  %v17171_v48 = vpack.c.bf16 %v13429_v40, %v13428_v32  ;;  %v13516_v32 = vld [vmem:[#allocation6 + $0x300] sm:$0xff] }
 0x31b   : > { %v17203_v49 = vpack.c.bf16 %v13461_v43, %v13460_v42  ;;  %v13517_v40 = vld [vmem:[#allocation6 + $0x308] sm:$0xff]  ;;  %v13503_v43 = vld [vmem:[#allocation6 + $0x298] sm:$0xff] }
 0x31d   : > { %17120 = vmatpush1.bf16.msra.mxu0 %v17119_v51  ;;  %17152 = vmatpush1.bf16.msra.mxu1 %v17151_v52  ;;  %v13431_v51 = vld [vmem:[#allocation6 + $0x58] sm:$0xff]  ;;  %v17173_v52 = vpack.c.bf16 %v13447_v45, %v13446_v44  ;;  %v13534_v44 = vld [vmem:[#allocation6 + $0x390] sm:$0xff] }
 0x31e   : > { %17154 = vmatprep.subr.bf16.mxu0 %v17153_v55  ;;  %17186 = vmatprep.subr.bf16.mxu1 %v17185_v56  ;;  %v13463_v55 = vld [vmem:[#allocation6 + $0x158] sm:$0xff]  ;;  %v13448_v56 = vld [vmem:[#allocation6 + $0xe0] sm:$0xff]  ;;  %v17175_v60 = vpack.c.bf16 %v13431_v51, %v13430_v50  ;;  %v17219_v50 = vpack.c.bf16 %v13485_v31, %v13484_v28  ;;  %v17251_v51 = vpack.c.bf16 %v13517_v40, %v13516_v32  ;;  %v13525_v31 = vld [vmem:[#allocation6 + $0x348] sm:$0xff] }
 0x31f   : > { %v17207_v61 = vpack.c.bf16 %v13463_v55, %v13462_v54  ;;  %v13535_v45 = vld [vmem:[#allocation6 + $0x398] sm:$0xff]  ;;  %v13524_v28 = vld [vmem:[#allocation6 + $0x340] sm:$0xff]  ;;  %v13542_v32 = vld [vmem:[#allocation6 + $0x3d0] sm:$0xff] }
 0x320   : > { %13343 = vmatmul.mubr.f32.vlgmr.msra.gmra.mrb[18].mxu0 %v20210_v7  ;;  %13414 = vmatmul.mubr.f32.vlgmr.msra.gmra.mrb[18].mxu1 %v20210_v7  ;;  %v17195_v7 = vpack.c.bf16 %v13457_v12, %v13456_v20  ;;  %v13500_v12 = vld [vmem:[#allocation6 + $0x280] sm:$0xff]  ;;  %v13543_v40 = vld [vmem:[#allocation6 + $0x3d8] sm:$0xff] }
 0x321   : > { %17156 = vmatpush3.bf16.msra.mxu0 %v17155_v0  ;;  %17188 = vmatpush3.bf16.msra.mxu1 %v17187_v1  ;;  %v17177_v0 = vpack.c.bf16 %v13449_v57, %v13448_v56  ;;  %v17209_v1 = vpack.c.bf16 %v13481_v59, %v13480_v58  ;;  %v17217_v23 = vpack.c.bf16 %v13501_v21, %v13500_v12  ;;  %v13518_v58 = vld [vmem:[#allocation6 + $0x310] sm:$0xff]  ;;  %v13519_v59 = vld [vmem:[#allocation6 + $0x318] sm:$0xff] }
 0x322   : > { %17158 = vmatprep.subr.bf16.mxu0 %v17157_v35  ;;  %17190 = vmatprep.subr.bf16.mxu1 %v17189_v37  ;;  %v13465_v35 = vld [vmem:[#allocation6 + $0x168] sm:$0xff]  ;;  %v17179_v37 = vpack.c.bf16 %v13433_v36, %v13432_v62  ;;  %v17253_v57 = vpack.c.bf16 %v13535_v45, %v13534_v44  ;;  %v13536_v62 = vld [vmem:[#allocation6 + $0x3a0] sm:$0xff]  ;;  %v17255_v36 = vpack.c.bf16 %v13519_v59, %v13518_v58  ;;  %v13522_v12 = vld [vmem:[#allocation6 + $0x330] sm:$0xff] }
 0x323   : > { %v17211_v8 = vpack.c.bf16 %v13465_v35, %v13464_v33  ;;  %v13488_v33 = vld [vmem:[#allocation6 + $0x220] sm:$0xff]  ;;  %v13489_v35 = vld [vmem:[#allocation6 + $0x228] sm:$0xff]  ;;  %v13523_v21 = vld [vmem:[#allocation6 + $0x338] sm:$0xff]  ;;  %v17269_v45 = vpack.c.bf16 %v13543_v40, %v13542_v32 }
 0x324   : > { %v13496_v58 = vld [vmem:[#allocation6 + $0x260] sm:$0xff]  ;;  %v13497_v59 = vld [vmem:[#allocation6 + $0x268] sm:$0xff]  ;;  %v13833_v32 = vld [vmem:[#allocation7 + $0x18] sm:$0xff] }
 0x325   : > { %17160 = vmatpush3.bf16.msra.mxu0 %v17159_v14  ;;  %17192 = vmatpush3.bf16.msra.mxu1 %v17191_v15  ;;  %v17213_v14 = vpack.c.bf16 %v13483_v13, %v13482_v11  ;;  %v13434_v15 = vld [vmem:[#allocation6 + $0x70] sm:$0xff] }
 0x326   : > { %17162 = vmatprep.subr.bf16.mxu0 %v17161_v18  ;;  %17194 = vmatprep.subr.bf16.mxu1 %v17193_v19  ;;  %v17183_v18 = vpack.c.bf16 %v13435_v16, %v13434_v15  ;;  %v13467_v19 = vld [vmem:[#allocation6 + $0x178] sm:$0xff]  ;;  %v13506_v11 = vld [vmem:[#allocation6 + $0x2b0] sm:$0xff]  ;;  %v17227_v15 = vpack.c.bf16 %v13489_v35, %v13488_v33  ;;  %v17259_v16 = vpack.c.bf16 %v13521_v5, %v13520_v10 }
 0x327   : > { %v17215_v20 = vpack.c.bf16 %v13467_v19, %v13466_v17  ;;  %v13538_v13 = vld [vmem:[#allocation6 + $0x3b0] sm:$0xff]  ;;  %v13547_v35 = vld [vmem:[#allocation6 + $0x3f8] sm:$0xff] }
 0x328   : > { %v13490_v17 = vld [vmem:[#allocation6 + $0x230] sm:$0xff] }
 0x329   : > { %17164 = vmatpush3.bf16.msra.mxu0 %v17163_v25  ;;  %17196 = vmatpush3.bf16.msra.mxu1 %v17195_v7  ;;  %v17249_v25 = vpack.c.bf16 %v13533_v24, %v13532_v22  ;;  %v13096_v7 = vlaneseq  ;;  %v13508_v22 = vld [vmem:[#allocation6 + $0x2c0] sm:$0xff]  ;;  %v13546_v33 = vld [vmem:[#allocation6 + $0x3f0] sm:$0xff] }
 0x32a   : > { %17166 = vmatprep.subr.bf16.mxu0 %v17165_v29  ;;  %17198 = vmatprep.subr.bf16.mxu1 %v17197_v34  ;;  %v20372_v34 = vld [vmem:[#allocation4] sm:$0xff]  ;;  %v13540_v24 = vld [vmem:[#allocation6 + $0x3c0] sm:$0xff] }
 0x32b   : > { %v20368_v26 = vshrl.u32 %v13096_v7, 7 }
 0x32d   : > { %17168 = vmatpush3.bf16.msra.mxu0 %v17167_v38  ;;  %17200 = vmatpush3.bf16.msra.mxu1 %v17199_v39  ;;  %v13102_v27 = vsub.s32 1, %v20368_v26  ;;  %v13110_v29 = vsub.s32 3, %v20368_v26  ;;  %v13098_v3 = vsub.s32 0, %v20368_v26  ;;  %v13106_v2 = vsub.s32 2, %v20368_v26 }
 0x32e   : > { %17170 = vmatprep.subr.bf16.mxu0 %v17169_v41  ;;  %17202 = vmatprep.subr.bf16.mxu1 %v17201_v9  ;;  %v13502_v41 = vld [vmem:[#allocation6 + $0x290] sm:$0xff]  ;;  %v13126_v5 = vsub.s32 7, %v20368_v26 }
 0x32f   : > { %v13103_v4 = vrot.slane %v20372_v34, %v13102_v27  ;;  %v13111_v30 = vrot.slane %v20372_v34, %v13110_v29  ;;  %v13099_v38 = vrot.slane %v20372_v34, %v13098_v3  ;;  %v13107_v39 = vrot.slane %v20372_v34, %v13106_v2  ;;  %v13492_v29 = vld [vmem:[#allocation6 + $0x240] sm:$0xff]  ;;  %v13493_v2 = vld [vmem:[#allocation6 + $0x248] sm:$0xff] }
 0x330   : > { %v17221_v56 = vpack.c.bf16 %v13503_v43, %v13502_v41  ;;  %v17263_v27 = vpack.c.bf16 %v13523_v21, %v13522_v12  ;;  %v17235_v41 = vpack.c.bf16 %v13493_v2, %v13492_v29  ;;  %v13495_v43 = vld [vmem:[#allocation6 + $0x258] sm:$0xff] }
 0x331   : > { %17172 = vmatpush3.bf16.msra.mxu0 %v17171_v48  ;;  %17204 = vmatpush3.bf16.msra.mxu1 %v17203_v49 }
 0x332   : > { %17174 = vmatprep.subr.bf16.mxu0 %v17173_v52  ;;  %17206 = vmatprep.subr.bf16.mxu1 %v17205_v53  ;;  %v13486_v52 = vld [vmem:[#allocation6 + $0x210] sm:$0xff]  ;;  %v13487_v53 = vld [vmem:[#allocation6 + $0x218] sm:$0xff] }
 0x335   : > { %17176 = vmatpush3.bf16.msra.mxu0 %v17175_v60  ;;  %17208 = vmatpush3.bf16.msra.mxu1 %v17207_v61  ;;  %v13504_v60 = vld [vmem:[#allocation6 + $0x2a0] sm:$0xff]  ;;  %v13505_v61 = vld [vmem:[#allocation6 + $0x2a8] sm:$0xff] }
 0x336   : > { %17178 = vmatprep.subr.bf16.mxu0 %v17177_v0  ;;  %17210 = vmatprep.subr.bf16.mxu1 %v17209_v1  ;;  %v13537_v0 = vld [vmem:[#allocation6 + $0x3a8] sm:$0xff]  ;;  %v17223_v1 = vpack.c.bf16 %v13487_v53, %v13486_v52  ;;  %v13544_v52 = vld [vmem:[#allocation6 + $0x3e0] sm:$0xff] }
 0x337   : > { %v13545_v53 = vld [vmem:[#allocation6 + $0x3e8] sm:$0xff] }
 0x339   : > { %17180 = vmatpush3.bf16.msra.mxu0 %v17179_v37  ;;  %17212 = vmatpush3.bf16.msra.mxu1 %v17211_v8  ;;  %v17225_v37 = vpack.c.bf16 %v13505_v61, %v13504_v60  ;;  %v17257_v8 = vpack.c.bf16 %v13537_v0, %v13536_v62  ;;  %v17273_v61 = vpack.c.bf16 %v13545_v53, %v13544_v52  ;;  %v13528_v62 = vld [vmem:[#allocation6 + $0x360] sm:$0xff]  ;;  %v13529_v0 = vld [vmem:[#allocation6 + $0x368] sm:$0xff]  ;;  %v13841_v52 = vld [vmem:[#allocation7 + $0x58] sm:$0xff] }
 0x33a   : > { %17182 = vmatprep.subr.bf16.mxu0 %v17181_v6  ;;  %17214 = vmatprep.subr.bf16.mxu1 %v17213_v14  ;;  %v13507_v6 = vld [vmem:[#allocation6 + $0x2b8] sm:$0xff]  ;;  %v17275_v10 = vpack.c.bf16 %v13529_v0, %v13528_v62 }
 0x33b   : > { %v13539_v14 = vld [vmem:[#allocation6 + $0x3b8] sm:$0xff]  ;;  %v17229_v19 = vpack.c.bf16 %v13507_v6, %v13506_v11  ;;  %v13498_v11 = vld [vmem:[#allocation6 + $0x270] sm:$0xff]  ;;  %v13114_v6 = vsub.s32 4, %v20368_v26 }
 0x33c   : > { %v13943_v62 = vld [vmem:[%s20882_s9 + $0x88] sm:$0xff] }
 0x33d   : > { %17184 = vmatpush3.bf16.msra.mxu0 %v17183_v18  ;;  %17216 = vmatpush3.bf16.msra.mxu1 %v17215_v20  ;;  %v13491_v18 = vld [vmem:[#allocation6 + $0x238] sm:$0xff]  ;;  %v17261_v20 = vpack.c.bf16 %v13539_v14, %v13538_v13  ;;  %v13122_v13 = vsub.s32 6, %v20368_v26 }
 0x33e   : > { %17218 = vmatprep.subr.bf16.mxu0 %v17217_v23  ;;  %17250 = vmatprep.subr.bf16.mxu1 %v17249_v25  ;;  %v13509_v23 = vld [vmem:[#allocation6 + $0x2c8] sm:$0xff]  ;;  %v17231_v7 = vpack.c.bf16 %v13491_v18, %v13490_v17  ;;  %v13530_v17 = vld [vmem:[#allocation6 + $0x370] sm:$0xff]  ;;  %v13531_v18 = vld [vmem:[#allocation6 + $0x378] sm:$0xff] }
 0x33f   : > { %v13541_v25 = vld [vmem:[#allocation6 + $0x3c8] sm:$0xff]  ;;  %v17279_v21 = vpack.c.bf16 %v13531_v18, %v13530_v17 }
 0x340   : > { %v14063_v17 = vld [vmem:[#allocation9 + $0x48] sm:$0xff] }
 0x3d3   : > { %v13202_v9 = vpop.f32.mrb[16].mxu0  ;;  %v13273_v42 = vpop.f32.mrb[16].mxu1 }
 0x3d4   : > { %v13204_v46 = vpop.f32.mrb[17].mxu0  ;;  %v13275_v47 = vpop.f32.mrb[17].mxu1  ;;  %v20386_v54 = vadd.f32 %v13202_v9, %v13099_v38  ;;  %v20388_v55 = vadd.f32 %v13273_v42, %v13107_v39  ;;  %v13510_v38 = vld [vmem:[#allocation6 + $0x2d0] sm:$0xff]  ;;  %v13511_v39 = vld [vmem:[#allocation6 + $0x2d8] sm:$0xff]  ;;  %v17267_v9 = vpack.c.bf16 %v13525_v31, %v13524_v28  ;;  %v13831_v28 = vld [vmem:[#allocation7 + $0x8] sm:$0xff] }
 0x3d5   : > { %v20382_v48 = vadd.f32 %v13204_v46, %v13103_v4  ;;  %v20384_v49 = vadd.f32 %v13275_v47, %v13111_v30  ;;  %v17233_v4 = vpack.c.bf16 %v13509_v23, %v13508_v22  ;;  %v17265_v30 = vpack.c.bf16 %v13541_v25, %v13540_v24  ;;  %v13494_v42 = vld [vmem:[#allocation6 + $0x250] sm:$0xff]  ;;  %v13527_v47 = vld [vmem:[#allocation6 + $0x358] sm:$0xff] }
 0x3d6   : > { %v17237_v44 = vpack.c.bf16 %v13511_v39, %v13510_v38  ;;  %v13526_v46 = vld [vmem:[#allocation6 + $0x350] sm:$0xff]  ;;  %v13115_v22 = vrot.slane %v20372_v34, %v13114_v6  ;;  %v13123_v23 = vrot.slane %v20372_v34, %v13122_v13  ;;  %v18147_v38 = vmov 0.0|0.0  }
 0x3d7   : > { %13613 = vmatprep.mubr.f32.mxu0 %v20382_v48  ;;  %13683 = vmatprep.mubr.f32.mxu1 %v20384_v49  ;;  %v13832_v31 = vld [vmem:[#allocation7 + $0x10] sm:$0xff] }
 0x3d8   : > { %13614 = vmatmul.mubr.f32.vlgmr.msra.gmra.mrb[20].mxu0 %v20386_v54  ;;  %13684 = vmatmul.mubr.f32.vlgmr.msra.gmra.mrb[20].mxu1 %v20388_v55  ;;  %v17285_v40 = vpack.c.bf16 %v13833_v32, %v13832_v31  ;;  %v14060_v13 = vld [vmem:[#allocation9 + $0x30] sm:$0xff] }
 0x3d9   : > { %17220 = vmatpush3.bf16.msra.mxu0 %v17219_v50  ;;  %17252 = vmatpush3.bf16.msra.mxu1 %v17251_v51  ;;  %v13512_v50 = vld [vmem:[#allocation6 + $0x2e0] sm:$0xff]  ;;  %v13513_v51 = vld [vmem:[#allocation6 + $0x2e8] sm:$0xff] }
 0x3da   : > { %17222 = vmatprep.subr.bf16.mxu0 %v17221_v56  ;;  %17254 = vmatprep.subr.bf16.mxu1 %v17253_v57  ;;  %v17239_v56 = vpack.c.bf16 %v13495_v43, %v13494_v42  ;;  %v17271_v57 = vpack.c.bf16 %v13527_v47, %v13526_v46  ;;  %v17241_v60 = vpack.c.bf16 %v13513_v51, %v13512_v50  ;;  %v13836_v43 = vld [vmem:[#allocation7 + $0x30] sm:$0xff]  ;;  %v13838_v46 = vld [vmem:[#allocation7 + $0x40] sm:$0xff]  ;;  %v13839_v47 = vld [vmem:[#allocation7 + $0x48] sm:$0xff] }
 0x3db   : > { %v17294_v50 = vpack.c.bf16 %v13839_v47, %v13838_v46  ;;  %v13840_v51 = vld [vmem:[#allocation7 + $0x50] sm:$0xff] }
 0x3dc   : > { %v17297_v53 = vpack.c.bf16 %v13841_v52, %v13840_v51  ;;  %v13929_v47 = vld [vmem:[%s20882_s9 + $0x18] sm:$0xff]  ;;  %v13946_v51 = vld [vmem:[%s20882_s9 + $0xa0] sm:$0xff]  ;;  %v13947_v52 = vld [vmem:[%s20882_s9 + $0xa8] sm:$0xff] }
 0x3dd   : > { %17224 = vmatpush3.bf16.msra.mxu0 %v17223_v1  ;;  %17256 = vmatpush3.bf16.msra.mxu1 %v17255_v36  ;;  %v13514_v1 = vld [vmem:[#allocation6 + $0x2f0] sm:$0xff]  ;;  %v13515_v36 = vld [vmem:[#allocation6 + $0x2f8] sm:$0xff] }
 0x3de   : > { %17226 = vmatprep.subr.bf16.mxu0 %v17225_v37  ;;  %17258 = vmatprep.subr.bf16.mxu1 %v17257_v8  ;;  %v13118_v37 = vsub.s32 5, %v20368_v26  ;;  %v17243_v8 = vpack.c.bf16 %v13497_v59, %v13496_v58  ;;  %v17245_v14 = vpack.c.bf16 %v13515_v36, %v13514_v1  ;;  %v13844_v59 = vld [vmem:[#allocation7 + $0x70] sm:$0xff]  ;;  %v14054_v36 = vld [vmem:[#allocation9] sm:$0xff] }
 0x3e1   : > { %17228 = vmatpush3.bf16.msra.mxu0 %v17227_v15  ;;  %17260 = vmatpush3.bf16.msra.mxu1 %v17259_v16  ;;  %v17277_v15 = vpack.c.bf16 %v13547_v35, %v13546_v33  ;;  %v13499_v16 = vld [vmem:[#allocation6 + $0x278] sm:$0xff]  ;;  %v14055_v33 = vld [vmem:[#allocation9 + $0x8] sm:$0xff]  ;;  %v14056_v35 = vld [vmem:[#allocation9 + $0x10] sm:$0xff] }
 0x3e2   : > { %17230 = vmatprep.subr.bf16.mxu0 %v17229_v19  ;;  %17262 = vmatprep.subr.bf16.mxu1 %v17261_v20  ;;  %v13119_v19 = vrot.slane %v20372_v34, %v13118_v37  ;;  %v13127_v20 = vrot.slane %v20372_v34, %v13126_v5  ;;  %v17247_v12 = vpack.c.bf16 %v13499_v16, %v13498_v11  ;;  %v13830_v34 = vld [vmem:[#allocation7] sm:$0xff]  ;;  %v14059_v11 = vld [vmem:[#allocation9 + $0x28] sm:$0xff] }
 0x3e3   : > { %v17282_v39 = vpack.c.bf16 %v13831_v28, %v13830_v34  ;;  %v17306_v37 = vpack.c.bf16 %v14055_v33, %v14054_v36  ;;  %v14058_v5 = vld [vmem:[#allocation9 + $0x20] sm:$0xff]  ;;  %v13933_v36 = vld [vmem:[%s20882_s9 + $0x38] sm:$0xff]  ;;  %v13950_v33 = vld [vmem:[%s20882_s9 + $0xc0] sm:$0xff] }
 0x3e4   : > { %v17312_v6 = vpack.c.bf16 %v14059_v11, %v14058_v5  ;;  %v14062_v16 = vld [vmem:[#allocation9 + $0x40] sm:$0xff] }
 0x3e5   : > { %17232 = vmatpush3.bf16.msra.mxu0 %v17231_v7  ;;  %17264 = vmatpush3.bf16.msra.mxu1 %v17263_v27  ;;  %v13935_v5 = vld [vmem:[%s20882_s9 + $0x48] sm:$0xff]  ;;  %v13952_v11 = vld [vmem:[%s20882_s9 + $0xd0] sm:$0xff] }
 0x3e6   : > { %17234 = vmatprep.subr.bf16.mxu0 %v17233_v4  ;;  %17266 = vmatprep.subr.bf16.mxu1 %v17265_v30 }
 0x3e9   : > { %17236 = vmatpush3.bf16.msra.mxu0 %v17235_v41  ;;  %17268 = vmatpush3.bf16.msra.mxu1 %v17267_v9  ;;  %v13834_v41 = vld [vmem:[#allocation7 + $0x20] sm:$0xff]  ;;  %v13835_v9 = vld [vmem:[#allocation7 + $0x28] sm:$0xff] }
 0x3ea   : > { %17238 = vmatprep.subr.bf16.mxu0 %v17237_v44  ;;  %17270 = vmatprep.subr.bf16.mxu1 %v17269_v45  ;;  %v17288_v42 = vpack.c.bf16 %v13835_v9, %v13834_v41  ;;  %v13837_v44 = vld [vmem:[#allocation7 + $0x38] sm:$0xff] }
 0x3eb   : > { %v17291_v45 = vpack.c.bf16 %v13837_v44, %v13836_v43  ;;  %v13926_v9 = vld [vmem:[%s20882_s9] sm:$0xff]  ;;  %v13944_v43 = vld [vmem:[%s20882_s9 + $0x90] sm:$0xff]  ;;  %v13945_v44 = vld [vmem:[%s20882_s9 + $0x98] sm:$0xff] }
 0x3ec   : > { %v17333_v46 = vpack.c.bf16 %v13945_v44, %v13944_v43  ;;  %v13993_v43 = vld [vmem:[%s20882_s9 + $0x218] sm:$0xff] }
 0x3ed   : > { %17240 = vmatpush3.bf16.msra.mxu0 %v17239_v56  ;;  %17272 = vmatpush3.bf16.msra.mxu1 %v17271_v57  ;;  %v13842_v56 = vld [vmem:[#allocation7 + $0x60] sm:$0xff]  ;;  %v13843_v57 = vld [vmem:[#allocation7 + $0x68] sm:$0xff] }
 0x3ee   : > { %17242 = vmatprep.subr.bf16.mxu0 %v17241_v60  ;;  %17274 = vmatprep.subr.bf16.mxu1 %v17273_v61  ;;  %v17300_v58 = vpack.c.bf16 %v13843_v57, %v13842_v56  ;;  %v13845_v60 = vld [vmem:[#allocation7 + $0x78] sm:$0xff]  ;;  %v17337_v57 = vpack.c.bf16 %v13947_v52, %v13946_v51 }
 0x3ef   : > { %v13942_v61 = vld [vmem:[%s20882_s9 + $0x80] sm:$0xff]  ;;  %v17303_v0 = vpack.c.bf16 %v13845_v60, %v13844_v59  ;;  %v13931_v59 = vld [vmem:[%s20882_s9 + $0x28] sm:$0xff]  ;;  %v13948_v60 = vld [vmem:[%s20882_s9 + $0xb0] sm:$0xff] }
 0x3f0   : > { %v17329_v1 = vpack.c.bf16 %v13943_v62, %v13942_v61  ;;  %v13949_v61 = vld [vmem:[%s20882_s9 + $0xb8] sm:$0xff]  ;;  %v13994_v51 = vld [vmem:[%s20882_s9 + $0x220] sm:$0xff]  ;;  %v13995_v52 = vld [vmem:[%s20882_s9 + $0x228] sm:$0xff] }
 0x3f1   : > { %17244 = vmatpush3.bf16.msra.mxu0 %v17243_v8  ;;  %17276 = vmatpush3.bf16.msra.mxu1 %v17275_v10  ;;  %v14057_v8 = vld [vmem:[#allocation9 + $0x18] sm:$0xff] }
 0x3f2   : > { %17246 = vmatprep.subr.bf16.mxu0 %v17245_v14  ;;  %17278 = vmatprep.subr.bf16.mxu1 %v17277_v15  ;;  %v17309_v10 = vpack.c.bf16 %v14057_v8, %v14056_v35  ;;  %v14061_v14 = vld [vmem:[#allocation9 + $0x38] sm:$0xff] }
 0x3f3   : > { %v13344_v24 = vpop.f32.mrb[18].mxu0  ;;  %v13415_v25 = vpop.f32.mrb[18].mxu1  ;;  %v17315_v15 = vpack.c.bf16 %v14061_v14, %v14060_v13  ;;  %v13951_v35 = vld [vmem:[%s20882_s9 + $0xc8] sm:$0xff] }
 0x3f4   : > { %v13346_v7 = vpop.f32.mrb[19].mxu0  ;;  %v13417_v27 = vpop.f32.mrb[19].mxu1  ;;  %v20406_v4 = vadd.f32 %v13344_v24, %v13115_v22  ;;  %v20408_v30 = vadd.f32 %v13415_v25, %v13123_v23  ;;  %v17318_v24 = vpack.c.bf16 %v14063_v17, %v14062_v16  ;;  %v17345_v8 = vpack.c.bf16 %v13951_v35, %v13950_v33  ;;  %v13937_v16 = vld [vmem:[%s20882_s9 + $0x58] sm:$0xff]  ;;  %v13954_v17 = vld [vmem:[%s20882_s9 + $0xe0] sm:$0xff]  ;;  %v13999_v33 = vld [vmem:[%s20882_s9 + $0x248] sm:$0xff] }
 0x3f5   : > { %v20402_v29 = vadd.f32 %v13346_v7, %v13119_v19  ;;  %v20404_v2 = vadd.f32 %v13417_v27, %v13127_v20  ;;  %17248 = vmatpush3.bf16.msra.mxu0 %v17247_v12  ;;  %17280 = vmatpush3.bf16.msra.mxu1 %v17279_v21  ;;  %v13548_v20 = vld [vmem:[%s20879_s6] sm:$0x1]  ;;  %v14016_v35 = vld [vmem:[%s20882_s9 + $0x2d0] sm:$0xff] }
 0x3f6   : > { %17281 = vmatprep.subr.bf16.mxu0 %v18147_v38  ;;  %17305 = vmatprep.subr.bf16.mxu1 %v18147_v38 }
 0x3f7   : > { %13753 = vmatprep.mubr.f32.mxu0 %v20402_v29  ;;  %13823 = vmatprep.mubr.f32.mxu1 %v20404_v2 }
 0x3f8   : > { %13754 = vmatmul.mubr.f32.vlgmr.msra.gmra.mrb[22].mxu0 %v20406_v4  ;;  %13824 = vmatmul.mubr.f32.vlgmr.msra.gmra.mrb[22].mxu1 %v20408_v30 }
 0x3f9   : > { %17283 = vmatpush3.bf16.msra.mxu0 %v17282_v39  ;;  %16917 = vmatprep.mubr.msk.f32.mxu0 %vm18148_vm2, %v18146_v63 }
 0x3fa   : > { %17284 = vmatprep.subr.bf16.mxu0 %v18147_v38  ;;  %16952 = vmatprep.mubr.msk.f32.mxu1 %vm18148_vm2, %v18146_v63 }
 0x3fb   : > { %17307 = vmatpush3.bf16.msra.mxu1 %v17306_v37 }
 0x3fc   : > { %17308 = vmatprep.subr.bf16.mxu1 %v18147_v38 }
 0x3fd   : > { %17286 = vmatpush3.bf16.msra.mxu0 %v17285_v40 }
 0x3fe   : > { %17287 = vmatprep.subr.bf16.mxu0 %v18147_v38 }
 0x3ff   : > { %17310 = vmatpush3.bf16.msra.mxu1 %v17309_v10  ;;  %v13934_v10 = vld [vmem:[%s20882_s9 + $0x40] sm:$0xff] }
 0x400   : > { %17311 = vmatprep.subr.bf16.mxu1 %v18147_v38  ;;  %v17347_v13 = vpack.c.bf16 %v13935_v5, %v13934_v10  ;;  %v14000_v5 = vld [vmem:[%s20882_s9 + $0x250] sm:$0xff] }
 0x401   : > { %17289 = vmatpush3.bf16.msra.mxu0 %v17288_v42  ;;  %v13927_v42 = vld [vmem:[%s20882_s9 + $0x8] sm:$0xff] }
 0x402   : > { %17290 = vmatprep.subr.bf16.mxu0 %v18147_v38 }
 0x403   : > { %17313 = vmatpush3.bf16.msra.mxu1 %v17312_v6  ;;  %v13953_v6 = vld [vmem:[%s20882_s9 + $0xd8] sm:$0xff] }
 0x404   : > { %17314 = vmatprep.subr.bf16.mxu1 %v18147_v38  ;;  %v17349_v14 = vpack.c.bf16 %v13953_v6, %v13952_v11  ;;  %v14001_v11 = vld [vmem:[%s20882_s9 + $0x258] sm:$0xff]  ;;  %v14018_v6 = vld [vmem:[%s20882_s9 + $0x2e0] sm:$0xff] }
 0x405   : > { %17292 = vmatpush3.bf16.msra.mxu0 %v17291_v45  ;;  %v17331_v45 = vpack.c.bf16 %v13927_v42, %v13926_v9  ;;  %v13992_v42 = vld [vmem:[%s20882_s9 + $0x210] sm:$0xff] }
 0x406   : > { %17293 = vmatprep.subr.bf16.mxu0 %v18147_v38 }
 0x407   : > { %17316 = vmatpush3.bf16.msra.mxu1 %v17315_v15  ;;  %v13936_v15 = vld [vmem:[%s20882_s9 + $0x50] sm:$0xff] }
 0x408   : > { %17317 = vmatprep.subr.bf16.mxu1 %v18147_v38 }
 0x409   : > { %17295 = vmatpush3.bf16.msra.mxu0 %v17294_v50 }
 0x40a   : > { %17296 = vmatprep.subr.bf16.mxu0 %v18147_v38 }
 0x40b   : > { %17319 = vmatpush3.bf16.msra.mxu1 %v17318_v24 }
 0x40c   : > { %17320 = vmatprep.subr.bf16.mxu1 %v18147_v38 }
 0x40d   : > { %17298 = vmatpush3.bf16.msra.mxu0 %v17297_v53 }
 0x40e   : > { %17299 = vmatprep.subr.bf16.mxu0 %v18147_v38 }
 0x411   : > { %17301 = vmatpush3.bf16.msra.mxu0 %v17300_v58  ;;  %v13930_v58 = vld [vmem:[%s20882_s9 + $0x20] sm:$0xff] }
 0x412   : > { %17302 = vmatprep.subr.bf16.mxu0 %v18147_v38  ;;  %v17339_v62 = vpack.c.bf16 %v13931_v59, %v13930_v58  ;;  %v13996_v59 = vld [vmem:[%s20882_s9 + $0x230] sm:$0xff] }
 0x415   : > { %17304 = vmatpush3.bf16.msra.mxu0 %v17303_v0  ;;  %v17341_v0 = vpack.c.bf16 %v13949_v61, %v13948_v60  ;;  %v13997_v60 = vld [vmem:[%s20882_s9 + $0x238] sm:$0xff]  ;;  %v14014_v61 = vld [vmem:[%s20882_s9 + $0x2c0] sm:$0xff] }
 0x416   : > { %17330 = vmatprep.subr.bf16.mxu0 %v17329_v1  ;;  %v13932_v1 = vld [vmem:[%s20882_s9 + $0x30] sm:$0xff] }
 0x417   : > { %v17343_v37 = vpack.c.bf16 %v13933_v36, %v13932_v1  ;;  %v13998_v36 = vld [vmem:[%s20882_s9 + $0x240] sm:$0xff] }
 0x4ab   : > { %v15849_v18 = vpop.f32.mrb[20].mxu0  ;;  %v15884_v19 = vpop.f32.mrb[20].mxu1 }
 0x4ac   : > { %v15850_v12 = vpop.f32.mrb[21].mxu0  ;;  %v15885_v21 = vpop.f32.mrb[21].mxu1 }
 0x4ad   : > { %v15851_v22 = vadd.f32 %v15850_v12, %v15849_v18  ;;  %v15886_v23 = vadd.f32 %v15885_v21, %v15884_v19  ;;  %v13955_v18 = vld [vmem:[%s20882_s9 + $0xe8] sm:$0xff]  ;;  %v17351_v19 = vpack.c.bf16 %v13937_v16, %v13936_v15  ;;  %v13938_v12 = vld [vmem:[%s20882_s9 + $0x60] sm:$0xff] }
 0x4ae   : > { %v13939_v21 = vld [vmem:[%s20882_s9 + $0x68] sm:$0xff]  ;;  %v14002_v16 = vld [vmem:[%s20882_s9 + $0x260] sm:$0xff] }
 0x4af   : > { %v13616_v25 = vadd.f32 %v15851_v22, %v13548_v20  ;;  %v17353_v20 = vpack.c.bf16 %v13955_v18, %v13954_v17  ;;  %v13956_v22 = vld [vmem:[%s20882_s9 + $0xf0] sm:$0xff]  ;;  %v17355_v24 = vpack.c.bf16 %v13939_v21, %v13938_v12  ;;  %v14003_v17 = vld [vmem:[%s20882_s9 + $0x268] sm:$0xff] }
 0x4b0   : > { %v14020_v18 = vld [vmem:[%s20882_s9 + $0x2f0] sm:$0xff] }
 0x4b1   : > { %v13686_v7 = vadd.f32 %v15886_v23, %v13616_v25  ;;  %v13957_v23 = vld [vmem:[%s20882_s9 + $0xf8] sm:$0xff]  ;;  %v14004_v21 = vld [vmem:[%s20882_s9 + $0x270] sm:$0xff] }
 0x4b2   : > { %v17357_v25 = vpack.c.bf16 %v13957_v23, %v13956_v22  ;;  %v14005_v22 = vld [vmem:[%s20882_s9 + $0x278] sm:$0xff] }
 0x4b3   : > { %v17423_v23 = vpack.c.bf16 %v14005_v22, %v14004_v21 }
 0x4cb   : > { %v15919_v27 = vpop.f32.mrb[22].mxu0  ;;  %v15954_v34 = vpop.f32.mrb[22].mxu1 }
 0x4cc   : > { %v15920_v28 = vpop.f32.mrb[23].mxu0  ;;  %v15955_v31 = vpop.f32.mrb[23].mxu1 }
 0x4cd   : > { %v15921_v39 = vadd.f32 %v15920_v28, %v15919_v27  ;;  %v15956_v32 = vadd.f32 %v15955_v31, %v15954_v34  ;;  %v13941_v27 = vld [vmem:[%s20882_s9 + $0x78] sm:$0xff]  ;;  %v14006_v34 = vld [vmem:[%s20882_s9 + $0x280] sm:$0xff] }
 0x4ce   : > { %v13990_v31 = vld [vmem:[%s20882_s9 + $0x200] sm:$0xff] }
 0x4cf   : > { %v13756_v40 = vadd.f32 %v15921_v39, %v13686_v7  ;;  %v13940_v7 = vld [vmem:[%s20882_s9 + $0x70] sm:$0xff]  ;;  %v13991_v39 = vld [vmem:[%s20882_s9 + $0x208] sm:$0xff] }
 0x4d1   : > { %v13826_v41 = vadd.f32 %v15956_v32, %v13756_v40  ;;  %v14008_v32 = vld [vmem:[%s20882_s9 + $0x290] sm:$0xff]  ;;  %v14009_v40 = vld [vmem:[%s20882_s9 + $0x298] sm:$0xff] }
 0x4d2   : > { %v17397_v9 = vpack.c.bf16 %v14009_v40, %v14008_v32 }
 0x4d3   : > { %17858 = vtanh.f32 %v13826_v41  ;;  %v17395_v41 = vpack.c.bf16 %v13991_v39, %v13990_v31  ;;  %v13974_v31 = vld [vmem:[%s20882_s9 + $0x180] sm:$0xff]  ;;  %v13975_v39 = vld [vmem:[%s20882_s9 + $0x188] sm:$0xff] }
 0x4d4   : > { %17860 = vtanh.f32 %v20382_v48  ;;  %v13928_v48 = vld [vmem:[%s20882_s9 + $0x10] sm:$0xff]  ;;  %v17361_v40 = vpack.c.bf16 %v13975_v39, %v13974_v31  ;;  %v14038_v31 = vld [vmem:[%s20882_s9 + $0x380] sm:$0xff] }
 0x4d5   : > { %v17335_v56 = vpack.c.bf16 %v13929_v47, %v13928_v48  ;;  %17862 = vtanh.f32 %v20386_v54  ;;  %v14007_v54 = vld [vmem:[%s20882_s9 + $0x288] sm:$0xff]  ;;  %v17399_v47 = vpack.c.bf16 %v13993_v43, %v13992_v42 }
 0x4d6   : > { %17864 = vtanh.f32 %v20402_v29  ;;  %v17359_v29 = vpack.c.bf16 %v13941_v27, %v13940_v7  ;;  %v17393_v28 = vpack.c.bf16 %v14007_v54, %v14006_v34  ;;  %v14066_v27 = vld [vmem:[#allocation9 + $0x60] sm:$0xff]  ;;  %v14067_v34 = vld [vmem:[#allocation9 + $0x68] sm:$0xff] }
 0x4d7   : > { %17866 = vtanh.f32 %v20406_v4  ;;  %v14064_v4 = vld [vmem:[#allocation9 + $0x50] sm:$0xff]  ;;  %v17324_v54 = vpack.c.bf16 %v14067_v34, %v14066_v27 }
 0x4dd   : > { %v17859_v50 = vpop.eup %17858 }
 0x4de   : > { %v17861_v53 = vpop.eup %17860  ;;  %16918 = vmatmul.mubr.f32.vlgmr.msra.gmra.mrb[24].mxu0 %v17859_v50 }
 0x4df   : > { %17332 = vmatpush3.bf16.msra.mxu0 %v17331_v45  ;;  %14204 = vmatprep.mubr.f32.mxu0 %v17861_v53  ;;  %v17863_v44 = vpop.eup %17862  ;;  %v14010_v45 = vld [vmem:[%s20882_s9 + $0x2a0] sm:$0xff]  ;;  %v14012_v53 = vld [vmem:[%s20882_s9 + $0x2b0] sm:$0xff] }
 0x4e0   : > { %17334 = vmatprep.subr.bf16.mxu0 %v17333_v46  ;;  %v14011_v46 = vld [vmem:[%s20882_s9 + $0x2a8] sm:$0xff]  ;;  %v17865_v48 = vpop.eup %17864 }
 0x4e1   : > { %v17401_v50 = vpack.c.bf16 %v14011_v46, %v14010_v45  ;;  %v13959_v45 = vld [vmem:[%s20882_s9 + $0x108] sm:$0xff]  ;;  %v13976_v46 = vld [vmem:[%s20882_s9 + $0x190] sm:$0xff] }
 0x4e3   : > { %17336 = vmatpush3.bf16.msra.mxu0 %v17335_v56  ;;  %v14013_v56 = vld [vmem:[%s20882_s9 + $0x2b8] sm:$0xff] }
 0x4e4   : > { %17338 = vmatprep.subr.bf16.mxu0 %v17337_v57  ;;  %v17403_v57 = vpack.c.bf16 %v13995_v52, %v13994_v51  ;;  %v17405_v58 = vpack.c.bf16 %v14013_v56, %v14012_v53  ;;  %v13961_v51 = vld [vmem:[%s20882_s9 + $0x118] sm:$0xff]  ;;  %v13978_v53 = vld [vmem:[%s20882_s9 + $0x1a0] sm:$0xff]  ;;  %v13979_v56 = vld [vmem:[%s20882_s9 + $0x1a8] sm:$0xff] }
 0x4e7   : > { %17340 = vmatpush3.bf16.msra.mxu0 %v17339_v62  ;;  %v14015_v62 = vld [vmem:[%s20882_s9 + $0x2c8] sm:$0xff] }
 0x4e8   : > { %17342 = vmatprep.subr.bf16.mxu0 %v17341_v0  ;;  %v17407_v0 = vpack.c.bf16 %v13997_v60, %v13996_v59  ;;  %v17409_v1 = vpack.c.bf16 %v14015_v62, %v14014_v61  ;;  %v17369_v59 = vpack.c.bf16 %v13979_v56, %v13978_v53  ;;  %v13962_v60 = vld [vmem:[%s20882_s9 + $0x120] sm:$0xff]  ;;  %v13963_v61 = vld [vmem:[%s20882_s9 + $0x128] sm:$0xff]  ;;  %v13980_v62 = vld [vmem:[%s20882_s9 + $0x1b0] sm:$0xff] }
 0x4e9   : > { %v14027_v53 = vld [vmem:[%s20882_s9 + $0x328] sm:$0xff]  ;;  %v14044_v56 = vld [vmem:[%s20882_s9 + $0x3b0] sm:$0xff] }
 0x4eb   : > { %17344 = vmatpush3.bf16.msra.mxu0 %v17343_v37  ;;  %v14017_v37 = vld [vmem:[%s20882_s9 + $0x2d8] sm:$0xff] }
 0x4ec   : > { %17346 = vmatprep.subr.bf16.mxu0 %v17345_v8  ;;  %v17411_v8 = vpack.c.bf16 %v13999_v33, %v13998_v36  ;;  %v17413_v10 = vpack.c.bf16 %v14017_v37, %v14016_v35  ;;  %v13964_v33 = vld [vmem:[%s20882_s9 + $0x130] sm:$0xff]  ;;  %v13965_v35 = vld [vmem:[%s20882_s9 + $0x138] sm:$0xff]  ;;  %v13982_v37 = vld [vmem:[%s20882_s9 + $0x1c0] sm:$0xff] }
 0x4ef   : > { %17348 = vmatpush3.bf16.msra.mxu0 %v17347_v13  ;;  %v14019_v13 = vld [vmem:[%s20882_s9 + $0x2e8] sm:$0xff] }
 0x4f0   : > { %17350 = vmatprep.subr.bf16.mxu0 %v17349_v14  ;;  %v17415_v14 = vpack.c.bf16 %v14001_v11, %v14000_v5  ;;  %v17417_v15 = vpack.c.bf16 %v14019_v13, %v14018_v6  ;;  %v13966_v11 = vld [vmem:[%s20882_s9 + $0x140] sm:$0xff]  ;;  %v13967_v6 = vld [vmem:[%s20882_s9 + $0x148] sm:$0xff]  ;;  %v13984_v13 = vld [vmem:[%s20882_s9 + $0x1d0] sm:$0xff] }
 0x4f3   : > { %17352 = vmatpush3.bf16.msra.mxu0 %v17351_v19  ;;  %v14021_v19 = vld [vmem:[%s20882_s9 + $0x2f8] sm:$0xff] }
 0x4f4   : > { %17354 = vmatprep.subr.bf16.mxu0 %v17353_v20  ;;  %v17419_v20 = vpack.c.bf16 %v14003_v17, %v14002_v16  ;;  %v17421_v12 = vpack.c.bf16 %v14021_v19, %v14020_v18  ;;  %v13968_v17 = vld [vmem:[%s20882_s9 + $0x150] sm:$0xff]  ;;  %v13969_v18 = vld [vmem:[%s20882_s9 + $0x158] sm:$0xff]  ;;  %v13986_v19 = vld [vmem:[%s20882_s9 + $0x1e0] sm:$0xff] }
 0x4f7   : > { %17356 = vmatpush3.bf16.msra.mxu0 %v17355_v24  ;;  %v17867_v24 = vpop.eup %17866 }
 0x4f8   : > { %17358 = vmatprep.subr.bf16.mxu0 %v17357_v25  ;;  %v14065_v25 = vld [vmem:[#allocation9 + $0x58] sm:$0xff] }
 0x4f9   : > { %v17321_v7 = vpack.c.bf16 %v14065_v25, %v14064_v4  ;;  %v13988_v25 = vld [vmem:[%s20882_s9 + $0x1f0] sm:$0xff] }
 0x4fb   : > { %17360 = vmatpush3.bf16.msra.mxu0 %v17359_v29  ;;  %17322 = vmatpush3.bf16.msra.mxu1 %v17321_v7  ;;  %v14068_v29 = vld [vmem:[#allocation9 + $0x70] sm:$0xff] }
 0x4fc   : > { %17394 = vmatprep.subr.bf16.mxu0 %v17393_v28  ;;  %17323 = vmatprep.subr.bf16.mxu1 %v18147_v38  ;;  %v14069_v28 = vld [vmem:[#allocation9 + $0x78] sm:$0xff]  ;;  %v13989_v7 = vld [vmem:[%s20882_s9 + $0x1f8] sm:$0xff] }
 0x4fd   : > { %v17327_v32 = vpack.c.bf16 %v14069_v28, %v14068_v29  ;;  %v13972_v29 = vld [vmem:[%s20882_s9 + $0x170] sm:$0xff]  ;;  %v13973_v28 = vld [vmem:[%s20882_s9 + $0x178] sm:$0xff] }
 0x4fe   : > { %14205 = vmatmul.mubr.f32.vlgmr.msra.gmra.mrb[26].mxu0 %v17863_v44  ;;  %v13958_v44 = vld [vmem:[%s20882_s9 + $0x100] sm:$0xff] }
 0x4ff   : > { %17396 = vmatpush3.bf16.msra.mxu0 %v17395_v41  ;;  %14344 = vmatprep.mubr.f32.mxu0 %v17865_v48  ;;  %v13846_v41 = vld [vmem:[%s20881_s8] sm:$0x1]  ;;  %v13977_v48 = vld [vmem:[%s20882_s9 + $0x198] sm:$0xff] }
 0x500   : > { %17398 = vmatprep.subr.bf16.mxu0 %v17397_v9  ;;  %17325 = vmatpush3.bf16.msra.mxu1 %v17324_v54  ;;  %v17389_v54 = vpack.c.bf16 %v13989_v7, %v13988_v25  ;;  %v14037_v25 = vld [vmem:[%s20882_s9 + $0x378] sm:$0xff] }
 0x501   : > { %17326 = vmatprep.subr.bf16.mxu1 %v18147_v38 }
 0x503   : > { %17400 = vmatpush3.bf16.msra.mxu0 %v17399_v47  ;;  %v17363_v47 = vpack.c.bf16 %v13959_v45, %v13958_v44  ;;  %v14024_v44 = vld [vmem:[%s20882_s9 + $0x310] sm:$0xff]  ;;  %v14025_v45 = vld [vmem:[%s20882_s9 + $0x318] sm:$0xff] }
 0x504   : > { %17402 = vmatprep.subr.bf16.mxu0 %v17401_v50  ;;  %17328 = vmatpush3.bf16.msra.mxu1 %v17327_v32  ;;  %v17365_v50 = vpack.c.bf16 %v13977_v48, %v13976_v46  ;;  %v14022_v32 = vld [vmem:[%s20882_s9 + $0x300] sm:$0xff] }
 0x505   : > { %17362 = vmatprep.subr.bf16.mxu1 %v17361_v40  ;;  %v14023_v40 = vld [vmem:[%s20882_s9 + $0x308] sm:$0xff]  ;;  %v14042_v48 = vld [vmem:[%s20882_s9 + $0x3a0] sm:$0xff] }
 0x507   : > { %17404 = vmatpush3.bf16.msra.mxu0 %v17403_v57 }
 0x508   : > { %17406 = vmatprep.subr.bf16.mxu0 %v17405_v58 }
 0x50b   : > { %17408 = vmatpush3.bf16.msra.mxu0 %v17407_v0  ;;  %v13981_v0 = vld [vmem:[%s20882_s9 + $0x1b8] sm:$0xff] }
 0x50c   : > { %17410 = vmatprep.subr.bf16.mxu0 %v17409_v1  ;;  %v17371_v1 = vpack.c.bf16 %v13963_v61, %v13962_v60  ;;  %v17373_v36 = vpack.c.bf16 %v13981_v0, %v13980_v62  ;;  %v14028_v60 = vld [vmem:[%s20882_s9 + $0x330] sm:$0xff]  ;;  %v14029_v61 = vld [vmem:[%s20882_s9 + $0x338] sm:$0xff]  ;;  %v14046_v62 = vld [vmem:[%s20882_s9 + $0x3c0] sm:$0xff] }
 0x50d   : > { %v14047_v0 = vld [vmem:[%s20882_s9 + $0x3c8] sm:$0xff] }
 0x50f   : > { %17412 = vmatpush3.bf16.msra.mxu0 %v17411_v8  ;;  %v13983_v8 = vld [vmem:[%s20882_s9 + $0x1c8] sm:$0xff] }
 0x510   : > { %17414 = vmatprep.subr.bf16.mxu0 %v17413_v10  ;;  %v17375_v10 = vpack.c.bf16 %v13965_v35, %v13964_v33  ;;  %v17377_v5 = vpack.c.bf16 %v13983_v8, %v13982_v37  ;;  %v14030_v33 = vld [vmem:[%s20882_s9 + $0x340] sm:$0xff]  ;;  %v14031_v35 = vld [vmem:[%s20882_s9 + $0x348] sm:$0xff]  ;;  %v14048_v37 = vld [vmem:[%s20882_s9 + $0x3d0] sm:$0xff] }
 0x511   : > { %v14049_v8 = vld [vmem:[%s20882_s9 + $0x3d8] sm:$0xff] }
 0x513   : > { %17416 = vmatpush3.bf16.msra.mxu0 %v17415_v14  ;;  %v13985_v14 = vld [vmem:[%s20882_s9 + $0x1d8] sm:$0xff] }
 0x514   : > { %17418 = vmatprep.subr.bf16.mxu0 %v17417_v15  ;;  %v17379_v15 = vpack.c.bf16 %v13967_v6, %v13966_v11  ;;  %v17381_v16 = vpack.c.bf16 %v13985_v14, %v13984_v13  ;;  %v14032_v11 = vld [vmem:[%s20882_s9 + $0x350] sm:$0xff]  ;;  %v14033_v6 = vld [vmem:[%s20882_s9 + $0x358] sm:$0xff]  ;;  %v14050_v13 = vld [vmem:[%s20882_s9 + $0x3e0] sm:$0xff] }
 0x515   : > { %v14051_v14 = vld [vmem:[%s20882_s9 + $0x3e8] sm:$0xff] }
 0x517   : > { %17420 = vmatpush3.bf16.msra.mxu0 %v17419_v20  ;;  %v13987_v20 = vld [vmem:[%s20882_s9 + $0x1e8] sm:$0xff] }
 0x518   : > { %17422 = vmatprep.subr.bf16.mxu0 %v17421_v12  ;;  %v17383_v12 = vpack.c.bf16 %v13969_v18, %v13968_v17  ;;  %v17385_v22 = vpack.c.bf16 %v13987_v20, %v13986_v19  ;;  %v17449_v17 = vpack.c.bf16 %v14051_v14, %v14050_v13  ;;  %v14034_v18 = vld [vmem:[%s20882_s9 + $0x360] sm:$0xff]  ;;  %v14035_v19 = vld [vmem:[%s20882_s9 + $0x368] sm:$0xff] }
 0x51b   : > { %17424 = vmatpush3.bf16.msra.mxu0 %v17423_v23  ;;  %v13970_v23 = vld [vmem:[%s20882_s9 + $0x160] sm:$0xff] }
 0x51c   : > { %17457 = vmatprep.subr.bf16.mxu0 %v18147_v38 }
 0x51e   : > { %14345 = vmatmul.mubr.f32.vlgmr.msra.gmra.mrb[28].mxu0 %v17867_v24  ;;  %v13971_v24 = vld [vmem:[%s20882_s9 + $0x168] sm:$0xff] }
 0x51f   : > { %16987 = vmatprep.mubr.msk.f32.mxu0 %vm18148_vm2, %v18146_v63  ;;  %v17387_v34 = vpack.c.bf16 %v13971_v24, %v13970_v23  ;;  %v17451_v23 = vpack.c.bf16 %v14035_v19, %v14034_v18 }
 0x5b1   : > { %v13913_v9 = vpop.f32.mrb[24].mxu0 }
 0x5b2   : > { %v13914_v42 = vadd.f32 %v13913_v9, %v13846_v41  ;;  %v16919_v43 = vpop.f32.mrb[25].mxu0  ;;  %v14040_v41 = vld [vmem:[%s20882_s9 + $0x390] sm:$0xff]  ;;  %v14041_v9 = vld [vmem:[%s20882_s9 + $0x398] sm:$0xff] }
 0x5b3   : > { %v17429_v43 = vpack.c.bf16 %v14041_v9, %v14040_v41  ;;  %v14431_v9 = vld [vmem:[#allocation12 + $0x40] sm:$0xff] }
 0x5b4   : > { %17868 = vtanh.f32 %v13914_v42  ;;  %v17427_v42 = vpack.c.bf16 %v14023_v40, %v14022_v32  ;;  %v14429_v40 = vld [vmem:[#allocation12 + $0x30] sm:$0xff] }
 0x5b5   : > { %17870 = vtanh.f32 %v20384_v49  ;;  %v13960_v49 = vld [vmem:[%s20882_s9 + $0x110] sm:$0xff] }
 0x5b6   : > { %v17367_v58 = vpack.c.bf16 %v13961_v51, %v13960_v49  ;;  %17872 = vtanh.f32 %v20388_v55  ;;  %v14039_v55 = vld [vmem:[%s20882_s9 + $0x388] sm:$0xff]  ;;  %v17431_v49 = vpack.c.bf16 %v14025_v45, %v14024_v44  ;;  %v14433_v44 = vld [vmem:[#allocation12 + $0x50] sm:$0xff] }
 0x5b7   : > { %17874 = vtanh.f32 %v20404_v2  ;;  %v17391_v2 = vpack.c.bf16 %v13973_v28, %v13972_v29  ;;  %v17425_v39 = vpack.c.bf16 %v14039_v55, %v14038_v31  ;;  %v14425_v29 = vld [vmem:[#allocation12 + $0x10] sm:$0xff]  ;;  %v14426_v31 = vld [vmem:[#allocation12 + $0x18] sm:$0xff] }
 0x5b8   : > { %17876 = vtanh.f32 %v20408_v30  ;;  %v14423_v30 = vld [vmem:[#allocation12] sm:$0xff]  ;;  %v17461_v55 = vpack.c.bf16 %v14426_v31, %v14425_v29  ;;  %v14434_v45 = vld [vmem:[#allocation12 + $0x58] sm:$0xff]  ;;  %v14439_v29 = vld [vmem:[%s20886_s13] sm:$0x1] }
 0x5be   : > { %v17869_v52 = vpop.eup %17868 }
 0x5bf   : > { %v17871_v57 = vpop.eup %17870  ;;  %16953 = vmatmul.mubr.f32.vlgmr.msra.gmra.mrb[24].mxu1 %v17869_v52  ;;  %v14026_v52 = vld [vmem:[%s20882_s9 + $0x320] sm:$0xff] }
 0x5c0   : > { %17364 = vmatpush3.bf16.msra.mxu1 %v17363_v47  ;;  %14274 = vmatprep.mubr.f32.mxu1 %v17871_v57  ;;  %v17873_v46 = vpop.eup %17872  ;;  %v14043_v47 = vld [vmem:[%s20882_s9 + $0x3a8] sm:$0xff]  ;;  %v14045_v57 = vld [vmem:[%s20882_s9 + $0x3b8] sm:$0xff] }
 0x5c1   : > { %17366 = vmatprep.subr.bf16.mxu1 %v17365_v50  ;;  %v17875_v50 = vpop.eup %17874  ;;  %v17433_v51 = vpack.c.bf16 %v14043_v47, %v14042_v48  ;;  %v14435_v48 = vld [vmem:[#allocation12 + $0x60] sm:$0xff]  ;;  %v14436_v47 = vld [vmem:[#allocation12 + $0x68] sm:$0xff] }
 0x5c4   : > { %17368 = vmatpush3.bf16.msra.mxu1 %v17367_v58  ;;  %v17435_v58 = vpack.c.bf16 %v14027_v53, %v14026_v52  ;;  %v14511_v53 = vld [vmem:[#allocation13] sm:$0xff] }
 0x5c5   : > { %17370 = vmatprep.subr.bf16.mxu1 %v17369_v59  ;;  %v17437_v59 = vpack.c.bf16 %v14045_v57, %v14044_v56  ;;  %v14512_v56 = vld [vmem:[#allocation13 + $0x8] sm:$0xff]  ;;  %v14513_v57 = vld [vmem:[#allocation13 + $0x10] sm:$0xff] }
 0x5c8   : > { %17372 = vmatpush3.bf16.msra.mxu1 %v17371_v1  ;;  %v17439_v1 = vpack.c.bf16 %v14029_v61, %v14028_v60  ;;  %v14515_v61 = vld [vmem:[#allocation13 + $0x20] sm:$0xff] }
 0x5c9   : > { %17374 = vmatprep.subr.bf16.mxu1 %v17373_v36  ;;  %v17441_v36 = vpack.c.bf16 %v14047_v0, %v14046_v62  ;;  %v14516_v62 = vld [vmem:[#allocation13 + $0x28] sm:$0xff] }
 0x5ca   : > { %v17488_v0 = vpack.c.bf16 %v14516_v62, %v14515_v61 }
 0x5cc   : > { %17376 = vmatpush3.bf16.msra.mxu1 %v17375_v10  ;;  %v17443_v10 = vpack.c.bf16 %v14031_v35, %v14030_v33  ;;  %v14519_v35 = vld [vmem:[#allocation13 + $0x40] sm:$0xff] }
 0x5cd   : > { %17378 = vmatprep.subr.bf16.mxu1 %v17377_v5  ;;  %v17445_v5 = vpack.c.bf16 %v14049_v8, %v14048_v37  ;;  %v14520_v37 = vld [vmem:[#allocation13 + $0x48] sm:$0xff] }
 0x5ce   : > { %v17494_v8 = vpack.c.bf16 %v14520_v37, %v14519_v35 }
 0x5d0   : > { %17380 = vmatpush3.bf16.msra.mxu1 %v17379_v15  ;;  %v17447_v15 = vpack.c.bf16 %v14033_v6, %v14032_v11 }
 0x5d1   : > { %v16023_v21 = vpop.f32.mrb[26].mxu0  ;;  %17382 = vmatprep.subr.bf16.mxu1 %v17381_v16 }
 0x5d2   : > { %v16024_v4 = vpop.f32.mrb[27].mxu0 }
 0x5d3   : > { %v20730_v27 = vadd.f32 %v16024_v4, %v16023_v21  ;;  %v14053_v21 = vld [vmem:[%s20882_s9 + $0x3f8] sm:$0xff]  ;;  %v14036_v4 = vld [vmem:[%s20882_s9 + $0x370] sm:$0xff] }
 0x5d4   : > { %17384 = vmatpush3.bf16.msra.mxu1 %v17383_v12  ;;  %v14052_v12 = vld [vmem:[%s20882_s9 + $0x3f0] sm:$0xff]  ;;  %v17455_v7 = vpack.c.bf16 %v14037_v25, %v14036_v4  ;;  %v14522_v4 = vld [vmem:[#allocation13 + $0x58] sm:$0xff] }
 0x5d5   : > { %17386 = vmatprep.subr.bf16.mxu1 %v17385_v22  ;;  %v17453_v24 = vpack.c.bf16 %v14053_v21, %v14052_v12 }
 0x5d8   : > { %17388 = vmatpush3.bf16.msra.mxu1 %v17387_v34  ;;  %v17877_v34 = vpop.eup %17876 }
 0x5d9   : > { %17390 = vmatprep.subr.bf16.mxu1 %v17389_v54  ;;  %v14424_v54 = vld [vmem:[#allocation12 + $0x8] sm:$0xff] }
 0x5da   : > { %v17458_v28 = vpack.c.bf16 %v14424_v54, %v14423_v30  ;;  %v14526_v30 = vld [vmem:[#allocation13 + $0x78] sm:$0xff] }
 0x5dc   : > { %17392 = vmatpush3.bf16.msra.mxu1 %v17391_v2  ;;  %17459 = vmatpush3.bf16.msra.mxu0 %v17458_v28  ;;  %v14427_v2 = vld [vmem:[#allocation12 + $0x20] sm:$0xff] }
 0x5dd   : > { %17426 = vmatprep.subr.bf16.mxu1 %v17425_v39  ;;  %17460 = vmatprep.subr.bf16.mxu0 %v18147_v38  ;;  %v14428_v39 = vld [vmem:[#allocation12 + $0x28] sm:$0xff] }
 0x5de   : > { %v17464_v32 = vpack.c.bf16 %v14428_v39, %v14427_v2  ;;  %v14527_v39 = vld [vmem:[%s21008_s26] sm:$0x1] }
 0x5df   : > { %14275 = vmatmul.mubr.f32.vlgmr.msra.gmra.mrb[26].mxu1 %v17873_v46  ;;  %v17473_v46 = vpack.c.bf16 %v14434_v45, %v14433_v44 }
 0x5e0   : > { %17428 = vmatpush3.bf16.msra.mxu1 %v17427_v42  ;;  %14414 = vmatprep.mubr.f32.mxu1 %v17875_v50  ;;  %v14432_v42 = vld [vmem:[#allocation12 + $0x48] sm:$0xff]  ;;  %v17476_v50 = vpack.c.bf16 %v14436_v47, %v14435_v48 }
 0x5e1   : > { %17430 = vmatprep.subr.bf16.mxu1 %v17429_v43  ;;  %17462 = vmatpush3.bf16.msra.mxu0 %v17461_v55  ;;  %v17470_v43 = vpack.c.bf16 %v14432_v42, %v14431_v9 }
 0x5e2   : > { %17463 = vmatprep.subr.bf16.mxu0 %v18147_v38 }
 0x5e4   : > { %17432 = vmatpush3.bf16.msra.mxu1 %v17431_v49  ;;  %v14437_v49 = vld [vmem:[#allocation12 + $0x70] sm:$0xff] }
 0x5e5   : > { %17434 = vmatprep.subr.bf16.mxu1 %v17433_v51  ;;  %17465 = vmatpush3.bf16.msra.mxu0 %v17464_v32  ;;  %v14438_v51 = vld [vmem:[#allocation12 + $0x78] sm:$0xff] }
 0x5e6   : > { %17466 = vmatprep.subr.bf16.mxu0 %v18147_v38  ;;  %v17479_v52 = vpack.c.bf16 %v14438_v51, %v14437_v49 }
 0x5e8   : > { %17436 = vmatpush3.bf16.msra.mxu1 %v17435_v58  ;;  %v17482_v58 = vpack.c.bf16 %v14512_v56, %v14511_v53 }
 0x5e9   : > { %17438 = vmatprep.subr.bf16.mxu1 %v17437_v59  ;;  %v14514_v59 = vld [vmem:[#allocation13 + $0x18] sm:$0xff] }
 0x5ea   : > { %v17485_v60 = vpack.c.bf16 %v14514_v59, %v14513_v57 }
 0x5ec   : > { %17440 = vmatpush3.bf16.msra.mxu1 %v17439_v1  ;;  %v14517_v1 = vld [vmem:[#allocation13 + $0x30] sm:$0xff] }
 0x5ed   : > { %17442 = vmatprep.subr.bf16.mxu1 %v17441_v36  ;;  %v14518_v36 = vld [vmem:[#allocation13 + $0x38] sm:$0xff] }
 0x5ee   : > { %v17491_v33 = vpack.c.bf16 %v14518_v36, %v14517_v1 }
 0x5f0   : > { %17444 = vmatpush3.bf16.msra.mxu1 %v17443_v10 }
 0x5f1   : > { %v16093_v16 = vpop.f32.mrb[28].mxu0  ;;  %17446 = vmatprep.subr.bf16.mxu1 %v17445_v5 }
 0x5f2   : > { %v16094_v20 = vpop.f32.mrb[29].mxu0 }
 0x5f3   : > { %v20830_v22 = vadd.f32 %v16094_v20, %v16093_v16  ;;  %v14420_v20 = vld [vmem:[#allocation10] sm:$0x1] }
 0x5f4   : > { %17448 = vmatpush3.bf16.msra.mxu1 %v17447_v15 }
 0x5f5   : > { %17450 = vmatprep.subr.bf16.mxu1 %v17449_v17 }
 0x5f8   : > { %17452 = vmatpush3.bf16.msra.mxu1 %v17451_v23 }
 0x5f9   : > { %17454 = vmatprep.subr.bf16.mxu1 %v17453_v24  ;;  %v14521_v24 = vld [vmem:[#allocation13 + $0x50] sm:$0xff] }
 0x5fa   : > { %v17497_v25 = vpack.c.bf16 %v14522_v4, %v14521_v24 }
 0x5fc   : > { %17456 = vmatpush3.bf16.msra.mxu1 %v17455_v7  ;;  %v14524_v7 = vld [vmem:[#allocation13 + $0x68] sm:$0xff] }
 0x5fd   : > { %17481 = vmatprep.subr.bf16.mxu1 %v18147_v38 }
 0x5ff   : > { %14415 = vmatmul.mubr.f32.vlgmr.msra.gmra.mrb[28].mxu1 %v17877_v34 }
 0x600   : > { %17022 = vmatprep.mubr.msk.f32.mxu1 %vm18148_vm2, %v18146_v63  ;;  %v14430_v63 = vld [vmem:[#allocation12 + $0x38] sm:$0xff]  ;;  %17483 = vmatpush3.bf16.msra.mxu1 %v17482_v58 }
 0x601   : > { %v17467_v41 = vpack.c.bf16 %v14430_v63, %v14429_v40  ;;  %17484 = vmatprep.subr.bf16.mxu1 %v18147_v38 }
 0x603   : > { %17468 = vmatpush3.bf16.msra.mxu0 %v17467_v41 }
 0x604   : > { %17469 = vmatprep.subr.bf16.mxu0 %v18147_v38  ;;  %17486 = vmatpush3.bf16.msra.mxu1 %v17485_v60 }
 0x605   : > { %17487 = vmatprep.subr.bf16.mxu1 %v18147_v38 }
 0x607   : > { %17471 = vmatpush3.bf16.msra.mxu0 %v17470_v43 }
 0x608   : > { %17472 = vmatprep.subr.bf16.mxu0 %v18147_v38  ;;  %17489 = vmatpush3.bf16.msra.mxu1 %v17488_v0 }
 0x609   : > { %17490 = vmatprep.subr.bf16.mxu1 %v18147_v38 }
 0x60b   : > { %17474 = vmatpush3.bf16.msra.mxu0 %v17473_v46 }
 0x60c   : > { %17475 = vmatprep.subr.bf16.mxu0 %v18147_v38  ;;  %17492 = vmatpush3.bf16.msra.mxu1 %v17491_v33 }
 0x60d   : > { %17493 = vmatprep.subr.bf16.mxu1 %v18147_v38 }
 0x60f   : > { %17477 = vmatpush3.bf16.msra.mxu0 %v17476_v50 }
 0x610   : > { %17478 = vmatprep.subr.bf16.mxu0 %v18147_v38  ;;  %17495 = vmatpush3.bf16.msra.mxu1 %v17494_v8 }
 0x611   : > { %17496 = vmatprep.subr.bf16.mxu1 %v18147_v38 }
 0x613   : > { %17480 = vmatpush3.bf16.msra.mxu0 %v17479_v52 }
 0x614   : > { %17498 = vmatpush3.bf16.msra.mxu1 %v17497_v25 }
 0x615   : > { %17499 = vmatprep.subr.bf16.mxu1 %v18147_v38 }
 0x692   : > { %v14136_v10 = vpop.f32.mrb[24].mxu1 }
 0x693   : > { %v14207_v5 = vadd.f32 %v20730_v27, %v14136_v10  ;;  %v16954_v11 = vpop.f32.mrb[25].mxu1  ;;  %v14523_v27 = vld [vmem:[#allocation13 + $0x60] sm:$0xff] }
 0x694   : > { %v17500_v34 = vpack.c.bf16 %v14524_v7, %v14523_v27 }
 0x696   : > { %17501 = vmatpush3.bf16.msra.mxu1 %v17500_v34 }
 0x697   : > { %17502 = vmatprep.subr.bf16.mxu1 %v18147_v38 }
 0x6b2   : > { %v16058_v6 = vpop.f32.mrb[26].mxu1 }
 0x6b3   : > { %v16059_v13 = vpop.f32.mrb[27].mxu1 }
 0x6b4   : > { %v16060_v14 = vadd.f32 %v16059_v13, %v16058_v6 }
 0x6b6   : > { %v14277_v15 = vadd.f32 %v16060_v14, %v14207_v5 }
 0x6b8   : > { %v14347_v16 = vadd.f32 %v20830_v22, %v14277_v15  ;;  %v14525_v22 = vld [vmem:[#allocation13 + $0x70] sm:$0xff] }
 0x6b9   : > { %v17503_v54 = vpack.c.bf16 %v14526_v30, %v14525_v22 }
 0x6bb   : > { %17504 = vmatpush3.bf16.msra.mxu1 %v17503_v54 }
 0x6d2   : > { %v16128_v17 = vpop.f32.mrb[28].mxu1 }
 0x6d3   : > { %v16129_v18 = vpop.f32.mrb[29].mxu1 }
 0x6d4   : > { %v16130_v19 = vadd.f32 %v16129_v18, %v16128_v17 }
 0x6d6   : > { %v14417_v12 = vadd.f32 %v16130_v19, %v14347_v16 }
 0x6d8   : > { %v14421_v21 = vadd.f32 %v14420_v20, %v14417_v12 }
 0x6da   : > { %17878 = vtanh.f32 %v14421_v21 }
 0x6e4   : > { %v17879_v23 = vpop.eup %17878 }
 0x6e5   : > { %16988 = vmatmul.mubr.f32.vlgmr.msra.gmra.mrb[30].mxu0 %v17879_v23 }
 0x7b8   : > { %v14506_v28 = vpop.f32.mrb[30].mxu0 }
 0x7b9   : > { %v14507_v31 = vadd.f32 %v14506_v28, %v14439_v29  ;;  %v16989_v55 = vpop.f32.mrb[31].mxu0 }
 0x7bb   : > { %17880 = vtanh.f32 %v14507_v31 }
 0x7c5   : > { %v17881_v2 = vpop.eup %17880 }
 0x7c6   : > { %17023 = vmatmul.mubr.f32.vlgmr.msra.gmra.mrb[30].mxu1 %v17881_v2 }
 0x899   : > { %v14594_v32 = vpop.f32.mrb[30].mxu1 }
 0x89a   : > { %v14595_v40 = vadd.f32 %v14594_v32, %v14527_v39  ;;  %v17024_v63 = vpop.f32.mrb[31].mxu1 }
 0x89c   : > { %v14601_v38 = vrot.slane %v14595_v40, %v13098_v3 }
 0x89e   : > { %14602 = vst [vmem:[%s632_s21] sm:$0xff] %v14601_v38 }
 0x89f PF: > { %s21010_s25 = sld [smem:[#allocation20_spill]] }
 0x8a5   : > { %s31_s21 = sadd.s32 1, %s21010_s25  }
 0x8a6   : > { %p28_p11 = scmp.ge.s32.totalorder %s31_s21, 4  }
 0x8a8   :  { %30 = sbr.rel (!%p28_p11) target bundleno = 12 (0xc), region = 157 }
 0x8af   :  { %14622 = vsyncpa [#allocation3], 1 }
 0x8b0   :  { %14624 = vsyncpa [#allocation3 + $0x1], 1 }
 0x8b1   :  { %14625 = vsyncpa [#allocation5], 1 }
 0x8b2   :  { %14626 = vsyncpa [#allocation8], 1 }
 0x8b3   :  { %14627 = vsyncpa [#allocation11], 1 }
 0x8b4   :  { %14628 = vsyncpa [#allocation14], 1 }

</bundles_post_ra>
